<compile_context>
chip_gen: v6e
topology: v6e:2x2x1
jax: 0.10.0
libtpu: 0.0.40
codegen_flags: <defaults>
</compile_context>

<pallas_src>
import math

import jax
import jax.numpy as jnp
from jax.experimental import pallas as pl
from jax.experimental.pallas import tpu as pltpu


# ---------------------------------------------------------------------------
# helpers: channel padding, banded weight matrices, tiling heuristics
# ---------------------------------------------------------------------------

def _pad_channels(c, w):
    """Smallest c' >= c such that w * c' is a multiple of 128 (lane-dense rows)."""
    g = 128 // math.gcd(w, 128)
    return ((c + g - 1) // g) * g


# NOTE (scalability guard): the banded-weight formulation below is ~4/W dense and its VMEM
# footprint scales O(W^2 * C_in * C_inner).  It is the right trade at the small spatial sizes
# of an innermost U-net block; for large W, switch to even/odd *width* streams with dense
# per-(kh,kw) weight matrices (same trick already used for height) to keep weights O(W*C).

def _build_down_bands(w_down, width, c_in_pad, inner_pad):
    """Conv2d(k=4,s=2,p=1) as 4 banded matrices B[kh]: [W*c_in_pad, (W/2)*inner_pad].

    down[oh, ow, o] = sum_kh (lrelu_x row (2*oh + kh - 1)) @ B[kh];
    rows flattened as (w, c) -> w*c_in_pad + c, columns as (ow, o) -> ow*inner_pad + o.
    """
    inner_nc, c_in, kh_sz, kw_sz = w_down.shape
    wp = jnp.zeros((inner_pad, c_in_pad, kh_sz, kw_sz), w_down.dtype)
    wp = wp.at[:inner_nc, :c_in].set(w_down)
    wt = jnp.transpose(wp, (2, 3, 1, 0))                       # [KH, KW, c_in_pad, inner_pad]
    wo = width // 2
    w_in = jnp.arange(width)[:, None]
    ow = jnp.arange(wo)[None, :]
    kw = w_in - 2 * ow + 1                                     # [W, W/2]
    valid = (kw >= 0) & (kw < kw_sz)
    sel = wt[:, jnp.clip(kw, 0, kw_sz - 1)]                    # [KH, W, W/2, c_in_pad, inner_pad]
    sel = jnp.where(valid[None, :, :, None, None], sel, 0.0)
    return jnp.transpose(sel, (0, 1, 3, 2, 4)).reshape(
        kh_sz, width * c_in_pad, wo * inner_pad)


def _build_up_bands(w_up, width, inner_pad, outer_pad):
    """ConvTranspose2d(k=4,s=2,p=1) as 4 banded matrices U[kh]: [(W/2)*inner_pad, W*outer_pad]."""
    inner_nc, outer_nc, kh_sz, kw_sz = w_up.shape
    wp = jnp.zeros((inner_pad, outer_pad, kh_sz, kw_sz), w_up.dtype)
    wp = wp.at[:inner_nc, :outer_nc].set(w_up)
    wt = jnp.transpose(wp, (2, 3, 0, 1))                       # [KH, KW, inner_pad, outer_pad]
    wo = width // 2
    j = jnp.arange(wo)[:, None]
    ow = jnp.arange(width)[None, :]
    kw = ow - 2 * j + 1                                        # [W/2, W]
    valid = (kw >= 0) & (kw < kw_sz)
    sel = wt[:, jnp.clip(kw, 0, kw_sz - 1)]                    # [KH, W/2, W, inner_pad, outer_pad]
    sel = jnp.where(valid[None, :, :, None, None], sel, 0.0)
    return jnp.transpose(sel, (0, 1, 3, 2, 4)).reshape(
        kh_sz, wo * inner_pad, width * outer_pad)


def _vmem_capacity_bytes():
    """Physical VMEM capacity; fall back to the smallest per-core value (v7x: 64 MiB)."""
    try:
        return int(pltpu.get_tpu_info().vmem_capacity_bytes)
    except Exception:
        return 64 * 1024 * 1024


def _resident_spec(block_shape, index_map):
    """BlockSpec for a grid-invariant operand: single-buffered when supported (the block
    never changes, so no double buffer is needed); plain BlockSpec otherwise."""
    try:
        return pl.BlockSpec(block_shape, index_map, pipeline_mode=pl.Buffered(1))
    except Exception:
        return pl.BlockSpec(block_shape, index_map)


def _pick_batch_block(n, r, per_image_bytes, budget_bytes, row_target=256):
    """Images per grid step: grow matmul M toward `row_target` rows within the VMEM budget,
    but keep >=2 parallel grid steps (v7x megacore) when the row target is unreachable."""
    if n <= 1 or r % 8 != 0:
        return 1
    divs = [d for d in range(1, n + 1) if n % d == 0]
    feas = [d for d in divs
            if d * r <= max(row_target, r) and d * per_image_bytes <= budget_bytes] or [1]
    b = max(feas)
    if n // b < 2:
        smaller = [d for d in feas if n // d >= 2]
        if smaller and 2 * max(smaller) * r >= b * r:
            b = max(smaller)
    return b


def _pick_row_tile(m, cap):
    """Largest divisor of m <= cap, preferring 16-row alignment (bf16 sublane packing) and
    >=2 grid steps when that costs less than 2x in tile size."""
    cap = max(1, min(cap, m))
    divs = [t for t in range(1, m + 1) if m % t == 0]
    for align in (16, 8, 1):
        pool = [t for t in divs if t <= cap and t % align == 0]
        if not pool:
            continue
        best = max(pool)
        multi = [t for t in pool if m // t >= 2]
        if multi and 2 * max(multi) >= best:
            return max(multi)
        return best
    return m


# ---------------------------------------------------------------------------
# Kernel 1: fused LeakyReLU -> Conv(s=2) -> ReLU -> ConvTranspose(s=2) + BN partial sums
# ---------------------------------------------------------------------------

def _fused_down_up_kernel(x_ref, wd_ref, wue_ref, wuo_ref, y_ref, ps_ref):
    # x_ref  : [B_blk, 2, R, wc]        f32   even/odd input rows, lanes = (w, c_in_pad)
    # wd_ref : [4*wc, kd]               bf16  down-conv bands stacked along K (kh = 0..3)
    # wue_ref: [2*kd, ku]               bf16  up-conv bands [U1; U3]  (even output rows)
    # wuo_ref: [2*kd, ku]               bf16  up-conv bands [U2; U0]  (odd  output rows)
    # y_ref  : [B_blk, R, 2*ku]         bf16  pre-BN rows, lanes = (parity, w, c_out_pad)
    # ps_ref : [2, ku]                  f32   per-block [sum; sum-of-squares]
    f32, bf16 = jnp.float32, jnp.bfloat16
    bb, _, r, wc = x_ref.shape
    kd = wd_ref.shape[1]
    ku = wue_ref.shape[1]

    # LeakyReLU(0.2) fused on load.
    xb = x_ref[...].astype(f32)
    xb = jnp.maximum(xb, 0.2 * xb)
    xe = xb[:, 0]                                   # x rows 2*oh       [bb, r, wc]
    xo = xb[:, 1]                                   # x rows 2*oh + 1   [bb, r, wc]

    # Down conv (k=4, s=2, p=1): output row oh reads input rows 2*oh-1 .. 2*oh+2.
    # The 4 shifted row streams are stacked along the contraction axis -> ONE K=4*wc matmul.
    zx = jnp.zeros((bb, 1, wc), f32)
    lhs_d = jnp.concatenate(
        [jnp.concatenate([zx, xo[:, :r - 1]], axis=1),   # kh=0: x[2*oh-1]  (top zero pad)
         xe,                                             # kh=1: x[2*oh]
         xo,                                             # kh=2: x[2*oh+1]
         jnp.concatenate([xe[:, 1:], zx], axis=1)],      # kh=3: x[2*oh+2]  (bottom zero pad)
        axis=-1).reshape(bb * r, 4 * wc).astype(bf16)
    d = jnp.dot(lhs_d, wd_ref[...], preferred_element_type=f32)
    d = jnp.maximum(d, 0.0).reshape(bb, r, kd)           # ReLU; intermediate stays in VMEM

    # Transposed conv (k=4, s=2, p=1):
    #   even out row 2m   = d[m] @ U1 + d[m-1] @ U3
    #   odd  out row 2m+1 = d[m] @ U2 + d[m+1] @ U0
    # (d[m], d[m +/- 1]) stacked along K -> one K=2*kd matmul per output-row parity.
    zd = jnp.zeros((bb, 1, kd), f32)
    dm1 = jnp.concatenate([zd, d[:, :r - 1]], axis=1)    # d[m-1], d[-1] = 0
    dp1 = jnp.concatenate([d[:, 1:], zd], axis=1)        # d[m+1], d[r]  = 0
    lhs_e = jnp.concatenate([d, dm1], axis=-1).reshape(bb * r, 2 * kd).astype(bf16)
    lhs_o = jnp.concatenate([d, dp1], axis=-1).reshape(bb * r, 2 * kd).astype(bf16)
    e_rows = jnp.dot(lhs_e, wue_ref[...], preferred_element_type=f32)    # [bb*r, ku]
    o_rows = jnp.dot(lhs_o, wuo_ref[...], preferred_element_type=f32)    # [bb*r, ku]

    # BatchNorm partial sums from the f32 accumulators (before the bf16 store).
    s1 = jnp.sum(e_rows, axis=0, keepdims=True) + jnp.sum(o_rows, axis=0, keepdims=True)
    s2 = (jnp.sum(e_rows * e_rows, axis=0, keepdims=True)
          + jnp.sum(o_rows * o_rows, axis=0, keepdims=True))
    ps_ref[...] = jnp.concatenate([s1, s2], axis=0)

    # Pre-BN activation in bf16, lane layout (parity, w, c) -> single lane-dense 2*ku store.
    y_ref[...] = jnp.concatenate([e_rows, o_rows], axis=-1).reshape(
        bb, r, 2 * ku).astype(y_ref.dtype)


# ---------------------------------------------------------------------------
# Kernel 2: BatchNorm affine (pure lane-dense streaming multiply-add)
# ---------------------------------------------------------------------------

def _bn_affine_kernel(y_ref, scale_ref, shift_ref, o_ref):
    # y_ref     : [TM, 2*ku] bf16  pre-BN rows
    # scale/shift: [1, 2*ku]  f32  folded BN affine (gamma*rsqrt(var+eps), beta-mean*scale)
    # o_ref     : [TM, 2*ku]  f32  normalized rows
    y = y_ref[...].astype(jnp.float32)
    o_ref[...] = (y * scale_ref[...] + shift_ref[...]).astype(o_ref.dtype)


# ---------------------------------------------------------------------------
# Full forward pass
# ---------------------------------------------------------------------------

def unet_skip_block_innermost(x_nchw, params):
    """x_nchw: [N, outer_nc, H, W] -> [N, 2*outer_nc, H, W] (innermost U-net skip block)."""
    w_down = params["w_down"]
    w_up = params["w_up"]
    gamma = params["gamma"]
    beta = params["beta"]

    n, c_in, h, w = x_nchw.shape
    inner_nc = w_down.shape[0]
    outer_nc = w_up.shape[1]
    assert c_in == outer_nc, "innermost block with input_nc=None uses input_nc == outer_nc"
    assert h % 2 == 0 and w % 2 == 0
    r = h // 2

    c_in_pad = _pad_channels(c_in, w)                # W*c_in_pad  % 128 == 0
    inner_pad = _pad_channels(inner_nc, w // 2)      # (W/2)*inner % 128 == 0
    outer_pad = _pad_channels(outer_nc, w)           # W*outer     % 128 == 0
    wc = w * c_in_pad
    kd = (w // 2) * inner_pad
    ku = w * outer_pad

    # ---- weights as stacked banded matrices (bf16 MXU operands) ----------------------------
    bands_d = _build_down_bands(w_down, w, c_in_pad, inner_pad)          # [4, wc, kd]
    wd = bands_d.reshape(4 * wc, kd).astype(jnp.bfloat16)                # K-stacked: one dot
    bands_u = _build_up_bands(w_up, w, inner_pad, outer_pad)             # [4, kd, ku]
    wu_e = jnp.concatenate([bands_u[1], bands_u[3]], axis=0).astype(jnp.bfloat16)  # [2kd, ku]
    wu_o = jnp.concatenate([bands_u[2], bands_u[0]], axis=0).astype(jnp.bfloat16)  # [2kd, ku]

    # ---- input relayout: NCHW -> (even/odd row planes, lanes = (w, c_in_pad)) ---------------
    x5 = jnp.transpose(x_nchw.reshape(n, c_in, r, 2, w), (0, 3, 2, 4, 1))  # (n,2,r,w,c_in)
    if c_in_pad != c_in:
        x5 = jnp.pad(x5, ((0, 0),) * 4 + ((0, c_in_pad - c_in),))
    xp = x5.reshape(n, 2, r, wc)

    # ---- VMEM-budgeted tiling (respects v7x 64 MiB vs 128 MiB on v5e/v6e) -------------------
    vmem_cap = _vmem_capacity_bytes()
    weight_bytes = (4 * wc * kd + 2 * (2 * kd) * ku) * 2
    act1 = 2 * r * wc * 4 + r * 2 * ku * 2                       # x / y HBM blocks per image
    work1 = r * (4 * wc * 2 + kd * 4 + 2 * (2 * kd) * 2 + 2 * ku * 4 + 2 * wc * 4)
    per_image = 2 * act1 + 2 * work1                             # double-buffer + slack
    budget1 = max(vmem_cap // 2 - weight_bytes, per_image)
    b_blk = _pick_batch_block(n, r, per_image, budget1, row_target=256)
    n_blk = n // b_blk
    vmem1 = int(min(max(weight_bytes + b_blk * per_image + (2 << 20), 16 << 20),
                    (vmem_cap * 3) // 4))

    # ---- kernel 1: fused lrelu -> conv -> relu -> convT + BN partial sums -------------------
    y_pre, psums = pl.pallas_call(
        _fused_down_up_kernel,
        out_shape=(jax.ShapeDtypeStruct((n, r, 2 * ku), jnp.bfloat16),
                   jax.ShapeDtypeStruct((n_blk, 2, ku), jnp.float32)),
        grid=(n_blk,),
        in_specs=[
            pl.BlockSpec((b_blk, 2, r, wc), lambda i: (i, 0, 0, 0)),
            _resident_spec((4 * wc, kd), lambda i: (0, 0)),
            _resident_spec((2 * kd, ku), lambda i: (0, 0)),
            _resident_spec((2 * kd, ku), lambda i: (0, 0)),
        ],
        out_specs=(
            pl.BlockSpec((b_blk, r, 2 * ku), lambda i: (i, 0, 0)),
            pl.BlockSpec((None, 2, ku), lambda i: (i, 0, 0)),
        ),
        compiler_params=pltpu.CompilerParams(
            dimension_semantics=("parallel",),
            vmem_limit_bytes=vmem1,
        ),
    )(xp, wd, wu_e, wu_o)

    # ---- finish BatchNorm statistics on a tiny array (training mode, biased variance) -------
    cnt = n * h * w
    s = jnp.sum(psums, axis=0).reshape(2, w, outer_pad)
    mean = jnp.sum(s[0], axis=0) / cnt
    var = jnp.maximum(jnp.sum(s[1], axis=0) / cnt - mean * mean, 0.0)
    gamma_p = jnp.zeros((outer_pad,), jnp.float32).at[:outer_nc].set(gamma)
    beta_p = jnp.zeros((outer_pad,), jnp.float32).at[:outer_nc].set(beta)
    scale = gamma_p * jax.lax.rsqrt(var + 1e-5)
    shift = beta_p - mean * scale
    scale_row = jnp.tile(scale, 2 * w).reshape(1, 2 * ku)        # lane layout (parity, w, c)
    shift_row = jnp.tile(shift, 2 * w).reshape(1, 2 * ku)

    # ---- kernel 2: lane-dense streaming BN affine -------------------------------------------
    m2 = n * r
    y2 = y_pre.reshape(m2, 2 * ku)
    row_bytes2 = 2 * ku * (2 + 4)                                # bf16 in + f32 out per row
    cap_rows = max(16, (vmem_cap // 4) // max(2 * row_bytes2, 1))
    tm = _pick_row_tile(m2, min(1024, cap_rows))
    vmem2 = int(min(max(4 * tm * row_bytes2 + (2 << 20), 8 << 20), (vmem_cap * 3) // 4))

    out2 = pl.pallas_call(
        _bn_affine_kernel,
        out_shape=jax.ShapeDtypeStruct((m2, 2 * ku), x_nchw.dtype),
        grid=(m2 // tm,),
        in_specs=[
            pl.BlockSpec((tm, 2 * ku), lambda i: (i, 0)),
            _resident_spec((1, 2 * ku), lambda i: (0, 0)),
            _resident_spec((1, 2 * ku), lambda i: (0, 0)),
        ],
        out_specs=pl.BlockSpec((tm, 2 * ku), lambda i: (i, 0)),
        compiler_params=pltpu.CompilerParams(
            dimension_semantics=("parallel",),
            vmem_limit_bytes=vmem2,
        ),
    )(y2, scale_row, shift_row)

    # ---- boundary: restore NCHW (h = 2*rr + parity), strip channel pad, concat skip ---------
    y5 = out2.reshape(n, r, 2, w, outer_pad)
    y_nchw = jnp.transpose(y5, (0, 4, 1, 2, 3)).reshape(n, outer_pad, h, w)[:, :outer_nc]
    return jnp.concatenate([x_nchw, y_nchw], axis=1)


# ---------------------------------------------------------------------------
# Pure-JAX reference (for in-script validation)
# ---------------------------------------------------------------------------

def _reference_forward(x, params):
    w_down, w_up = params["w_down"], params["w_up"]
    gamma, beta = params["gamma"], params["beta"]
    hi = jax.lax.Precision.HIGHEST
    y = jnp.where(x > 0, x, 0.2 * x)
    y = jax.lax.conv_general_dilated(
        y, w_down, window_strides=(2, 2), padding=((1, 1), (1, 1)),
        dimension_numbers=("NCHW", "OIHW", "NCHW"), precision=hi)
    y = jnp.maximum(y, 0.0)
    w_t = jnp.transpose(w_up, (1, 0, 2, 3))[:, :, ::-1, ::-1]
    y = jax.lax.conv_general_dilated(
        y, w_t, window_strides=(1, 1), padding=((2, 2), (2, 2)),
        lhs_dilation=(2, 2), dimension_numbers=("NCHW", "OIHW", "NCHW"), precision=hi)
    mean = jnp.mean(y, axis=(0, 2, 3), keepdims=True)
    var = jnp.mean(jnp.square(y - mean), axis=(0, 2, 3), keepdims=True)
    y = (y - mean) * jax.lax.rsqrt(var + 1e-5)
    y = y * gamma.reshape(1, -1, 1, 1) + beta.reshape(1, -1, 1, 1)
    return jnp.concatenate([x, y], axis=1)


# ---------------------------------------------------------------------------
# Main
# ---------------------------------------------------------------------------

if __name__ == "__main__":
    n, outer_nc, inner_nc, h, w = 2, 4, 8, 16, 16

    key = jax.random.PRNGKey(0)
    k1, k2, k3 = jax.random.split(key, 3)

    x = jax.random.normal(k1, (n, outer_nc, h, w), dtype=jnp.float32)
    params = {
        # Conv2d(outer_nc -> inner_nc, 4x4), bias=False (BatchNorm2d => use_bias=False)
        "w_down": 0.05 * jax.random.normal(k2, (inner_nc, outer_nc, 4, 4), dtype=jnp.float32),
        # ConvTranspose2d(inner_nc -> outer_nc, 4x4), bias=False
        "w_up": 0.05 * jax.random.normal(k3, (inner_nc, outer_nc, 4, 4), dtype=jnp.float32),
        # BatchNorm2d affine params (PyTorch defaults: gamma=1, beta=0)
        "gamma": jnp.ones((outer_nc,), dtype=jnp.float32),
        "beta": jnp.zeros((outer_nc,), dtype=jnp.float32),
    }

    out = jax.jit(unet_skip_block_innermost)(x, params)
    jax.block_until_ready(out)

    assert out.shape == (n, 2 * outer_nc, h, w), out.shape
    # skip half must be a bit-exact copy of the input
    assert bool(jnp.all(out[:, :outer_nc] == x))
    # numerics vs a pure-JAX f32 reference (kernel uses bf16 MXU operands + bf16 intermediate
    # storage with f32 accumulation / f32 BN statistics)
    ref = _reference_forward(x, params)
    err = float(jnp.max(jnp.abs(out - ref)))
    assert err < 1e-1, f"max abs error vs reference: {err}"

    print("KERNEL_OK")
</pallas_src>

<mosaic_0001>
module attributes {stable_mosaic.version = 11 : i64} {
  func.func @_fused_down_up_kernel(%arg0: i32, %arg1: memref<1x2x8x128xf32, #tpu.memory_space<vmem>>, %arg2: memref<512x128xbf16, #tpu.memory_space<vmem>>, %arg3: memref<256x128xbf16, #tpu.memory_space<vmem>>, %arg4: memref<256x128xbf16, #tpu.memory_space<vmem>>, %arg5: memref<1x8x256xbf16, #tpu.memory_space<vmem>>, %arg6: memref<1x2x128xf32, #tpu.memory_space<vmem>>) attributes {dimension_semantics = [#tpu.dimension_semantics<parallel>], iteration_bounds = array<i64: 2>, scalar_prefetch = 0 : i64, scratch_operands = 0 : i64, tpu.core_type = #tpu.core_type<tc>, window_params = [{transform_indices = @transform_0, window_bounds = array<i64: 1, 2, 8, 128>}, {pipeline_mode = #tpu.pipeline_mode<synchronous>, transform_indices = @transform_1, window_bounds = array<i64: 512, 128>}, {pipeline_mode = #tpu.pipeline_mode<synchronous>, transform_indices = @transform_2, window_bounds = array<i64: 256, 128>}, {pipeline_mode = #tpu.pipeline_mode<synchronous>, transform_indices = @transform_3, window_bounds = array<i64: 256, 128>}, {transform_indices = @transform_4, window_bounds = array<i64: 1, 8, 256>}, {transform_indices = @transform_5, window_bounds = array<i64: 1, 2, 128>}]} {
    %c0 = arith.constant 0 : index
    %c0_0 = arith.constant 0 : index
    %c0_1 = arith.constant 0 : index
    %c0_2 = arith.constant 0 : index
    %0 = vector.load %arg1[%c0, %c0_0, %c0_1, %c0_2] : memref<1x2x8x128xf32, #tpu.memory_space<vmem>>, vector<1x2x8x128xf32>
    %cst = arith.constant 2.000000e-01 : f32
    %1 = vector.broadcast %cst : f32 to vector<1x2x8x128xf32>
    %2 = arith.mulf %1, %0 : vector<1x2x8x128xf32>
    %3 = arith.maximumf %0, %2 : vector<1x2x8x128xf32>
    %4 = vector.extract_strided_slice %3 {offsets = [0, 0, 0, 0], sizes = [1, 1, 8, 128], strides = [1, 1, 1, 1]} : vector<1x2x8x128xf32> to vector<1x1x8x128xf32>
    %5 = vector.shape_cast %4 : vector<1x1x8x128xf32> to vector<1x8x128xf32>
    %6 = vector.extract_strided_slice %3 {offsets = [0, 1, 0, 0], sizes = [1, 1, 8, 128], strides = [1, 1, 1, 1]} : vector<1x2x8x128xf32> to vector<1x1x8x128xf32>
    %7 = vector.shape_cast %6 : vector<1x1x8x128xf32> to vector<1x8x128xf32>
    %cst_3 = arith.constant 0.000000e+00 : f32
    %8 = vector.broadcast %cst_3 : f32 to vector<1x1x128xf32>
    %9 = vector.extract_strided_slice %7 {offsets = [0, 0, 0], sizes = [1, 7, 128], strides = [1, 1, 1]} : vector<1x8x128xf32> to vector<1x7x128xf32>
    %10 = tpu.concatenate %8, %9 in 1 : vector<1x1x128xf32>, vector<1x7x128xf32> -> vector<1x8x128xf32>
    %11 = vector.extract_strided_slice %5 {offsets = [0, 1, 0], sizes = [1, 7, 128], strides = [1, 1, 1]} : vector<1x8x128xf32> to vector<1x7x128xf32>
    %12 = tpu.concatenate %11, %8 in 1 : vector<1x7x128xf32>, vector<1x1x128xf32> -> vector<1x8x128xf32>
    %13 = tpu.concatenate %10, %5, %7, %12 in 2 : vector<1x8x128xf32>, vector<1x8x128xf32>, vector<1x8x128xf32>, vector<1x8x128xf32> -> vector<1x8x512xf32>
    %14 = vector.shape_cast %13 : vector<1x8x512xf32> to vector<8x512xf32>
    %15 = arith.truncf %14 : vector<8x512xf32> to vector<8x512xbf16>
    %c0_4 = arith.constant 0 : index
    %c0_5 = arith.constant 0 : index
    %16 = vector.load %arg2[%c0_4, %c0_5] : memref<512x128xbf16, #tpu.memory_space<vmem>>, vector<512x128xbf16>
    %cst_6 = arith.constant dense<0.000000e+00> : vector<8x128xf32>
    %17 = tpu.matmul %15, %16, %cst_6 {dimension_numbers = #tpu.dot_dimension_numbers<[1], [0], [0], [1], [0, 0, 1, 1], [], []>} : vector<8x512xbf16>, vector<512x128xbf16>, vector<8x128xf32> -> vector<8x128xf32>
    %cst_7 = arith.constant 0.000000e+00 : f32
    %18 = vector.broadcast %cst_7 : f32 to vector<8x128xf32>
    %19 = arith.maximumf %17, %18 : vector<8x128xf32>
    %20 = vector.shape_cast %19 : vector<8x128xf32> to vector<1x8x128xf32>
    %cst_8 = arith.constant 0.000000e+00 : f32
    %21 = vector.broadcast %cst_8 : f32 to vector<1x1x128xf32>
    %22 = vector.extract_strided_slice %20 {offsets = [0, 0, 0], sizes = [1, 7, 128], strides = [1, 1, 1]} : vector<1x8x128xf32> to vector<1x7x128xf32>
    %23 = tpu.concatenate %21, %22 in 1 : vector<1x1x128xf32>, vector<1x7x128xf32> -> vector<1x8x128xf32>
    %24 = vector.extract_strided_slice %20 {offsets = [0, 1, 0], sizes = [1, 7, 128], strides = [1, 1, 1]} : vector<1x8x128xf32> to vector<1x7x128xf32>
    %25 = tpu.concatenate %24, %21 in 1 : vector<1x7x128xf32>, vector<1x1x128xf32> -> vector<1x8x128xf32>
    %26 = tpu.concatenate %20, %23 in 2 : vector<1x8x128xf32>, vector<1x8x128xf32> -> vector<1x8x256xf32>
    %27 = vector.shape_cast %26 : vector<1x8x256xf32> to vector<8x256xf32>
    %28 = arith.truncf %27 : vector<8x256xf32> to vector<8x256xbf16>
    %29 = tpu.concatenate %20, %25 in 2 : vector<1x8x128xf32>, vector<1x8x128xf32> -> vector<1x8x256xf32>
    %30 = vector.shape_cast %29 : vector<1x8x256xf32> to vector<8x256xf32>
    %31 = arith.truncf %30 : vector<8x256xf32> to vector<8x256xbf16>
    %c0_9 = arith.constant 0 : index
    %c0_10 = arith.constant 0 : index
    %32 = vector.load %arg3[%c0_9, %c0_10] : memref<256x128xbf16, #tpu.memory_space<vmem>>, vector<256x128xbf16>
    %cst_11 = arith.constant dense<0.000000e+00> : vector<8x128xf32>
    %33 = tpu.matmul %28, %32, %cst_11 {dimension_numbers = #tpu.dot_dimension_numbers<[1], [0], [0], [1], [0, 0, 1, 1], [], []>} : vector<8x256xbf16>, vector<256x128xbf16>, vector<8x128xf32> -> vector<8x128xf32>
    %c0_12 = arith.constant 0 : index
    %c0_13 = arith.constant 0 : index
    %34 = vector.load %arg4[%c0_12, %c0_13] : memref<256x128xbf16, #tpu.memory_space<vmem>>, vector<256x128xbf16>
    %cst_14 = arith.constant dense<0.000000e+00> : vector<8x128xf32>
    %35 = tpu.matmul %31, %34, %cst_14 {dimension_numbers = #tpu.dot_dimension_numbers<[1], [0], [0], [1], [0, 0, 1, 1], [], []>} : vector<8x256xbf16>, vector<256x128xbf16>, vector<8x128xf32> -> vector<8x128xf32>
    %cst_15 = arith.constant dense<0.000000e+00> : vector<128xf32>
    %36 = vector.multi_reduction <add>, %33, %cst_15 [0] : vector<8x128xf32> to vector<128xf32>
    %37 = vector.shape_cast %36 : vector<128xf32> to vector<1x128xf32>
    %cst_16 = arith.constant dense<0.000000e+00> : vector<128xf32>
    %38 = vector.multi_reduction <add>, %35, %cst_16 [0] : vector<8x128xf32> to vector<128xf32>
    %39 = vector.shape_cast %38 : vector<128xf32> to vector<1x128xf32>
    %40 = arith.addf %37, %39 : vector<1x128xf32>
    %41 = arith.mulf %33, %33 : vector<8x128xf32>
    %cst_17 = arith.constant dense<0.000000e+00> : vector<128xf32>
    %42 = vector.multi_reduction <add>, %41, %cst_17 [0] : vector<8x128xf32> to vector<128xf32>
    %43 = vector.shape_cast %42 : vector<128xf32> to vector<1x128xf32>
    %44 = arith.mulf %35, %35 : vector<8x128xf32>
    %cst_18 = arith.constant dense<0.000000e+00> : vector<128xf32>
    %45 = vector.multi_reduction <add>, %44, %cst_18 [0] : vector<8x128xf32> to vector<128xf32>
    %46 = vector.shape_cast %45 : vector<128xf32> to vector<1x128xf32>
    %47 = arith.addf %43, %46 : vector<1x128xf32>
    %48 = tpu.concatenate %40, %47 in 0 : vector<1x128xf32>, vector<1x128xf32> -> vector<2x128xf32>
    %c0_19 = arith.constant 0 : index
    %c0_20 = arith.constant 0 : index
    %c0_21 = arith.constant 0 : index
    %49 = vector.load %arg6[%c0_19, %c0_20, %c0_21] : memref<1x2x128xf32, #tpu.memory_space<vmem>>, vector<1x2x128xf32>
    %50 = vector.shape_cast %49 : vector<1x2x128xf32> to vector<2x128xf32>
    %51 = vector.shape_cast %48 : vector<2x128xf32> to vector<1x2x128xf32>
    tpu.vector_store %arg6[%c0_19, %c0_20, %c0_21], %51 {strides = array<i32>} : memref<1x2x128xf32, #tpu.memory_space<vmem>>, vector<1x2x128xf32>,
    %52 = tpu.concatenate %33, %35 in 1 : vector<8x128xf32>, vector<8x128xf32> -> vector<8x256xf32>
    %53 = vector.shape_cast %52 : vector<8x256xf32> to vector<1x8x256xf32>
    %54 = arith.truncf %53 : vector<1x8x256xf32> to vector<1x8x256xbf16>
    %c0_22 = arith.constant 0 : index
    %c0_23 = arith.constant 0 : index
    %c0_24 = arith.constant 0 : index
    %55 = vector.load %arg5[%c0_22, %c0_23, %c0_24] : memref<1x8x256xbf16, #tpu.memory_space<vmem>>, vector<1x8x256xbf16>
    tpu.vector_store %arg5[%c0_22, %c0_23, %c0_24], %54 {strides = array<i32>} : memref<1x8x256xbf16, #tpu.memory_space<vmem>>, vector<1x8x256xbf16>,
    return
  }
  func.func @transform_0(%arg0: i32) -> (i32, i32, i32, i32) {
    %c0_i32 = arith.constant 0 : i32
    %c0_i32_0 = arith.constant 0 : i32
    %c0_i32_1 = arith.constant 0 : i32
    %c0_i32_2 = arith.constant 0 : i32
    return %arg0, %c0_i32, %c0_i32_0, %c0_i32_1 : i32, i32, i32, i32
  }
  func.func @transform_1(%arg0: i32) -> (i32, i32) {
    %c0_i32 = arith.constant 0 : i32
    %c0_i32_0 = arith.constant 0 : i32
    %c0_i32_1 = arith.constant 0 : i32
    return %c0_i32, %c0_i32_0 : i32, i32
  }
  func.func @transform_2(%arg0: i32) -> (i32, i32) {
    %c0_i32 = arith.constant 0 : i32
    %c0_i32_0 = arith.constant 0 : i32
    %c0_i32_1 = arith.constant 0 : i32
    return %c0_i32, %c0_i32_0 : i32, i32
  }
  func.func @transform_3(%arg0: i32) -> (i32, i32) {
    %c0_i32 = arith.constant 0 : i32
    %c0_i32_0 = arith.constant 0 : i32
    %c0_i32_1 = arith.constant 0 : i32
    return %c0_i32, %c0_i32_0 : i32, i32
  }
  func.func @transform_4(%arg0: i32) -> (i32, i32, i32) {
    %c0_i32 = arith.constant 0 : i32
    %c0_i32_0 = arith.constant 0 : i32
    %c0_i32_1 = arith.constant 0 : i32
    return %arg0, %c0_i32, %c0_i32_0 : i32, i32, i32
  }
  func.func @transform_5(%arg0: i32) -> (i32, i32, i32) {
    %c0_i32 = arith.constant 0 : i32
    %c0_i32_0 = arith.constant 0 : i32
    %c0_i32_1 = arith.constant 0 : i32
    return %arg0, %c0_i32, %c0_i32_0 : i32, i32, i32
  }
}

module attributes {stable_mosaic.version = 11 : i64} {
  func.func @_bn_affine_kernel(%arg0: i32, %arg1: memref<16x256xbf16, #tpu.memory_space<vmem>>, %arg2: memref<1x256xf32, #tpu.memory_space<vmem>>, %arg3: memref<1x256xf32, #tpu.memory_space<vmem>>, %arg4: memref<16x256xf32, #tpu.memory_space<vmem>>) attributes {dimension_semantics = [#tpu.dimension_semantics<parallel>], iteration_bounds = array<i64: 1>, scalar_prefetch = 0 : i64, scratch_operands = 0 : i64, tpu.core_type = #tpu.core_type<tc>, window_params = [{transform_indices = @transform_0, window_bounds = array<i64: 16, 256>}, {pipeline_mode = #tpu.pipeline_mode<synchronous>, transform_indices = @transform_1, window_bounds = array<i64: 1, 256>}, {pipeline_mode = #tpu.pipeline_mode<synchronous>, transform_indices = @transform_2, window_bounds = array<i64: 1, 256>}, {transform_indices = @transform_3, window_bounds = array<i64: 16, 256>}]} {
    %c0 = arith.constant 0 : index
    %c0_0 = arith.constant 0 : index
    %0 = vector.load %arg1[%c0, %c0_0] : memref<16x256xbf16, #tpu.memory_space<vmem>>, vector<16x256xbf16>
    %1 = arith.extf %0 : vector<16x256xbf16> to vector<16x256xf32>
    %c0_1 = arith.constant 0 : index
    %c0_2 = arith.constant 0 : index
    %2 = vector.load %arg2[%c0_1, %c0_2] : memref<1x256xf32, #tpu.memory_space<vmem>>, vector<1x256xf32>
    %3 = vector.broadcast %2 : vector<1x256xf32> to vector<16x256xf32>
    %4 = arith.mulf %1, %3 : vector<16x256xf32>
    %c0_3 = arith.constant 0 : index
    %c0_4 = arith.constant 0 : index
    %5 = vector.load %arg3[%c0_3, %c0_4] : memref<1x256xf32, #tpu.memory_space<vmem>>, vector<1x256xf32>
    %6 = vector.broadcast %5 : vector<1x256xf32> to vector<16x256xf32>
    %7 = arith.addf %4, %6 : vector<16x256xf32>
    %c0_5 = arith.constant 0 : index
    %c0_6 = arith.constant 0 : index
    %8 = vector.load %arg4[%c0_5, %c0_6] : memref<16x256xf32, #tpu.memory_space<vmem>>, vector<16x256xf32>
    tpu.vector_store %arg4[%c0_5, %c0_6], %7 {strides = array<i32>} : memref<16x256xf32, #tpu.memory_space<vmem>>, vector<16x256xf32>,
    return
  }
  func.func @transform_0(%arg0: i32) -> (i32, i32) {
    %c0_i32 = arith.constant 0 : i32
    %c0_i32_0 = arith.constant 0 : i32
    return %arg0, %c0_i32 : i32, i32
  }
  func.func @transform_1(%arg0: i32) -> (i32, i32) {
    %c0_i32 = arith.constant 0 : i32
    %c0_i32_0 = arith.constant 0 : i32
    %c0_i32_1 = arith.constant 0 : i32
    return %c0_i32, %c0_i32_0 : i32, i32
  }
  func.func @transform_2(%arg0: i32) -> (i32, i32) {
    %c0_i32 = arith.constant 0 : i32
    %c0_i32_0 = arith.constant 0 : i32
    %c0_i32_1 = arith.constant 0 : i32
    return %c0_i32, %c0_i32_0 : i32, i32
  }
  func.func @transform_3(%arg0: i32) -> (i32, i32) {
    %c0_i32 = arith.constant 0 : i32
    %c0_i32_0 = arith.constant 0 : i32
    return %arg0, %c0_i32 : i32, i32
  }
}

</mosaic_0001>

<bundles_post_ra>
// kernel: squeeze.0
= control target key start
LH: loop header
LB: loop body
LE: loop exit
PB: predicated region body
PF: predicated region fallthrough
CT: control target
= control target key end

     0   :  { %vm2052_vm0 = vcmask 1047556   ;;  %s4480_s18 = smov 112   ;;  %s4483_s21 = smov 64   ;;  %vm2054_vm1 = vcmask 130048   ;;  %vm2199_vm2 = vcmask 1048448   ;;  %vm2374_vm3 = vcmask 917248   ;;  %s5025_s0 = inlined_call_operand.vmem [shape: bf16[1,8,16,16,8], index: 0, kind: input, shape index: {}]   ;;  %s5026_s1 = inlined_call_operand.vmem [shape: bf16[128,128], index: 1, kind: output, shape index: {}]  }
   0x1   :  { %v4167_v0 = vld [vmem:[%s5025_s0 + $0x98] sm:$0xff]   ;;  %v4168_v1 = vld [vmem:[%s5025_s0 + $0x90] sm:$0xff]   ;;  %v4169_v2 = vld [vmem:[%s5025_s0 + $0x88] sm:$0xff]   ;;  %s4484_s22 = smov 48   ;;  %s4485_s23 = smov 32   ;;  %vm2549_vm4 = vcmask 786048  }
   0x2   :  { %v4005_v3 = vunpack.c.l.bf16 %v4167_v0  ;;  %v4006_v4 = vunpack.c.h.bf16 %v4167_v0  ;;  %v4009_v5 = vunpack.c.l.bf16 %v4168_v1  ;;  %v4010_v6 = vunpack.c.h.bf16 %v4168_v1  ;;  %v4170_v7 = vld [vmem:[%s5025_s0 + $0x80] sm:$0xff]   ;;  %v4183_v8 = vld [vmem:[%s5025_s0 + $0x18] sm:$0xff]   ;;  %v4184_v9 = vld [vmem:[%s5025_s0 + $0x10] sm:$0xff]   ;;  %s4486_s24 = smov 16  }
   0x3   :  { %v4013_v10 = vunpack.c.l.bf16 %v4169_v2  ;;  %v4014_v11 = vunpack.c.h.bf16 %v4169_v2  ;;  %v4017_v12 = vunpack.c.l.bf16 %v4170_v7  ;;  %v4018_v13 = vunpack.c.h.bf16 %v4170_v7  ;;  %v4185_v14 = vld [vmem:[%s5025_s0 + $0x8] sm:$0xff]   ;;  %v4080_v15 = vld [vmem:[%s5025_s0] sm:$0xff]   ;;  %v4163_v16 = vld [vmem:[%s5025_s0 + $0xb8] sm:$0xff]  }
   0x4   :  { %1429 = vst [vmem:[#allocation1 + $0x138] sm:$0xff] %v4006_v4  ;;  %1445 = vst [vmem:[#allocation1 + $0x130] sm:$0xff] %v4005_v3  ;;  %v4069_v17 = vunpack.c.l.bf16 %v4183_v8  ;;  %v4070_v18 = vunpack.c.h.bf16 %v4183_v8  ;;  %v4073_v19 = vunpack.c.l.bf16 %v4184_v9  ;;  %v4074_v20 = vunpack.c.h.bf16 %v4184_v9  ;;  %v4164_v21 = vld [vmem:[%s5025_s0 + $0xb0] sm:$0xff]   ;;  %v4165_v22 = vld [vmem:[%s5025_s0 + $0xa8] sm:$0xff]  }
   0x5   :  { %1461 = vst [vmem:[#allocation1 + $0x128] sm:$0xff] %v4010_v6  ;;  %1477 = vst [vmem:[#allocation1 + $0x120] sm:$0xff] %v4009_v5  ;;  %v4166_v23 = vld [vmem:[%s5025_s0 + $0xa0] sm:$0xff]   ;;  %v4077_v24 = vunpack.c.l.bf16 %v4185_v14  ;;  %v4078_v25 = vunpack.c.h.bf16 %v4185_v14  ;;  %v4081_v26 = vunpack.c.l.bf16 %v4080_v15  ;;  %v4082_v27 = vunpack.c.h.bf16 %v4080_v15  ;;  %v4179_v28 = vld [vmem:[%s5025_s0 + $0x38] sm:$0xff]  }
   0x6   :  { %1493 = vst [vmem:[#allocation1 + $0x118] sm:$0xff] %v4014_v11  ;;  %1509 = vst [vmem:[#allocation1 + $0x110] sm:$0xff] %v4013_v10  ;;  %v4180_v29 = vld [vmem:[%s5025_s0 + $0x30] sm:$0xff]   ;;  %v3989_v30 = vunpack.c.l.bf16 %v4163_v16  ;;  %v3990_v31 = vunpack.c.h.bf16 %v4163_v16  ;;  %v3993_v32 = vunpack.c.l.bf16 %v4164_v21  ;;  %v3994_v33 = vunpack.c.h.bf16 %v4164_v21  ;;  %v4181_v34 = vld [vmem:[%s5025_s0 + $0x28] sm:$0xff]  }
   0x7   :  { %1525 = vst [vmem:[#allocation1 + $0x108] sm:$0xff] %v4018_v13  ;;  %1541 = vst [vmem:[#allocation1 + $0x100] sm:$0xff] %v4017_v12  ;;  %v4182_v35 = vld [vmem:[%s5025_s0 + $0x20] sm:$0xff]   ;;  %v3997_v36 = vunpack.c.l.bf16 %v4165_v22  ;;  %v3998_v37 = vunpack.c.h.bf16 %v4165_v22  ;;  %v4001_v38 = vunpack.c.l.bf16 %v4166_v23  ;;  %v4002_v39 = vunpack.c.h.bf16 %v4166_v23  ;;  %v4135_v40 = vld [vmem:[%s5025_s0 + $0x198] sm:$0xff]  }
   0x8   :  { %1941 = vst [vmem:[#allocation1 + $0x38] sm:$0xff] %v4070_v18  ;;  %1957 = vst [vmem:[#allocation1 + $0x30] sm:$0xff] %v4069_v17  ;;  %v4136_v41 = vld [vmem:[%s5025_s0 + $0x190] sm:$0xff]   ;;  %v4053_v42 = vunpack.c.l.bf16 %v4179_v28  ;;  %v4054_v43 = vunpack.c.h.bf16 %v4179_v28  ;;  %v4057_v44 = vunpack.c.l.bf16 %v4180_v29  ;;  %v4058_v45 = vunpack.c.h.bf16 %v4180_v29  ;;  %v4137_v46 = vld [vmem:[%s5025_s0 + $0x188] sm:$0xff]  }
   0x9   :  { %1973 = vst [vmem:[#allocation1 + $0x28] sm:$0xff] %v4074_v20  ;;  %1989 = vst [vmem:[#allocation1 + $0x20] sm:$0xff] %v4073_v19  ;;  %v4138_v47 = vld [vmem:[%s5025_s0 + $0x180] sm:$0xff]   ;;  %v4061_v48 = vunpack.c.l.bf16 %v4181_v34  ;;  %v4062_v49 = vunpack.c.h.bf16 %v4181_v34  ;;  %v4065_v50 = vunpack.c.l.bf16 %v4182_v35  ;;  %v4066_v51 = vunpack.c.h.bf16 %v4182_v35  ;;  %v4151_v52 = vld [vmem:[%s5025_s0 + $0x118] sm:$0xff]  }
   0xa   :  { %2005 = vst [vmem:[#allocation1 + $0x18] sm:$0xff] %v4078_v25  ;;  %2021 = vst [vmem:[#allocation1 + $0x10] sm:$0xff] %v4077_v24  ;;  %v4152_v53 = vld [vmem:[%s5025_s0 + $0x110] sm:$0xff]   ;;  %v3877_v54 = vunpack.c.l.bf16 %v4135_v40  ;;  %v3878_v55 = vunpack.c.h.bf16 %v4135_v40  ;;  %v3881_v56 = vunpack.c.l.bf16 %v4136_v41  ;;  %v3882_v57 = vunpack.c.h.bf16 %v4136_v41  ;;  %v4153_v58 = vld [vmem:[%s5025_s0 + $0x108] sm:$0xff]  }
   0xb   :  { %2036 = vst [vmem:[#allocation1 + $0x8] sm:$0xff] %v4082_v27  ;;  %2049 = vst [vmem:[#allocation1] sm:$0xff] %v4081_v26  ;;  %v4154_v59 = vld [vmem:[%s5025_s0 + $0x100] sm:$0xff]   ;;  %v3885_v61 = vunpack.c.l.bf16 %v4137_v46  ;;  %v3886_v62 = vunpack.c.h.bf16 %v4137_v46  ;;  %v3889_v63 = vunpack.c.l.bf16 %v4138_v47  ;;  %v3890_v0 = vunpack.c.h.bf16 %v4138_v47  ;;  %v4131_v1 = vld [vmem:[%s5025_s0 + $0x1b8] sm:$0xff]  }
   0xc   :  { %1301 = vst [vmem:[#allocation1 + $0x178] sm:$0xff] %v3990_v31  ;;  %1317 = vst [vmem:[#allocation1 + $0x170] sm:$0xff] %v3989_v30  ;;  %v2204_v60 = vld [vmem:[#allocation1 + $0x107] ss:$8 sm:$0xf0]   ;;  %v3941_v4 = vunpack.c.l.bf16 %v4151_v52  ;;  %v3942_v5 = vunpack.c.h.bf16 %v4151_v52  ;;  %v3945_v6 = vunpack.c.l.bf16 %v4152_v53  ;;  %v3946_v7 = vunpack.c.h.bf16 %v4152_v53 }
   0xd   :  { %1333 = vst [vmem:[#allocation1 + $0x168] sm:$0xff] %v3994_v33  ;;  %1349 = vst [vmem:[#allocation1 + $0x160] sm:$0xff] %v3993_v32  ;;  %v4132_v2 = vld [vmem:[%s5025_s0 + $0x1b0] sm:$0xff]   ;;  %v4133_v8 = vld [vmem:[%s5025_s0 + $0x1a8] sm:$0xff]   ;;  %v3949_v11 = vunpack.c.l.bf16 %v4153_v58  ;;  %v3950_v12 = vunpack.c.h.bf16 %v4153_v58  ;;  %v3953_v13 = vunpack.c.l.bf16 %v4154_v59  ;;  %v3954_v17 = vunpack.c.h.bf16 %v4154_v59 }
   0xe   :  { %1365 = vst [vmem:[#allocation1 + $0x158] sm:$0xff] %v3998_v37  ;;  %1381 = vst [vmem:[#allocation1 + $0x150] sm:$0xff] %v3997_v36  ;;  %v2202_v3 = vld [vmem:[#allocation1 + $0x107] ss:$8 sm:$0xf]   ;;  %v3861_v18 = vunpack.c.l.bf16 %v4131_v1  ;;  %v3862_v19 = vunpack.c.h.bf16 %v4131_v1  ;;  %v3865_v20 = vunpack.c.l.bf16 %v4132_v2  ;;  %v3866_v24 = vunpack.c.h.bf16 %v4132_v2 }
   0xf   :  { %1397 = vst [vmem:[#allocation1 + $0x148] sm:$0xff] %v4002_v39  ;;  %1413 = vst [vmem:[#allocation1 + $0x140] sm:$0xff] %v4001_v38  ;;  %v2206_v10 = vsel %vm2052_vm0, %v2204_v60, %v2202_v3  ;;  %v4134_v14 = vld [vmem:[%s5025_s0 + $0x1a0] sm:$0xff]   ;;  %v4147_v15 = vld [vmem:[%s5025_s0 + $0x138] sm:$0xff]   ;;  %v3869_v25 = vunpack.c.l.bf16 %v4133_v8  ;;  %v3870_v26 = vunpack.c.h.bf16 %v4133_v8  ;;  %vm2724_vm5 = vcmask 654848  }
  0x10   :  { %1813 = vst [vmem:[#allocation1 + $0x78] sm:$0xff] %v4054_v43  ;;  %1829 = vst [vmem:[#allocation1 + $0x70] sm:$0xff] %v4053_v42  ;;  %v2194_v9 = vld [vmem:[#allocation1 + $0x7] ss:$8 sm:$0xf0]   ;;  %v3873_v31 = vunpack.c.l.bf16 %v4134_v14  ;;  %v3874_v32 = vunpack.c.h.bf16 %v4134_v14  ;;  %v3925_v33 = vunpack.c.l.bf16 %v4147_v15  ;;  %v3926_v38 = vunpack.c.h.bf16 %v4147_v15 }
  0x11   :  { %1845 = vst [vmem:[#allocation1 + $0x68] sm:$0xff] %v4058_v45  ;;  %1861 = vst [vmem:[#allocation1 + $0x60] sm:$0xff] %v4057_v44  ;;  %v4148_v21 = vld [vmem:[%s5025_s0 + $0x130] sm:$0xff]   ;;  %v4149_v27 = vld [vmem:[%s5025_s0 + $0x128] sm:$0xff]   ;;  %vm2899_vm6 = vcmask 523648   ;;  %vm3074_vm7 = vcmask 392448  }
  0x12   :  { %1877 = vst [vmem:[#allocation1 + $0x58] sm:$0xff] %v4062_v49  ;;  %1893 = vst [vmem:[#allocation1 + $0x50] sm:$0xff] %v4061_v48  ;;  %v2192_v16 = vld [vmem:[#allocation1 + $0x7] ss:$8 sm:$0xf]   ;;  %v3929_v39 = vunpack.c.l.bf16 %v4148_v21  ;;  %v3930_v40 = vunpack.c.h.bf16 %v4148_v21  ;;  %v3933_v43 = vunpack.c.l.bf16 %v4149_v27  ;;  %v3934_v44 = vunpack.c.h.bf16 %v4149_v27 }
  0x13   :  { %1909 = vst [vmem:[#allocation1 + $0x48] sm:$0xff] %v4066_v51  ;;  %1925 = vst [vmem:[#allocation1 + $0x40] sm:$0xff] %v4065_v50  ;;  %v2196_v22 = vsel %vm2052_vm0, %v2194_v9, %v2192_v16  ;;  %v4150_v28 = vld [vmem:[%s5025_s0 + $0x120] sm:$0xff]   ;;  %v4159_v34 = vld [vmem:[%s5025_s0 + $0xd8] sm:$0xff]   ;;  %vm3249_vm8 = vcmask 261248  }
  0x14   :  { %405 = vst [vmem:[#allocation1 + $0x338] sm:$0xff] %v3878_v55  ;;  %421 = vst [vmem:[#allocation1 + $0x330] sm:$0xff] %v3877_v54  ;;  %v2248_v23 = vld [vmem:[#allocation1 + $0x147] ss:$8 sm:$0xf0]   ;;  %v4200_v29 = vpack.i.bf16 %v2206_v10, %v2196_v22  ;;  %v3937_v45 = vunpack.c.l.bf16 %v4150_v28  ;;  %v3938_v46 = vunpack.c.h.bf16 %v4150_v28  ;;  %v3973_v51 = vunpack.c.l.bf16 %v4159_v34 }
  0x15   :  { %437 = vst [vmem:[#allocation1 + $0x328] sm:$0xff] %v3882_v57  ;;  %453 = vst [vmem:[#allocation1 + $0x320] sm:$0xff] %v3881_v56  ;;  %v4160_v35 = vld [vmem:[%s5025_s0 + $0xd0] sm:$0xff]   ;;  %v4161_v41 = vld [vmem:[%s5025_s0 + $0xc8] sm:$0xff]   ;;  %v3974_v52 = vunpack.c.h.bf16 %v4159_v34 }
  0x16   :  { %469 = vst [vmem:[#allocation1 + $0x318] sm:$0xff] %v3886_v62  ;;  %485 = vst [vmem:[#allocation1 + $0x310] sm:$0xff] %v3885_v61  ;;  %v2246_v30 = vld [vmem:[#allocation1 + $0x147] ss:$8 sm:$0xf]   ;;  %4201 = vrot.lane.b32.xlu0 %v4200_v29, %s4480_s18  ;;  %v3977_v53 = vunpack.c.l.bf16 %v4160_v35  ;;  %v3978_v58 = vunpack.c.h.bf16 %v4160_v35  ;;  %v3981_v59 = vunpack.c.l.bf16 %v4161_v41  ;;  %v3982_v60 = vunpack.c.h.bf16 %v4161_v41 }
  0x17   :  { %501 = vst [vmem:[#allocation1 + $0x308] sm:$0xff] %v3890_v0  ;;  %517 = vst [vmem:[#allocation1 + $0x300] sm:$0xff] %v3889_v63  ;;  %v2250_v37 = vsel %vm2052_vm0, %v2248_v23, %v2246_v30  ;;  %v4162_v47 = vld [vmem:[%s5025_s0 + $0xc0] sm:$0xff]   ;;  %v4175_v48 = vld [vmem:[%s5025_s0 + $0x58] sm:$0xff]  }
  0x18   :  { %917 = vst [vmem:[#allocation1 + $0x238] sm:$0xff] %v3942_v5  ;;  %933 = vst [vmem:[#allocation1 + $0x230] sm:$0xff] %v3941_v4  ;;  %v2237_v36 = vld [vmem:[#allocation1 + $0x47] ss:$8 sm:$0xf0]   ;;  %v3985_v1 = vunpack.c.l.bf16 %v4162_v47  ;;  %v3986_v2 = vunpack.c.h.bf16 %v4162_v47  ;;  %v4037_v3 = vunpack.c.l.bf16 %v4175_v48  ;;  %v4038_v5 = vunpack.c.h.bf16 %v4175_v48 }
  0x19   :  { %949 = vst [vmem:[#allocation1 + $0x228] sm:$0xff] %v3946_v7  ;;  %965 = vst [vmem:[#allocation1 + $0x220] sm:$0xff] %v3945_v6  ;;  %v4176_v54 = vld [vmem:[%s5025_s0 + $0x50] sm:$0xff]   ;;  %v4177_v55 = vld [vmem:[%s5025_s0 + $0x48] sm:$0xff]  }
  0x1a   :  { %981 = vst [vmem:[#allocation1 + $0x218] sm:$0xff] %v3950_v12  ;;  %997 = vst [vmem:[#allocation1 + $0x210] sm:$0xff] %v3949_v11  ;;  %v2235_v42 = vld [vmem:[#allocation1 + $0x47] ss:$8 sm:$0xf]   ;;  %v4041_v6 = vunpack.c.l.bf16 %v4176_v54  ;;  %v4042_v7 = vunpack.c.h.bf16 %v4176_v54  ;;  %v4045_v8 = vunpack.c.l.bf16 %v4177_v55  ;;  %v4046_v12 = vunpack.c.h.bf16 %v4177_v55 }
  0x1b   :  { %1029 = vst [vmem:[#allocation1 + $0x200] sm:$0xff] %v3953_v13  ;;  %1013 = vst [vmem:[#allocation1 + $0x208] sm:$0xff] %v3954_v17  ;;  %v2239_v49 = vsel %vm2052_vm0, %v2237_v36, %v2235_v42  ;;  %v4178_v61 = vld [vmem:[%s5025_s0 + $0x40] sm:$0xff]   ;;  %v4127_v62 = vld [vmem:[%s5025_s0 + $0x1d8] sm:$0xff]  }
  0x1c   :  { %277 = vst [vmem:[#allocation1 + $0x378] sm:$0xff] %v3862_v19  ;;  %293 = vst [vmem:[#allocation1 + $0x370] sm:$0xff] %v3861_v18  ;;  %v2226_v50 = vld [vmem:[#allocation1 + $0x307] ss:$8 sm:$0xf0]   ;;  %v4210_v56 = vpack.i.bf16 %v2250_v37, %v2239_v49  ;;  %v4049_v13 = vunpack.c.l.bf16 %v4178_v61  ;;  %v4050_v14 = vunpack.c.h.bf16 %v4178_v61  ;;  %v3845_v15 = vunpack.c.l.bf16 %v4127_v62 }
  0x1d   :  { %325 = vst [vmem:[#allocation1 + $0x360] sm:$0xff] %v3865_v20  ;;  %309 = vst [vmem:[#allocation1 + $0x368] sm:$0xff] %v3866_v24  ;;  %v4128_v4 = vld [vmem:[%s5025_s0 + $0x1d0] sm:$0xff]   ;;  %v4129_v9 = vld [vmem:[%s5025_s0 + $0x1c8] sm:$0xff]   ;;  %v3846_v19 = vunpack.c.h.bf16 %v4127_v62 }
  0x1e   :  { %341 = vst [vmem:[#allocation1 + $0x358] sm:$0xff] %v3870_v26  ;;  %357 = vst [vmem:[#allocation1 + $0x350] sm:$0xff] %v3869_v25  ;;  %v2224_v57 = vld [vmem:[#allocation1 + $0x307] ss:$8 sm:$0xf]   ;;  %4211 = vrot.lane.b32.xlu1 %v4210_v56, %s4480_s18  ;;  %v3849_v20 = vunpack.c.l.bf16 %v4128_v4  ;;  %v3850_v21 = vunpack.c.h.bf16 %v4128_v4  ;;  %v3853_v26 = vunpack.c.l.bf16 %v4129_v9  ;;  %v3854_v27 = vunpack.c.h.bf16 %v4129_v9 }
  0x1f   :  { %373 = vst [vmem:[#allocation1 + $0x348] sm:$0xff] %v3874_v32  ;;  %389 = vst [vmem:[#allocation1 + $0x340] sm:$0xff] %v3873_v31  ;;  %v2228_v0 = vsel %vm2052_vm0, %v2226_v50, %v2224_v57  ;;  %v4130_v10 = vld [vmem:[%s5025_s0 + $0x1c0] sm:$0xff]   ;;  %v4143_v16 = vld [vmem:[%s5025_s0 + $0x158] sm:$0xff]  }
  0x20   :  { %805 = vst [vmem:[#allocation1 + $0x270] sm:$0xff] %v3925_v33  ;;  %789 = vst [vmem:[#allocation1 + $0x278] sm:$0xff] %v3926_v38  ;;  %v2215_v63 = vld [vmem:[#allocation1 + $0x207] ss:$8 sm:$0xf0]   ;;  %v3857_v28 = vunpack.c.l.bf16 %v4130_v10  ;;  %v3858_v33 = vunpack.c.h.bf16 %v4130_v10  ;;  %v3909_v34 = vunpack.c.l.bf16 %v4143_v16  ;;  %v3910_v35 = vunpack.c.h.bf16 %v4143_v16 }
  0x21   :  { %821 = vst [vmem:[#allocation1 + $0x268] sm:$0xff] %v3930_v40  ;;  %837 = vst [vmem:[#allocation1 + $0x260] sm:$0xff] %v3929_v39  ;;  %v4144_v22 = vld [vmem:[%s5025_s0 + $0x150] sm:$0xff]   ;;  %v4145_v23 = vld [vmem:[%s5025_s0 + $0x148] sm:$0xff]  }
  0x22   :  { %853 = vst [vmem:[#allocation1 + $0x258] sm:$0xff] %v3934_v44  ;;  %869 = vst [vmem:[#allocation1 + $0x250] sm:$0xff] %v3933_v43  ;;  %v2213_v11 = vld [vmem:[#allocation1 + $0x207] ss:$8 sm:$0xf]   ;;  %v3913_v38 = vunpack.c.l.bf16 %v4144_v22  ;;  %v3914_v39 = vunpack.c.h.bf16 %v4144_v22  ;;  %v3917_v40 = vunpack.c.l.bf16 %v4145_v23  ;;  %v3918_v41 = vunpack.c.h.bf16 %v4145_v23 }
  0x23   :  { %885 = vst [vmem:[#allocation1 + $0x248] sm:$0xff] %v3938_v46  ;;  %901 = vst [vmem:[#allocation1 + $0x240] sm:$0xff] %v3937_v45  ;;  %v2217_v17 = vsel %vm2052_vm0, %v2215_v63, %v2213_v11  ;;  %v4146_v29 = vld [vmem:[%s5025_s0 + $0x140] sm:$0xff]   ;;  %v4155_v30 = vld [vmem:[%s5025_s0 + $0xf8] sm:$0xff]  }
  0x24   :  { %1173 = vst [vmem:[#allocation1 + $0x1b8] sm:$0xff] %v3974_v52  ;;  %1189 = vst [vmem:[#allocation1 + $0x1b0] sm:$0xff] %v3973_v51  ;;  %v2270_v18 = vld [vmem:[#allocation1 + $0x347] ss:$8 sm:$0xf0]   ;;  %v4205_v24 = vpack.i.bf16 %v2228_v0, %v2217_v17  ;;  %v3921_v45 = vunpack.c.l.bf16 %v4146_v29  ;;  %v3922_v46 = vunpack.c.h.bf16 %v4146_v29  ;;  %v3957_v47 = vunpack.c.l.bf16 %v4155_v30 }
  0x25   :  { %1221 = vst [vmem:[#allocation1 + $0x1a0] sm:$0xff] %v3977_v53  ;;  %1205 = vst [vmem:[#allocation1 + $0x1a8] sm:$0xff] %v3978_v58  ;;  %v4156_v36 = vld [vmem:[%s5025_s0 + $0xf0] sm:$0xff]   ;;  %v4157_v42 = vld [vmem:[%s5025_s0 + $0xe8] sm:$0xff]   ;;  %v3958_v52 = vunpack.c.h.bf16 %v4155_v30 }
  0x26   :  { %1237 = vst [vmem:[#allocation1 + $0x198] sm:$0xff] %v3982_v60  ;;  %1253 = vst [vmem:[#allocation1 + $0x190] sm:$0xff] %v3981_v59  ;;  %v2268_v25 = vld [vmem:[#allocation1 + $0x347] ss:$8 sm:$0xf]   ;;  %4206 = vrot.lane.b32.xlu0 %v4205_v24, %s4480_s18  ;;  %v3961_v53 = vunpack.c.l.bf16 %v4156_v36  ;;  %v3962_v54 = vunpack.c.h.bf16 %v4156_v36  ;;  %v3965_v58 = vunpack.c.l.bf16 %v4157_v42  ;;  %v3966_v59 = vunpack.c.h.bf16 %v4157_v42 }
  0x27   :  { %1269 = vst [vmem:[#allocation1 + $0x188] sm:$0xff] %v3986_v2  ;;  %1285 = vst [vmem:[#allocation1 + $0x180] sm:$0xff] %v3985_v1  ;;  %v2272_v32 = vsel %vm2052_vm0, %v2270_v18, %v2268_v25  ;;  %v4158_v43 = vld [vmem:[%s5025_s0 + $0xe0] sm:$0xff]   ;;  %v4171_v48 = vld [vmem:[%s5025_s0 + $0x78] sm:$0xff]  }
  0x28   :  { %1701 = vst [vmem:[#allocation1 + $0xb0] sm:$0xff] %v4037_v3  ;;  %1685 = vst [vmem:[#allocation1 + $0xb8] sm:$0xff] %v4038_v5  ;;  %v2259_v31 = vld [vmem:[#allocation1 + $0x247] ss:$8 sm:$0xf0]   ;;  %v3969_v60 = vunpack.c.l.bf16 %v4158_v43  ;;  %v3970_v61 = vunpack.c.h.bf16 %v4158_v43  ;;  %v4021_v1 = vunpack.c.l.bf16 %v4171_v48  ;;  %v4022_v2 = vunpack.c.h.bf16 %v4171_v48 }
  0x29   :  { %1717 = vst [vmem:[#allocation1 + $0xa8] sm:$0xff] %v4042_v7  ;;  %1733 = vst [vmem:[#allocation1 + $0xa0] sm:$0xff] %v4041_v6  ;;  %v4172_v49 = vld [vmem:[%s5025_s0 + $0x70] sm:$0xff]   ;;  %v4173_v55 = vld [vmem:[%s5025_s0 + $0x68] sm:$0xff]  }
  0x2a   :  { %1765 = vst [vmem:[#allocation1 + $0x90] sm:$0xff] %v4045_v8  ;;  %1749 = vst [vmem:[#allocation1 + $0x98] sm:$0xff] %v4046_v12  ;;  %v2257_v37 = vld [vmem:[#allocation1 + $0x247] ss:$8 sm:$0xf]   ;;  %v4025_v3 = vunpack.c.l.bf16 %v4172_v49  ;;  %v4026_v7 = vunpack.c.h.bf16 %v4172_v49  ;;  %v4029_v8 = vunpack.c.l.bf16 %v4173_v55  ;;  %v4030_v9 = vunpack.c.h.bf16 %v4173_v55 }
  0x2b   :  { %1781 = vst [vmem:[#allocation1 + $0x88] sm:$0xff] %v4050_v14  ;;  %1797 = vst [vmem:[#allocation1 + $0x80] sm:$0xff] %v4049_v13  ;;  %v2261_v44 = vsel %vm2052_vm0, %v2259_v31, %v2257_v37  ;;  %v4174_v56 = vld [vmem:[%s5025_s0 + $0x60] sm:$0xff]   ;;  %v4123_v62 = vld [vmem:[%s5025_s0 + $0x1f8] sm:$0xff]  }
  0x2c   :  { %165 = vst [vmem:[#allocation1 + $0x3b0] sm:$0xff] %v3845_v15  ;;  %149 = vst [vmem:[#allocation1 + $0x3b8] sm:$0xff] %v3846_v19  ;;  %v4215_v50 = vpack.i.bf16 %v2272_v32, %v2261_v44  ;;  %v2292_v51 = vld [vmem:[#allocation1 + $0x187] ss:$8 sm:$0xf0]   ;;  %v4033_v10 = vunpack.c.l.bf16 %v4174_v56  ;;  %v4034_v15 = vunpack.c.h.bf16 %v4174_v56  ;;  %v3829_v16 = vunpack.c.l.bf16 %v4123_v62 }
  0x2d   :  { %181 = vst [vmem:[#allocation1 + $0x3a8] sm:$0xff] %v3850_v21  ;;  %197 = vst [vmem:[#allocation1 + $0x3a0] sm:$0xff] %v3849_v20  ;;  %v4124_v4 = vld [vmem:[%s5025_s0 + $0x1f0] sm:$0xff]   ;;  %v4125_v5 = vld [vmem:[%s5025_s0 + $0x1e8] sm:$0xff]   ;;  %v3830_v17 = vunpack.c.h.bf16 %v4123_v62 }
  0x2e   :  { %213 = vst [vmem:[#allocation1 + $0x398] sm:$0xff] %v3854_v27  ;;  %229 = vst [vmem:[#allocation1 + $0x390] sm:$0xff] %v3853_v26  ;;  %v2290_v57 = vld [vmem:[#allocation1 + $0x187] ss:$8 sm:$0xf]   ;;  %4216 = vrot.lane.b32.xlu1 %v4215_v50, %s4480_s18  ;;  %v3833_v20 = vunpack.c.l.bf16 %v4124_v4  ;;  %v3834_v21 = vunpack.c.h.bf16 %v4124_v4  ;;  %v3837_v22 = vunpack.c.l.bf16 %v4125_v5  ;;  %v3838_v26 = vunpack.c.h.bf16 %v4125_v5 }
  0x2f   :  { %261 = vst [vmem:[#allocation1 + $0x380] sm:$0xff] %v3857_v28  ;;  %245 = vst [vmem:[#allocation1 + $0x388] sm:$0xff] %v3858_v33  ;;  %v2294_v0 = vsel %vm2052_vm0, %v2292_v51, %v2290_v57  ;;  %v4126_v11 = vld [vmem:[%s5025_s0 + $0x1e0] sm:$0xff]   ;;  %v4139_v12 = vld [vmem:[%s5025_s0 + $0x178] sm:$0xff]  }
  0x30   :  { %661 = vst [vmem:[#allocation1 + $0x2b8] sm:$0xff] %v3910_v35  ;;  %677 = vst [vmem:[#allocation1 + $0x2b0] sm:$0xff] %v3909_v34  ;;  %v2281_v63 = vld [vmem:[#allocation1 + $0x87] ss:$8 sm:$0xf0]   ;;  %v3841_v27 = vunpack.c.l.bf16 %v4126_v11  ;;  %v3842_v28 = vunpack.c.h.bf16 %v4126_v11  ;;  %v3893_v29 = vunpack.c.l.bf16 %v4139_v12  ;;  %v3894_v32 = vunpack.c.h.bf16 %v4139_v12 }
  0x31   :  { %693 = vst [vmem:[#allocation1 + $0x2a8] sm:$0xff] %v3914_v39  ;;  %709 = vst [vmem:[#allocation1 + $0x2a0] sm:$0xff] %v3913_v38  ;;  %v4140_v18 = vld [vmem:[%s5025_s0 + $0x170] sm:$0xff]   ;;  %v4141_v23 = vld [vmem:[%s5025_s0 + $0x168] sm:$0xff]  }
  0x32   :  { %725 = vst [vmem:[#allocation1 + $0x298] sm:$0xff] %v3918_v41  ;;  %741 = vst [vmem:[#allocation1 + $0x290] sm:$0xff] %v3917_v40  ;;  %v2279_v6 = vld [vmem:[#allocation1 + $0x87] ss:$8 sm:$0xf]   ;;  %v3897_v33 = vunpack.c.l.bf16 %v4140_v18  ;;  %v3898_v34 = vunpack.c.h.bf16 %v4140_v18  ;;  %v3901_v36 = vunpack.c.l.bf16 %v4141_v23  ;;  %v3902_v37 = vunpack.c.h.bf16 %v4141_v23 }
  0x33   :  { %757 = vst [vmem:[#allocation1 + $0x288] sm:$0xff] %v3922_v46  ;;  %773 = vst [vmem:[#allocation1 + $0x280] sm:$0xff] %v3921_v45  ;;  %v2283_v13 = vsel %vm2052_vm0, %v2281_v63, %v2279_v6  ;;  %v4142_v24 = vld [vmem:[%s5025_s0 + $0x160] sm:$0xff]   ;;  %s4481_s0 = smov 96  }
  0x34   :  { %1061 = vst [vmem:[#allocation1 + $0x1f0] sm:$0xff] %v3957_v47  ;;  %1045 = vst [vmem:[#allocation1 + $0x1f8] sm:$0xff] %v3958_v52  ;;  %v2314_v14 = vld [vmem:[#allocation1 + $0x387] ss:$8 sm:$0xf0]   ;;  %v4220_v19 = vpack.i.bf16 %v2294_v0, %v2283_v13  ;;  %v3905_v38 = vunpack.c.l.bf16 %v4142_v24  ;;  %v3906_v39 = vunpack.c.h.bf16 %v4142_v24 }
  0x35   :  { %1077 = vst [vmem:[#allocation1 + $0x1e8] sm:$0xff] %v3962_v54  ;;  %1093 = vst [vmem:[#allocation1 + $0x1e0] sm:$0xff] %v3961_v53  ;;  %v2367_v42 = vld [vmem:[#allocation1 + $0x6] ss:$8 sm:$0xf]  }
  0x36   :  { %1109 = vst [vmem:[#allocation1 + $0x1d8] sm:$0xff] %v3966_v59  ;;  %1125 = vst [vmem:[#allocation1 + $0x1d0] sm:$0xff] %v3965_v58  ;;  %v2312_v25 = vld [vmem:[#allocation1 + $0x387] ss:$8 sm:$0xf]   ;;  %4221 = vrot.lane.b32.xlu0 %v4220_v19, %s4480_s18 }
  0x37   :  { %1141 = vst [vmem:[#allocation1 + $0x1c8] sm:$0xff] %v3970_v61  ;;  %1157 = vst [vmem:[#allocation1 + $0x1c0] sm:$0xff] %v3969_v60  ;;  %v2316_v31 = vsel %vm2052_vm0, %v2314_v14, %v2312_v25  ;;  %v2369_v45 = vld [vmem:[#allocation1 + $0x6] ss:$8 sm:$0xf0]  }
  0x38   :  { %1557 = vst [vmem:[#allocation1 + $0xf8] sm:$0xff] %v4022_v2  ;;  %1573 = vst [vmem:[#allocation1 + $0xf0] sm:$0xff] %v4021_v1  ;;  %v2303_v30 = vld [vmem:[#allocation1 + $0x287] ss:$8 sm:$0xf0]   ;;  %v2371_v59 = vsel %vm2052_vm0, %v2369_v45, %v2367_v42 }
  0x39   :  { %1605 = vst [vmem:[#allocation1 + $0xe0] sm:$0xff] %v4025_v3  ;;  %1589 = vst [vmem:[#allocation1 + $0xe8] sm:$0xff] %v4026_v7  ;;  %v2377_v46 = vld [vmem:[#allocation1 + $0x106] ss:$8 sm:$0xf]  }
  0x3a   :  { %1621 = vst [vmem:[#allocation1 + $0xd8] sm:$0xff] %v4030_v9  ;;  %1637 = vst [vmem:[#allocation1 + $0xd0] sm:$0xff] %v4029_v8  ;;  %v2301_v35 = vld [vmem:[#allocation1 + $0x287] ss:$8 sm:$0xf]  }
  0x3b   :  { %1669 = vst [vmem:[#allocation1 + $0xc0] sm:$0xff] %v4033_v10  ;;  %1653 = vst [vmem:[#allocation1 + $0xc8] sm:$0xff] %v4034_v15  ;;  %v2305_v40 = vsel %vm2052_vm0, %v2303_v30, %v2301_v35  ;;  %v2379_v47 = vld [vmem:[#allocation1 + $0x106] ss:$8 sm:$0xf0]  }
  0x3c   :  { %21 = vst [vmem:[#allocation1 + $0x3f8] sm:$0xff] %v3830_v17  ;;  %37 = vst [vmem:[#allocation1 + $0x3f0] sm:$0xff] %v3829_v16  ;;  %v2336_v41 = vld [vmem:[#allocation1 + $0x1c7] ss:$8 sm:$0xf0]   ;;  %v4225_v43 = vpack.i.bf16 %v2316_v31, %v2305_v40  ;;  %v2381_v60 = vsel %vm2052_vm0, %v2379_v47, %v2377_v46 }
  0x3d   :  { %53 = vst [vmem:[#allocation1 + $0x3e8] sm:$0xff] %v3834_v21  ;;  %69 = vst [vmem:[#allocation1 + $0x3e0] sm:$0xff] %v3833_v20  ;;  %v2388_v50 = vld [vmem:[#allocation1 + $0x206] ss:$8 sm:$0xf]   ;;  %v4240_v7 = vpack.i.bf16 %v2381_v60, %v2371_v59 }
  0x3e   :  { %101 = vst [vmem:[#allocation1 + $0x3d0] sm:$0xff] %v3837_v22  ;;  %85 = vst [vmem:[#allocation1 + $0x3d8] sm:$0xff] %v3838_v26  ;;  %v2334_v44 = vld [vmem:[#allocation1 + $0x1c7] ss:$8 sm:$0xf]   ;;  %4226 = vrot.lane.b32.xlu1 %v4225_v43, %s4480_s18 }
  0x3f   :  { %117 = vst [vmem:[#allocation1 + $0x3c8] sm:$0xff] %v3842_v28  ;;  %133 = vst [vmem:[#allocation1 + $0x3c0] sm:$0xff] %v3841_v27  ;;  %v2338_v49 = vsel %vm2052_vm0, %v2336_v41, %v2334_v44  ;;  %v2390_v51 = vld [vmem:[#allocation1 + $0x206] ss:$8 sm:$0xf0]  }
  0x40   :  { %549 = vst [vmem:[#allocation1 + $0x2f0] sm:$0xff] %v3893_v29  ;;  %533 = vst [vmem:[#allocation1 + $0x2f8] sm:$0xff] %v3894_v32  ;;  %v2325_v48 = vld [vmem:[#allocation1 + $0xc7] ss:$8 sm:$0xf0]   ;;  %v2392_v8 = vsel %vm2052_vm0, %v2390_v51, %v2388_v50 }
  0x41   :  { %565 = vst [vmem:[#allocation1 + $0x2e8] sm:$0xff] %v3898_v34  ;;  %581 = vst [vmem:[#allocation1 + $0x2e0] sm:$0xff] %v3897_v33  ;;  %v2399_v52 = vld [vmem:[#allocation1 + $0x306] ss:$8 sm:$0xf]  }
  0x42   :  { %597 = vst [vmem:[#allocation1 + $0x2d8] sm:$0xff] %v3902_v37  ;;  %613 = vst [vmem:[#allocation1 + $0x2d0] sm:$0xff] %v3901_v36  ;;  %v2401_v53 = vld [vmem:[#allocation1 + $0x306] ss:$8 sm:$0xf0]  }
  0x43   :  { %629 = vst [vmem:[#allocation1 + $0x2c8] sm:$0xff] %v3906_v39  ;;  %645 = vst [vmem:[#allocation1 + $0x2c0] sm:$0xff] %v3905_v38  ;;  %v2323_v54 = vld [vmem:[#allocation1 + $0xc7] ss:$8 sm:$0xf]   ;;  %v2403_v9 = vsel %vm2052_vm0, %v2401_v53, %v2399_v52 }
  0x44   :  { %v2410_v55 = vld [vmem:[#allocation1 + $0x46] ss:$8 sm:$0xf]   ;;  %v2327_v57 = vsel %vm2052_vm0, %v2325_v48, %v2323_v54  ;;  %v2358_v58 = vld [vmem:[#allocation1 + $0x3c7] ss:$8 sm:$0xf0]   ;;  %v4245_v19 = vpack.i.bf16 %v2403_v9, %v2392_v8 }
  0x45   :  { %v2412_v56 = vld [vmem:[#allocation1 + $0x46] ss:$8 sm:$0xf0]   ;;  %v4230_v62 = vpack.i.bf16 %v2338_v49, %v2327_v57  ;;  %v2542_v43 = vld [vmem:[#allocation1 + $0x5] ss:$8 sm:$0xf]  }
  0x46   :  { %v2421_v61 = vld [vmem:[#allocation1 + $0x146] ss:$8 sm:$0xf]   ;;  %v2356_v63 = vld [vmem:[#allocation1 + $0x3c7] ss:$8 sm:$0xf]   ;;  %v2414_v12 = vsel %vm2052_vm0, %v2412_v56, %v2410_v55 }
  0x47   :  { %v2423_v0 = vld [vmem:[#allocation1 + $0x146] ss:$8 sm:$0xf0]   ;;  %v2360_v2 = vsel %vm2052_vm0, %v2358_v58, %v2356_v63  ;;  %4231 = vrot.lane.b32.xlu0 %v4230_v62, %s4480_s18  ;;  %v2544_v44 = vld [vmem:[#allocation1 + $0x5] ss:$8 sm:$0xf0]  }
  0x48   :  { %v2347_v1 = vld [vmem:[#allocation1 + $0x2c7] ss:$8 sm:$0xf0]   ;;  %v2432_v3 = vld [vmem:[#allocation1 + $0x246] ss:$8 sm:$0xf]   ;;  %v2425_v13 = vsel %vm2052_vm0, %v2423_v0, %v2421_v61  ;;  %v2546_v55 = vsel %vm2052_vm0, %v2544_v44, %v2542_v43 }
  0x49   :  { %v2434_v4 = vld [vmem:[#allocation1 + $0x246] ss:$8 sm:$0xf0]   ;;  %v4250_v22 = vpack.i.bf16 %v2425_v13, %v2414_v12  ;;  %v2552_v45 = vld [vmem:[#allocation1 + $0x105] ss:$8 sm:$0xf]  }
  0x4a   :  { %v2443_v5 = vld [vmem:[#allocation1 + $0x346] ss:$8 sm:$0xf]   ;;  %v2345_v6 = vld [vmem:[#allocation1 + $0x2c7] ss:$8 sm:$0xf]   ;;  %v2436_v23 = vsel %vm2052_vm0, %v2434_v4, %v2432_v3 }
  0x4b   :  { %v2445_v10 = vld [vmem:[#allocation1 + $0x346] ss:$8 sm:$0xf0]   ;;  %v2349_v11 = vsel %vm2052_vm0, %v2347_v1, %v2345_v6  ;;  %4241 = vrot.lane.b32.xlu0 %v4240_v7, %s4481_s0  ;;  %v2554_v46 = vld [vmem:[#allocation1 + $0x105] ss:$8 sm:$0xf0]  }
  0x4c   :  { %v2454_v14 = vld [vmem:[#allocation1 + $0x86] ss:$8 sm:$0xf]   ;;  %v4235_v16 = vpack.i.bf16 %v2360_v2, %v2349_v11  ;;  %v2447_v24 = vsel %vm2052_vm0, %v2445_v10, %v2443_v5  ;;  %v2563_v48 = vld [vmem:[#allocation1 + $0x205] ss:$8 sm:$0xf]   ;;  %v2556_v56 = vsel %vm2052_vm0, %v2554_v46, %v2552_v45 }
  0x4d   :  { %v2456_v15 = vld [vmem:[#allocation1 + $0x86] ss:$8 sm:$0xf0]   ;;  %v4255_v33 = vpack.i.bf16 %v2447_v24, %v2436_v23  ;;  %v2565_v49 = vld [vmem:[#allocation1 + $0x205] ss:$8 sm:$0xf0]   ;;  %v4280_v0 = vpack.i.bf16 %v2556_v56, %v2546_v55 }
  0x4e   :  { %v2465_v17 = vld [vmem:[#allocation1 + $0x186] ss:$8 sm:$0xf]   ;;  %4236 = vrot.lane.b32.xlu1 %v4235_v16, %s4480_s18  ;;  %v2458_v27 = vsel %vm2052_vm0, %v2456_v15, %v2454_v14  ;;  %v2574_v53 = vld [vmem:[#allocation1 + $0x305] ss:$8 sm:$0xf]   ;;  %v2567_v1 = vsel %vm2052_vm0, %v2565_v49, %v2563_v48 }
  0x4f   :  { %v2467_v18 = vld [vmem:[#allocation1 + $0x186] ss:$8 sm:$0xf0]   ;;  %4251 = vrot.lane.b32.xlu0 %v4250_v22, %s4481_s0  ;;  %v2576_v54 = vld [vmem:[#allocation1 + $0x305] ss:$8 sm:$0xf0]  }
  0x50   :  { %v2476_v20 = vld [vmem:[#allocation1 + $0x286] ss:$8 sm:$0xf]   ;;  %v2469_v28 = vsel %vm2052_vm0, %v2467_v18, %v2465_v17  ;;  %v2585_v57 = vld [vmem:[#allocation1 + $0x45] ss:$8 sm:$0xf]   ;;  %v2578_v2 = vsel %vm2052_vm0, %v2576_v54, %v2574_v53 }
  0x51   :  { %v2478_v21 = vld [vmem:[#allocation1 + $0x286] ss:$8 sm:$0xf0]   ;;  %v4260_v36 = vpack.i.bf16 %v2469_v28, %v2458_v27  ;;  %v2587_v58 = vld [vmem:[#allocation1 + $0x45] ss:$8 sm:$0xf0]   ;;  %v4285_v11 = vpack.i.bf16 %v2578_v2, %v2567_v1 }
  0x52   :  { %v2487_v25 = vld [vmem:[#allocation1 + $0x386] ss:$8 sm:$0xf]   ;;  %4246 = vrot.lane.b32.xlu1 %v4245_v19, %s4481_s0  ;;  %v2480_v37 = vsel %vm2052_vm0, %v2478_v21, %v2476_v20  ;;  %v2596_v59 = vld [vmem:[#allocation1 + $0x145] ss:$8 sm:$0xf]   ;;  %v2589_v5 = vsel %vm2052_vm0, %v2587_v58, %v2585_v57 }
  0x53   :  { %v2489_v26 = vld [vmem:[#allocation1 + $0x386] ss:$8 sm:$0xf0]   ;;  %4261 = vrot.lane.b32.xlu0 %v4260_v36, %s4481_s0  ;;  %v2598_v60 = vld [vmem:[#allocation1 + $0x145] ss:$8 sm:$0xf0]  }
  0x54   :  { %v2498_v29 = vld [vmem:[#allocation1 + $0xc6] ss:$8 sm:$0xf]   ;;  %v2491_v38 = vsel %vm2052_vm0, %v2489_v26, %v2487_v25  ;;  %v2607_v62 = vld [vmem:[#allocation1 + $0x245] ss:$8 sm:$0xf]   ;;  %v2600_v6 = vsel %vm2052_vm0, %v2598_v60, %v2596_v59 }
  0x55   :  { %v2500_v30 = vld [vmem:[#allocation1 + $0xc6] ss:$8 sm:$0xf0]   ;;  %v4265_v47 = vpack.i.bf16 %v2491_v38, %v2480_v37  ;;  %v2609_v63 = vld [vmem:[#allocation1 + $0x245] ss:$8 sm:$0xf0]   ;;  %v4290_v14 = vpack.i.bf16 %v2600_v6, %v2589_v5 }
  0x56   :  { %v2509_v31 = vld [vmem:[#allocation1 + $0x1c6] ss:$8 sm:$0xf]   ;;  %v2502_v41 = vsel %vm2052_vm0, %v2500_v30, %v2498_v29  ;;  %4256 = vrot.lane.b32.xlu1 %v4255_v33, %s4481_s0  ;;  %v2618_v3 = vld [vmem:[#allocation1 + $0x345] ss:$8 sm:$0xf]   ;;  %v2611_v15 = vsel %vm2052_vm0, %v2609_v63, %v2607_v62 }
  0x57   :  { %v2511_v32 = vld [vmem:[#allocation1 + $0x1c6] ss:$8 sm:$0xf0]   ;;  %v2620_v4 = vld [vmem:[#allocation1 + $0x345] ss:$8 sm:$0xf0]  }
  0x58   :  { %v2520_v34 = vld [vmem:[#allocation1 + $0x2c6] ss:$8 sm:$0xf]   ;;  %v2513_v42 = vsel %vm2052_vm0, %v2511_v32, %v2509_v31  ;;  %v2629_v7 = vld [vmem:[#allocation1 + $0x85] ss:$8 sm:$0xf]   ;;  %v2622_v16 = vsel %vm2052_vm0, %v2620_v4, %v2618_v3 }
  0x59   :  { %v2522_v35 = vld [vmem:[#allocation1 + $0x2c6] ss:$8 sm:$0xf0]   ;;  %v4270_v50 = vpack.i.bf16 %v2513_v42, %v2502_v41  ;;  %v2631_v8 = vld [vmem:[#allocation1 + $0x85] ss:$8 sm:$0xf0]   ;;  %v4295_v25 = vpack.i.bf16 %v2622_v16, %v2611_v15 }
  0x5a   :  { %v2531_v39 = vld [vmem:[#allocation1 + $0x3c6] ss:$8 sm:$0xf]   ;;  %v2524_v51 = vsel %vm2052_vm0, %v2522_v35, %v2520_v34  ;;  %4266 = vrot.lane.b32.xlu1 %v4265_v47, %s4481_s0  ;;  %v2640_v9 = vld [vmem:[#allocation1 + $0x185] ss:$8 sm:$0xf]   ;;  %v2633_v19 = vsel %vm2052_vm0, %v2631_v8, %v2629_v7 }
  0x5b   :  { %v2533_v40 = vld [vmem:[#allocation1 + $0x3c6] ss:$8 sm:$0xf0]   ;;  %4271 = vrot.lane.b32.xlu0 %v4270_v50, %s4481_s0  ;;  %v2642_v10 = vld [vmem:[#allocation1 + $0x185] ss:$8 sm:$0xf0]  }
  0x5c   :  { %v2535_v52 = vsel %vm2052_vm0, %v2533_v40, %v2531_v39  ;;  %v2651_v12 = vld [vmem:[#allocation1 + $0x285] ss:$8 sm:$0xf]   ;;  %s4482_s18 = smov 80   ;;  %v2644_v20 = vsel %vm2052_vm0, %v2642_v10, %v2640_v9 }
  0x5d   :  { %v4275_v61 = vpack.i.bf16 %v2535_v52, %v2524_v51  ;;  %v2653_v13 = vld [vmem:[#allocation1 + $0x285] ss:$8 sm:$0xf0]   ;;  %v4300_v28 = vpack.i.bf16 %v2644_v20, %v2633_v19  ;;  %v2717_v35 = vld [vmem:[#allocation1 + $0x4] ss:$8 sm:$0xf]  }
  0x5e   :  { %v2662_v17 = vld [vmem:[#allocation1 + $0x385] ss:$8 sm:$0xf]   ;;  %v2655_v29 = vsel %vm2052_vm0, %v2653_v13, %v2651_v12  ;;  %v2719_v36 = vld [vmem:[#allocation1 + $0x4] ss:$8 sm:$0xf0]  }
  0x5f   :  { %4276 = vrot.lane.b32.xlu1 %v4275_v61, %s4481_s0  ;;  %4281 = vrot.lane.b32.xlu0 %v4280_v0, %s4482_s18  ;;  %v2664_v18 = vld [vmem:[#allocation1 + $0x385] ss:$8 sm:$0xf0]   ;;  %v2727_v37 = vld [vmem:[#allocation1 + $0x104] ss:$8 sm:$0xf]   ;;  %v2721_v47 = vsel %vm2052_vm0, %v2719_v36, %v2717_v35 }
  0x60   :  { %v2673_v21 = vld [vmem:[#allocation1 + $0xc5] ss:$8 sm:$0xf]   ;;  %v2666_v30 = vsel %vm2052_vm0, %v2664_v18, %v2662_v17  ;;  %v2729_v38 = vld [vmem:[#allocation1 + $0x104] ss:$8 sm:$0xf0]  }
  0x61   :  { %v2675_v22 = vld [vmem:[#allocation1 + $0xc5] ss:$8 sm:$0xf0]   ;;  %v4305_v39 = vpack.i.bf16 %v2666_v30, %v2655_v29  ;;  %v2738_v40 = vld [vmem:[#allocation1 + $0x204] ss:$8 sm:$0xf]   ;;  %v2731_v48 = vsel %vm2052_vm0, %v2729_v38, %v2727_v37 }
  0x62   :  { %v2684_v23 = vld [vmem:[#allocation1 + $0x1c5] ss:$8 sm:$0xf]   ;;  %v2677_v33 = vsel %vm2052_vm0, %v2675_v22, %v2673_v21  ;;  %v2740_v41 = vld [vmem:[#allocation1 + $0x204] ss:$8 sm:$0xf0]   ;;  %v4320_v56 = vpack.i.bf16 %v2731_v48, %v2721_v47 }
  0x63   :  { %v2686_v24 = vld [vmem:[#allocation1 + $0x1c5] ss:$8 sm:$0xf0]   ;;  %4286 = vrot.lane.b32.xlu1 %v4285_v11, %s4482_s18  ;;  %4291 = vrot.lane.b32.xlu0 %v4290_v14, %s4482_s18  ;;  %v2749_v45 = vld [vmem:[#allocation1 + $0x304] ss:$8 sm:$0xf]   ;;  %v2742_v57 = vsel %vm2052_vm0, %v2740_v41, %v2738_v40 }
  0x64   :  { %v2695_v26 = vld [vmem:[#allocation1 + $0x2c5] ss:$8 sm:$0xf]   ;;  %v2688_v34 = vsel %vm2052_vm0, %v2686_v24, %v2684_v23  ;;  %v2751_v46 = vld [vmem:[#allocation1 + $0x304] ss:$8 sm:$0xf0]  }
  0x65   :  { %v2697_v27 = vld [vmem:[#allocation1 + $0x2c5] ss:$8 sm:$0xf0]   ;;  %v4310_v42 = vpack.i.bf16 %v2688_v34, %v2677_v33  ;;  %v2760_v49 = vld [vmem:[#allocation1 + $0x44] ss:$8 sm:$0xf]   ;;  %v2753_v58 = vsel %vm2052_vm0, %v2751_v46, %v2749_v45 }
  0x66   :  { %v2706_v31 = vld [vmem:[#allocation1 + $0x3c5] ss:$8 sm:$0xf]   ;;  %v2699_v43 = vsel %vm2052_vm0, %v2697_v27, %v2695_v26  ;;  %v2762_v50 = vld [vmem:[#allocation1 + $0x44] ss:$8 sm:$0xf0]   ;;  %v4325_v3 = vpack.i.bf16 %v2753_v58, %v2742_v57 }
  0x67   :  { %v2708_v32 = vld [vmem:[#allocation1 + $0x3c5] ss:$8 sm:$0xf0]   ;;  %4296 = vrot.lane.b32.xlu1 %v4295_v25, %s4482_s18  ;;  %4301 = vrot.lane.b32.xlu0 %v4300_v28, %s4482_s18  ;;  %v2771_v51 = vld [vmem:[#allocation1 + $0x144] ss:$8 sm:$0xf]   ;;  %v2764_v61 = vsel %vm2052_vm0, %v2762_v50, %v2760_v49 }
  0x68   :  { %v2710_v44 = vsel %vm2052_vm0, %v2708_v32, %v2706_v31  ;;  %v2773_v52 = vld [vmem:[#allocation1 + $0x144] ss:$8 sm:$0xf0]   ;;  %v2892_v27 = vld [vmem:[#allocation1 + $0x3] ss:$8 sm:$0xf]  }
  0x69   :  { %v4315_v53 = vpack.i.bf16 %v2710_v44, %v2699_v43  ;;  %v2782_v54 = vld [vmem:[#allocation1 + $0x244] ss:$8 sm:$0xf]   ;;  %v2775_v62 = vsel %vm2052_vm0, %v2773_v52, %v2771_v51  ;;  %v2894_v28 = vld [vmem:[#allocation1 + $0x3] ss:$8 sm:$0xf0]  }
  0x6a   :  { %v2784_v55 = vld [vmem:[#allocation1 + $0x244] ss:$8 sm:$0xf0]   ;;  %v4330_v6 = vpack.i.bf16 %v2775_v62, %v2764_v61  ;;  %v2902_v29 = vld [vmem:[#allocation1 + $0x103] ss:$8 sm:$0xf]  }
  0x6b   :  { %4306 = vrot.lane.b32.xlu1 %v4305_v39, %s4482_s18  ;;  %4311 = vrot.lane.b32.xlu0 %v4310_v42, %s4482_s18  ;;  %v2793_v59 = vld [vmem:[#allocation1 + $0x344] ss:$8 sm:$0xf]   ;;  %v2786_v7 = vsel %vm2052_vm0, %v2784_v55, %v2782_v54  ;;  %v2904_v30 = vld [vmem:[#allocation1 + $0x103] ss:$8 sm:$0xf0]   ;;  %v2896_v39 = vsel %vm2052_vm0, %v2894_v28, %v2892_v27 }
  0x6c   :  { %v2795_v60 = vld [vmem:[#allocation1 + $0x344] ss:$8 sm:$0xf0]   ;;  %v2913_v32 = vld [vmem:[#allocation1 + $0x203] ss:$8 sm:$0xf]   ;;  %v2906_v40 = vsel %vm2052_vm0, %v2904_v30, %v2902_v29 }
  0x6d   :  { %v2804_v63 = vld [vmem:[#allocation1 + $0x84] ss:$8 sm:$0xf]   ;;  %v2797_v8 = vsel %vm2052_vm0, %v2795_v60, %v2793_v59  ;;  %v2915_v33 = vld [vmem:[#allocation1 + $0x203] ss:$8 sm:$0xf0]   ;;  %v4360_v48 = vpack.i.bf16 %v2906_v40, %v2896_v39 }
  0x6e   :  { %v2806_v0 = vld [vmem:[#allocation1 + $0x84] ss:$8 sm:$0xf0]   ;;  %v4335_v17 = vpack.i.bf16 %v2797_v8, %v2786_v7  ;;  %v2924_v37 = vld [vmem:[#allocation1 + $0x303] ss:$8 sm:$0xf]   ;;  %v2917_v49 = vsel %vm2052_vm0, %v2915_v33, %v2913_v32 }
  0x6f   :  { %v2815_v1 = vld [vmem:[#allocation1 + $0x184] ss:$8 sm:$0xf]   ;;  %4316 = vrot.lane.b32.xlu1 %v4315_v53, %s4482_s18  ;;  %4321 = vrot.lane.b32.xlu0 %v4320_v56, %s4483_s21  ;;  %v2808_v11 = vsel %vm2052_vm0, %v2806_v0, %v2804_v63  ;;  %v2926_v38 = vld [vmem:[#allocation1 + $0x303] ss:$8 sm:$0xf0]  }
  0x70   :  { %v2817_v2 = vld [vmem:[#allocation1 + $0x184] ss:$8 sm:$0xf0]   ;;  %v2935_v41 = vld [vmem:[#allocation1 + $0x43] ss:$8 sm:$0xf]   ;;  %v2928_v50 = vsel %vm2052_vm0, %v2926_v38, %v2924_v37 }
  0x71   :  { %v2826_v4 = vld [vmem:[#allocation1 + $0x284] ss:$8 sm:$0xf]   ;;  %v2819_v12 = vsel %vm2052_vm0, %v2817_v2, %v2815_v1  ;;  %v2937_v42 = vld [vmem:[#allocation1 + $0x43] ss:$8 sm:$0xf0]   ;;  %v4365_v59 = vpack.i.bf16 %v2928_v50, %v2917_v49 }
  0x72   :  { %v2828_v5 = vld [vmem:[#allocation1 + $0x284] ss:$8 sm:$0xf0]   ;;  %v4340_v20 = vpack.i.bf16 %v2819_v12, %v2808_v11  ;;  %v2946_v43 = vld [vmem:[#allocation1 + $0x143] ss:$8 sm:$0xf]   ;;  %v2939_v53 = vsel %vm2052_vm0, %v2937_v42, %v2935_v41 }
  0x73   :  { %v2837_v9 = vld [vmem:[#allocation1 + $0x384] ss:$8 sm:$0xf]   ;;  %4326 = vrot.lane.b32.xlu1 %v4325_v3, %s4483_s21  ;;  %4331 = vrot.lane.b32.xlu0 %v4330_v6, %s4483_s21  ;;  %v2830_v21 = vsel %vm2052_vm0, %v2828_v5, %v2826_v4  ;;  %v2948_v44 = vld [vmem:[#allocation1 + $0x143] ss:$8 sm:$0xf0]  }
  0x74   :  { %v2839_v10 = vld [vmem:[#allocation1 + $0x384] ss:$8 sm:$0xf0]   ;;  %v2957_v46 = vld [vmem:[#allocation1 + $0x243] ss:$8 sm:$0xf]   ;;  %v2950_v54 = vsel %vm2052_vm0, %v2948_v44, %v2946_v43 }
  0x75   :  { %v2848_v13 = vld [vmem:[#allocation1 + $0xc4] ss:$8 sm:$0xf]   ;;  %v2841_v22 = vsel %vm2052_vm0, %v2839_v10, %v2837_v9  ;;  %v2959_v47 = vld [vmem:[#allocation1 + $0x243] ss:$8 sm:$0xf0]   ;;  %v4370_v62 = vpack.i.bf16 %v2950_v54, %v2939_v53 }
  0x76   :  { %v2850_v14 = vld [vmem:[#allocation1 + $0xc4] ss:$8 sm:$0xf0]   ;;  %v4345_v31 = vpack.i.bf16 %v2841_v22, %v2830_v21  ;;  %v2968_v51 = vld [vmem:[#allocation1 + $0x343] ss:$8 sm:$0xf]   ;;  %v2961_v63 = vsel %vm2052_vm0, %v2959_v47, %v2957_v46 }
  0x77   :  { %v2859_v15 = vld [vmem:[#allocation1 + $0x1c4] ss:$8 sm:$0xf]   ;;  %v2852_v25 = vsel %vm2052_vm0, %v2850_v14, %v2848_v13  ;;  %4336 = vrot.lane.b32.xlu1 %v4335_v17, %s4483_s21  ;;  %4341 = vrot.lane.b32.xlu0 %v4340_v20, %s4483_s21  ;;  %v2970_v52 = vld [vmem:[#allocation1 + $0x343] ss:$8 sm:$0xf0]  }
  0x78   :  { %v2861_v16 = vld [vmem:[#allocation1 + $0x1c4] ss:$8 sm:$0xf0]   ;;  %v2979_v55 = vld [vmem:[#allocation1 + $0x83] ss:$8 sm:$0xf]   ;;  %v2972_v0 = vsel %vm2052_vm0, %v2970_v52, %v2968_v51 }
  0x79   :  { %v2870_v18 = vld [vmem:[#allocation1 + $0x2c4] ss:$8 sm:$0xf]   ;;  %v2863_v26 = vsel %vm2052_vm0, %v2861_v16, %v2859_v15  ;;  %v2981_v56 = vld [vmem:[#allocation1 + $0x83] ss:$8 sm:$0xf0]   ;;  %v4375_v9 = vpack.i.bf16 %v2972_v0, %v2961_v63 }
  0x7a   :  { %v2872_v19 = vld [vmem:[#allocation1 + $0x2c4] ss:$8 sm:$0xf0]   ;;  %v4350_v34 = vpack.i.bf16 %v2863_v26, %v2852_v25  ;;  %v2990_v57 = vld [vmem:[#allocation1 + $0x183] ss:$8 sm:$0xf]   ;;  %v2983_v3 = vsel %vm2052_vm0, %v2981_v56, %v2979_v55 }
  0x7b   :  { %v2881_v23 = vld [vmem:[#allocation1 + $0x3c4] ss:$8 sm:$0xf]   ;;  %v2874_v35 = vsel %vm2052_vm0, %v2872_v19, %v2870_v18  ;;  %4346 = vrot.lane.b32.xlu1 %v4345_v31, %s4483_s21  ;;  %v2992_v58 = vld [vmem:[#allocation1 + $0x183] ss:$8 sm:$0xf0]  }
  0x7c   :  { %v2883_v24 = vld [vmem:[#allocation1 + $0x3c4] ss:$8 sm:$0xf0]   ;;  %4351 = vrot.lane.b32.xlu0 %v4350_v34, %s4483_s21  ;;  %v3001_v60 = vld [vmem:[#allocation1 + $0x283] ss:$8 sm:$0xf]   ;;  %v2994_v4 = vsel %vm2052_vm0, %v2992_v58, %v2990_v57 }
  0x7d   :  { %v2885_v36 = vsel %vm2052_vm0, %v2883_v24, %v2881_v23  ;;  %v3003_v61 = vld [vmem:[#allocation1 + $0x283] ss:$8 sm:$0xf0]   ;;  %v4380_v12 = vpack.i.bf16 %v2994_v4, %v2983_v3  ;;  %v3067_v19 = vld [vmem:[#allocation1 + $0x2] ss:$8 sm:$0xf]  }
  0x7e   :  { %v4355_v45 = vpack.i.bf16 %v2885_v36, %v2874_v35  ;;  %v3012_v1 = vld [vmem:[#allocation1 + $0x383] ss:$8 sm:$0xf]   ;;  %v3005_v13 = vsel %vm2052_vm0, %v3003_v61, %v3001_v60  ;;  %v3069_v20 = vld [vmem:[#allocation1 + $0x2] ss:$8 sm:$0xf0]  }
  0x7f   :  { %v3014_v2 = vld [vmem:[#allocation1 + $0x383] ss:$8 sm:$0xf0]   ;;  %v3077_v21 = vld [vmem:[#allocation1 + $0x102] ss:$8 sm:$0xf]   ;;  %v3071_v31 = vsel %vm2052_vm0, %v3069_v20, %v3067_v19 }
  0x80   :  { %4356 = vrot.lane.b32.xlu1 %v4355_v45, %s4483_s21  ;;  %4361 = vrot.lane.b32.xlu0 %v4360_v48, %s4484_s22  ;;  %v3023_v5 = vld [vmem:[#allocation1 + $0xc3] ss:$8 sm:$0xf]   ;;  %v3016_v14 = vsel %vm2052_vm0, %v3014_v2, %v3012_v1  ;;  %v3079_v22 = vld [vmem:[#allocation1 + $0x102] ss:$8 sm:$0xf0]  }
  0x81   :  { %v3025_v6 = vld [vmem:[#allocation1 + $0xc3] ss:$8 sm:$0xf0]   ;;  %v4385_v23 = vpack.i.bf16 %v3016_v14, %v3005_v13  ;;  %v3088_v24 = vld [vmem:[#allocation1 + $0x202] ss:$8 sm:$0xf]   ;;  %v3081_v32 = vsel %vm2052_vm0, %v3079_v22, %v3077_v21 }
  0x82   :  { %v3034_v7 = vld [vmem:[#allocation1 + $0x1c3] ss:$8 sm:$0xf]   ;;  %v3027_v17 = vsel %vm2052_vm0, %v3025_v6, %v3023_v5  ;;  %v3090_v25 = vld [vmem:[#allocation1 + $0x202] ss:$8 sm:$0xf0]   ;;  %v4400_v40 = vpack.i.bf16 %v3081_v32, %v3071_v31 }
  0x83   :  { %v3036_v8 = vld [vmem:[#allocation1 + $0x1c3] ss:$8 sm:$0xf0]   ;;  %v3099_v29 = vld [vmem:[#allocation1 + $0x302] ss:$8 sm:$0xf]   ;;  %v3092_v41 = vsel %vm2052_vm0, %v3090_v25, %v3088_v24 }
  0x84   :  { %v3045_v10 = vld [vmem:[#allocation1 + $0x2c3] ss:$8 sm:$0xf]   ;;  %4366 = vrot.lane.b32.xlu1 %v4365_v59, %s4484_s22  ;;  %4371 = vrot.lane.b32.xlu0 %v4370_v62, %s4484_s22  ;;  %v3038_v18 = vsel %vm2052_vm0, %v3036_v8, %v3034_v7  ;;  %v3101_v30 = vld [vmem:[#allocation1 + $0x302] ss:$8 sm:$0xf0]  }
  0x85   :  { %v3047_v11 = vld [vmem:[#allocation1 + $0x2c3] ss:$8 sm:$0xf0]   ;;  %v4390_v26 = vpack.i.bf16 %v3038_v18, %v3027_v17  ;;  %v3110_v33 = vld [vmem:[#allocation1 + $0x42] ss:$8 sm:$0xf]   ;;  %v3103_v42 = vsel %vm2052_vm0, %v3101_v30, %v3099_v29 }
  0x86   :  { %v3056_v15 = vld [vmem:[#allocation1 + $0x3c3] ss:$8 sm:$0xf]   ;;  %v3049_v27 = vsel %vm2052_vm0, %v3047_v11, %v3045_v10  ;;  %v3112_v34 = vld [vmem:[#allocation1 + $0x42] ss:$8 sm:$0xf0]   ;;  %v4405_v51 = vpack.i.bf16 %v3103_v42, %v3092_v41 }
  0x87   :  { %v3058_v16 = vld [vmem:[#allocation1 + $0x3c3] ss:$8 sm:$0xf0]   ;;  %v3121_v35 = vld [vmem:[#allocation1 + $0x142] ss:$8 sm:$0xf]   ;;  %v3114_v45 = vsel %vm2052_vm0, %v3112_v34, %v3110_v33 }
  0x88   :  { %4376 = vrot.lane.b32.xlu1 %v4375_v9, %s4484_s22  ;;  %4381 = vrot.lane.b32.xlu0 %v4380_v12, %s4484_s22  ;;  %v3060_v28 = vsel %vm2052_vm0, %v3058_v16, %v3056_v15  ;;  %v3123_v36 = vld [vmem:[#allocation1 + $0x142] ss:$8 sm:$0xf0]   ;;  %v3242_v11 = vld [vmem:[#allocation1 + $0x1] ss:$8 sm:$0xf]  }
  0x89   :  { %v4395_v37 = vpack.i.bf16 %v3060_v28, %v3049_v27  ;;  %v3132_v38 = vld [vmem:[#allocation1 + $0x242] ss:$8 sm:$0xf]   ;;  %v3125_v46 = vsel %vm2052_vm0, %v3123_v36, %v3121_v35  ;;  %v3244_v12 = vld [vmem:[#allocation1 + $0x1] ss:$8 sm:$0xf0]  }
  0x8a   :  { %v3134_v39 = vld [vmem:[#allocation1 + $0x242] ss:$8 sm:$0xf0]   ;;  %v4410_v54 = vpack.i.bf16 %v3125_v46, %v3114_v45  ;;  %v3252_v13 = vld [vmem:[#allocation1 + $0x101] ss:$8 sm:$0xf]  }
  0x8b   :  { %v3143_v43 = vld [vmem:[#allocation1 + $0x342] ss:$8 sm:$0xf]   ;;  %v3136_v55 = vsel %vm2052_vm0, %v3134_v39, %v3132_v38  ;;  %v3254_v14 = vld [vmem:[#allocation1 + $0x101] ss:$8 sm:$0xf0]  }
  0x8c   :  { %4386 = vrot.lane.b32.xlu1 %v4385_v23, %s4484_s22  ;;  %4391 = vrot.lane.b32.xlu0 %v4390_v26, %s4484_s22  ;;  %v3145_v44 = vld [vmem:[#allocation1 + $0x342] ss:$8 sm:$0xf0]   ;;  %v3263_v16 = vld [vmem:[#allocation1 + $0x201] ss:$8 sm:$0xf]   ;;  %v3246_v23 = vsel %vm2052_vm0, %v3244_v12, %v3242_v11  ;;  %v3256_v24 = vsel %vm2052_vm0, %v3254_v14, %v3252_v13 }
  0x8d   :  { %v3154_v47 = vld [vmem:[#allocation1 + $0x82] ss:$8 sm:$0xf]   ;;  %v3147_v56 = vsel %vm2052_vm0, %v3145_v44, %v3143_v43  ;;  %v3265_v17 = vld [vmem:[#allocation1 + $0x201] ss:$8 sm:$0xf0]   ;;  %v4440_v32 = vpack.i.bf16 %v3256_v24, %v3246_v23 }
  0x8e   :  { %v3156_v48 = vld [vmem:[#allocation1 + $0x82] ss:$8 sm:$0xf0]   ;;  %v4415_v1 = vpack.i.bf16 %v3147_v56, %v3136_v55  ;;  %v3274_v21 = vld [vmem:[#allocation1 + $0x301] ss:$8 sm:$0xf]   ;;  %v3267_v33 = vsel %vm2052_vm0, %v3265_v17, %v3263_v16 }
  0x8f   :  { %v3165_v49 = vld [vmem:[#allocation1 + $0x182] ss:$8 sm:$0xf]   ;;  %v3158_v59 = vsel %vm2052_vm0, %v3156_v48, %v3154_v47  ;;  %v3276_v22 = vld [vmem:[#allocation1 + $0x301] ss:$8 sm:$0xf0]  }
  0x90   :  { %v3167_v50 = vld [vmem:[#allocation1 + $0x182] ss:$8 sm:$0xf0]   ;;  %4396 = vrot.lane.b32.xlu1 %v4395_v37, %s4484_s22  ;;  %4401 = vrot.lane.b32.xlu0 %v4400_v40, %s4485_s23  ;;  %v3285_v25 = vld [vmem:[#allocation1 + $0x41] ss:$8 sm:$0xf]   ;;  %v3278_v34 = vsel %vm2052_vm0, %v3276_v22, %v3274_v21  ;;  %v4212_v16 = vpop.permute.xlu1 %4211 }
  0x91   :  { %v3176_v52 = vld [vmem:[#allocation1 + $0x282] ss:$8 sm:$0xf]   ;;  %v3169_v60 = vsel %vm2052_vm0, %v3167_v50, %v3165_v49  ;;  %v3287_v26 = vld [vmem:[#allocation1 + $0x41] ss:$8 sm:$0xf0]   ;;  %v4445_v43 = vpack.i.bf16 %v3278_v34, %v3267_v33 }
  0x92   :  { %v3178_v53 = vld [vmem:[#allocation1 + $0x282] ss:$8 sm:$0xf0]   ;;  %v4420_v4 = vpack.i.bf16 %v3169_v60, %v3158_v59  ;;  %v3296_v27 = vld [vmem:[#allocation1 + $0x141] ss:$8 sm:$0xf]   ;;  %v3289_v37 = vsel %vm2052_vm0, %v3287_v26, %v3285_v25  ;;  %v4202_v59 = vpop.permute.xlu0 %4201 }
  0x93   :  { %v3187_v57 = vld [vmem:[#allocation1 + $0x382] ss:$8 sm:$0xf]   ;;  %v3180_v5 = vsel %vm2052_vm0, %v3178_v53, %v3176_v52  ;;  %v3298_v28 = vld [vmem:[#allocation1 + $0x141] ss:$8 sm:$0xf0]  }
  0x94   :  { %v3189_v58 = vld [vmem:[#allocation1 + $0x382] ss:$8 sm:$0xf0]   ;;  %4406 = vrot.lane.b32.xlu1 %v4405_v51, %s4485_s23  ;;  %4411 = vrot.lane.b32.xlu0 %v4410_v54, %s4485_s23  ;;  %v3307_v30 = vld [vmem:[#allocation1 + $0x241] ss:$8 sm:$0xf]   ;;  %v3300_v38 = vsel %vm2052_vm0, %v3298_v28, %v3296_v27 }
  0x95   :  { %v3198_v61 = vld [vmem:[#allocation1 + $0xc2] ss:$8 sm:$0xf]   ;;  %v3191_v6 = vsel %vm2052_vm0, %v3189_v58, %v3187_v57  ;;  %v3309_v31 = vld [vmem:[#allocation1 + $0x241] ss:$8 sm:$0xf0]   ;;  %v4450_v46 = vpack.i.bf16 %v3300_v38, %v3289_v37 }
  0x96   :  { %v3200_v62 = vld [vmem:[#allocation1 + $0xc2] ss:$8 sm:$0xf0]   ;;  %v4425_v15 = vpack.i.bf16 %v3191_v6, %v3180_v5  ;;  %v3318_v35 = vld [vmem:[#allocation1 + $0x341] ss:$8 sm:$0xf]   ;;  %v3311_v47 = vsel %vm2052_vm0, %v3309_v31, %v3307_v30  ;;  %v4204_v5 = vunpack.i.h.bf16 %v4202_v59  ;;  %v4203_v6 = vunpack.i.l.bf16 %v4202_v59 }
  0x97   :  { %v3209_v63 = vld [vmem:[#allocation1 + $0x1c2] ss:$8 sm:$0xf]   ;;  %v3202_v9 = vsel %vm2052_vm0, %v3200_v62, %v3198_v61  ;;  %v3320_v36 = vld [vmem:[#allocation1 + $0x341] ss:$8 sm:$0xf0]  }
  0x98   :  { %v3211_v0 = vld [vmem:[#allocation1 + $0x1c2] ss:$8 sm:$0xf0]   ;;  %4416 = vrot.lane.b32.xlu1 %v4415_v1, %s4485_s23  ;;  %4421 = vrot.lane.b32.xlu0 %v4420_v4, %s4485_s23  ;;  %v3329_v39 = vld [vmem:[#allocation1 + $0x81] ss:$8 sm:$0xf]   ;;  %v3322_v48 = vsel %vm2052_vm0, %v3320_v36, %v3318_v35  ;;  %v4207_v37 = vpop.permute.xlu0 %4206 }
  0x99   :  { %v3220_v2 = vld [vmem:[#allocation1 + $0x2c2] ss:$8 sm:$0xf]   ;;  %v3213_v10 = vsel %vm2052_vm0, %v3211_v0, %v3209_v63  ;;  %v3331_v40 = vld [vmem:[#allocation1 + $0x81] ss:$8 sm:$0xf0]   ;;  %v4455_v60 = vpack.i.bf16 %v3322_v48, %v3311_v47 }
  0x9a   :  { %v3222_v3 = vld [vmem:[#allocation1 + $0x2c2] ss:$8 sm:$0xf0]   ;;  %v4430_v18 = vpack.i.bf16 %v3213_v10, %v3202_v9  ;;  %v3340_v41 = vld [vmem:[#allocation1 + $0x181] ss:$8 sm:$0xf]   ;;  %v3333_v53 = vsel %vm2052_vm0, %v3331_v40, %v3329_v39 }
  0x9b   :  { %v3231_v7 = vld [vmem:[#allocation1 + $0x3c2] ss:$8 sm:$0xf]   ;;  %v3224_v19 = vsel %vm2052_vm0, %v3222_v3, %v3220_v2  ;;  %v3342_v42 = vld [vmem:[#allocation1 + $0x181] ss:$8 sm:$0xf0]  }
  0x9c   :  { %v3233_v8 = vld [vmem:[#allocation1 + $0x3c2] ss:$8 sm:$0xf0]   ;;  %4426 = vrot.lane.b32.xlu1 %v4425_v15, %s4485_s23  ;;  %4431 = vrot.lane.b32.xlu0 %v4430_v18, %s4485_s23  ;;  %v3351_v44 = vld [vmem:[#allocation1 + $0x281] ss:$8 sm:$0xf]   ;;  %v3344_v54 = vsel %vm2052_vm0, %v3342_v42, %v3340_v41  ;;  %v4209_v42 = vunpack.i.h.bf16 %v4207_v37 }
  0x9d   :  { %v3235_v20 = vsel %vm2052_vm0, %v3233_v8, %v3231_v7  ;;  %v3353_v45 = vld [vmem:[#allocation1 + $0x281] ss:$8 sm:$0xf0]   ;;  %v2050_v57 = vld [vmem:[#allocation1] ss:$8 sm:$0xf]   ;;  %v4460_v63 = vpack.i.bf16 %v3344_v54, %v3333_v53 }
  0x9e   :  { %v4435_v29 = vpack.i.bf16 %v3235_v20, %v3224_v19  ;;  %v3362_v49 = vld [vmem:[#allocation1 + $0x381] ss:$8 sm:$0xf]   ;;  %v2051_v58 = vld [vmem:[#allocation1] ss:$8 sm:$0xf0]   ;;  %v3355_v0 = vsel %vm2052_vm0, %v3353_v45, %v3351_v44  ;;  %v4214_v19 = vunpack.i.h.bf16 %v4212_v16  ;;  %v4213_v20 = vunpack.i.l.bf16 %v4212_v16 }
  0x9f   :  { %v3364_v50 = vld [vmem:[#allocation1 + $0x381] ss:$8 sm:$0xf0]   ;;  %v2053_v61 = vsel %vm2052_vm0, %v2051_v58, %v2050_v57  ;;  %v2084_v62 = vld [vmem:[#allocation1 + $0x100] ss:$8 sm:$0xf]  }
  0xa0   :  { %4436 = vrot.lane.b32.xlu1 %v4435_v29, %s4485_s23  ;;  %4441 = vrot.lane.b32.xlu0 %v4440_v32, %s4486_s24  ;;  %v3373_v51 = vld [vmem:[#allocation1 + $0xc1] ss:$8 sm:$0xf]   ;;  %2055 = vst.msk [vmem:[#allocation0] sm:$0xff] %vm2054_vm1, %v2053_v61   ;;  %v3366_v9 = vsel %vm2052_vm0, %v3364_v50, %v3362_v49  ;;  %v4217_v53 = vpop.permute.xlu1 %4216 }
  0xa1   :  { %v3375_v52 = vld [vmem:[#allocation1 + $0xc1] ss:$8 sm:$0xf0]   ;;  %v2086_v7 = vld [vmem:[#allocation1 + $0x100] ss:$8 sm:$0xf0]   ;;  %v4465_v24 = vpack.i.bf16 %v3366_v9, %v3355_v0  ;;  %v4219_v57 = vunpack.i.h.bf16 %v4217_v53  ;;  %v4218_v58 = vunpack.i.l.bf16 %v4217_v53 }
  0xa2   :  { %v3384_v55 = vld [vmem:[#allocation1 + $0x1c1] ss:$8 sm:$0xf]   ;;  %v2057_v8 = vld [vmem:[#allocation1 + $0x40] ss:$8 sm:$0xf]   ;;  %v3377_v10 = vsel %vm2052_vm0, %v3375_v52, %v3373_v51  ;;  %v2088_v12 = vsel %vm2052_vm0, %v2086_v7, %v2084_v62 }
  0xa3   :  { %v3386_v56 = vld [vmem:[#allocation1 + $0x1c1] ss:$8 sm:$0xf0]   ;;  %v2059_v13 = vld [vmem:[#allocation1 + $0x40] ss:$8 sm:$0xf0]  }
  0xa4   :  { %4446 = vrot.lane.b32.xlu1 %v4445_v43, %s4486_s24  ;;  %4451 = vrot.lane.b32.xlu0 %v4450_v46, %s4486_s24  ;;  %v3395_v1 = vld [vmem:[#allocation1 + $0x2c1] ss:$8 sm:$0xf]   ;;  %v3388_v11 = vsel %vm2052_vm0, %v3386_v56, %v3384_v55  ;;  %v2093_v14 = vld [vmem:[#allocation1 + $0x140] ss:$8 sm:$0xf]   ;;  %v2061_v15 = vsel %vm2052_vm0, %v2059_v13, %v2057_v8  ;;  %v4208_v43 = vunpack.i.l.bf16 %v4207_v37 }
  0xa5   :  { %v3397_v2 = vld [vmem:[#allocation1 + $0x2c1] ss:$8 sm:$0xf0]   ;;  %2091 = vst.msk [vmem:[#allocation0 + $0x20] sm:$0xff] %vm2054_vm1, %v2088_v12   ;;  %2064 = vst.msk [vmem:[#allocation0 + $0x8] sm:$0xff] %vm2054_vm1, %v2061_v15   ;;  %v4470_v25 = vpack.i.bf16 %v3388_v11, %v3377_v10 }
  0xa6   :  { %v3406_v3 = vld [vmem:[#allocation1 + $0x3c1] ss:$8 sm:$0xf]   ;;  %2200 = vst.msk [vmem:[#allocation0] sm:$0xff] %vm2199_vm2, %v4203_v6   ;;  %2211 = vst.msk [vmem:[#allocation0 + $0x20] sm:$0xff] %vm2199_vm2, %v4204_v5   ;;  %v3399_v29 = vsel %vm2052_vm0, %v3397_v2, %v3395_v1 }
  0xa7   :  { %v3408_v4 = vld [vmem:[#allocation1 + $0x3c1] ss:$8 sm:$0xf0]   ;;  %v2095_v17 = vld [vmem:[#allocation1 + $0x140] ss:$8 sm:$0xf0]  }
  0xa8   :  { %v2120_v18 = vld [vmem:[#allocation1 + $0x200] ss:$8 sm:$0xf]   ;;  %v2097_v21 = vsel %vm2052_vm0, %v2095_v17, %v2093_v14  ;;  %4456 = vrot.lane.b32.xlu1 %v4455_v60, %s4486_s24  ;;  %4461 = vrot.lane.b32.xlu0 %v4460_v63, %s4486_s24  ;;  %v3410_v30 = vsel %vm2052_vm0, %v3408_v4, %v3406_v3  ;;  %2244 = vst.msk [vmem:[#allocation0 + $0x8] sm:$0xff] %vm2199_vm2, %v4213_v20   ;;  %v4222_v4 = vpop.permute.xlu0 %4221 }
  0xa9   :  { %v2122_v22 = vld [vmem:[#allocation1 + $0x200] ss:$8 sm:$0xf0]   ;;  %2100 = vst.msk [vmem:[#allocation0 + $0x28] sm:$0xff] %vm2054_vm1, %v2097_v21   ;;  %v4475_v41 = vpack.i.bf16 %v3410_v30, %v3399_v29  ;;  %v4224_v5 = vunpack.i.h.bf16 %v4222_v4  ;;  %v4223_v6 = vunpack.i.l.bf16 %v4222_v4 }
  0xaa   :  { %v2156_v23 = vld [vmem:[#allocation1 + $0x300] ss:$8 sm:$0xf]   ;;  %v2124_v26 = vsel %vm2052_vm0, %v2122_v22, %v2120_v18  ;;  %2255 = vst.msk [vmem:[#allocation0 + $0x28] sm:$0xff] %vm2199_vm2, %v4214_v19  }
  0xab   :  { %v2158_v27 = vld [vmem:[#allocation1 + $0x300] ss:$8 sm:$0xf0]   ;;  %2127 = vst.msk [vmem:[#allocation0 + $0x40] sm:$0xff] %vm2054_vm1, %v2124_v26  }
  0xac   :  { %v2129_v28 = vld [vmem:[#allocation1 + $0x240] ss:$8 sm:$0xf]   ;;  %v2160_v31 = vsel %vm2052_vm0, %v2158_v27, %v2156_v23  ;;  %4466 = vrot.lane.b32.xlu1 %v4465_v24, %s4486_s24  ;;  %4471 = vrot.lane.b32.xlu0 %v4470_v25, %s4486_s24  ;;  %2222 = vst.msk [vmem:[#allocation0 + $0x40] sm:$0xff] %vm2199_vm2, %v4208_v43  }
  0xad   :  { %v2131_v32 = vld [vmem:[#allocation1 + $0x240] ss:$8 sm:$0xf0]   ;;  %2163 = vst.msk [vmem:[#allocation0 + $0x60] sm:$0xff] %vm2054_vm1, %v2160_v31  }
  0xae   :  { %v2165_v33 = vld [vmem:[#allocation1 + $0x340] ss:$8 sm:$0xf]   ;;  %v2133_v34 = vsel %vm2052_vm0, %v2131_v32, %v2129_v28  ;;  %2233 = vst.msk [vmem:[#allocation0 + $0x60] sm:$0xff] %vm2199_vm2, %v4209_v42  }
  0xaf   :  { %v2167_v35 = vld [vmem:[#allocation1 + $0x340] ss:$8 sm:$0xf0]   ;;  %2136 = vst.msk [vmem:[#allocation0 + $0x48] sm:$0xff] %vm2054_vm1, %v2133_v34  }
  0xb0   :  { %v2066_v36 = vld [vmem:[#allocation1 + $0x80] ss:$8 sm:$0xf]   ;;  %v2169_v38 = vsel %vm2052_vm0, %v2167_v35, %v2165_v33  ;;  %4476 = vrot.lane.b32.xlu1 %v4475_v41, %s4486_s24  ;;  %2266 = vst.msk [vmem:[#allocation0 + $0x48] sm:$0xff] %vm2199_vm2, %v4218_v58   ;;  %v4227_v7 = vpop.permute.xlu1 %4226 }
  0xb1   :  { %v2068_v39 = vld [vmem:[#allocation1 + $0x80] ss:$8 sm:$0xf0]   ;;  %2172 = vst.msk [vmem:[#allocation0 + $0x68] sm:$0xff] %vm2054_vm1, %v2169_v38   ;;  %v4229_v8 = vunpack.i.h.bf16 %v4227_v7  ;;  %v4228_v9 = vunpack.i.l.bf16 %v4227_v7 }
  0xb2   :  { %v2102_v40 = vld [vmem:[#allocation1 + $0x180] ss:$8 sm:$0xf]   ;;  %v2070_v44 = vsel %vm2052_vm0, %v2068_v39, %v2066_v36  ;;  %2277 = vst.msk [vmem:[#allocation0 + $0x68] sm:$0xff] %vm2199_vm2, %v4219_v57  }
  0xb3   :  { %v2104_v45 = vld [vmem:[#allocation1 + $0x180] ss:$8 sm:$0xf0]   ;;  %2073 = vst.msk [vmem:[#allocation0 + $0x10] sm:$0xff] %vm2054_vm1, %v2070_v44  }
  0xb4   :  { %v2138_v46 = vld [vmem:[#allocation1 + $0x280] ss:$8 sm:$0xf]   ;;  %v2106_v47 = vsel %vm2052_vm0, %v2104_v45, %v2102_v40  ;;  %2288 = vst.msk [vmem:[#allocation0 + $0x10] sm:$0xff] %vm2199_vm2, %v4223_v6  }
  0xb5   :  { %v2140_v48 = vld [vmem:[#allocation1 + $0x280] ss:$8 sm:$0xf0]   ;;  %2109 = vst.msk [vmem:[#allocation0 + $0x30] sm:$0xff] %vm2054_vm1, %v2106_v47  }
  0xb6   :  { %v2174_v49 = vld [vmem:[#allocation1 + $0x380] ss:$8 sm:$0xf]   ;;  %v2142_v50 = vsel %vm2052_vm0, %v2140_v48, %v2138_v46  ;;  %2299 = vst.msk [vmem:[#allocation0 + $0x30] sm:$0xff] %vm2199_vm2, %v4224_v5  }
  0xb7   :  { %v2176_v51 = vld [vmem:[#allocation1 + $0x380] ss:$8 sm:$0xf0]   ;;  %2145 = vst.msk [vmem:[#allocation0 + $0x50] sm:$0xff] %vm2054_vm1, %v2142_v50  }
  0xb8   :  { %v2075_v52 = vld [vmem:[#allocation1 + $0xc0] ss:$8 sm:$0xf]   ;;  %v2178_v54 = vsel %vm2052_vm0, %v2176_v51, %v2174_v49  ;;  %2310 = vst.msk [vmem:[#allocation0 + $0x50] sm:$0xff] %vm2199_vm2, %v4228_v9  }
  0xb9   :  { %v2077_v55 = vld [vmem:[#allocation1 + $0xc0] ss:$8 sm:$0xf0]   ;;  %2181 = vst.msk [vmem:[#allocation0 + $0x70] sm:$0xff] %vm2054_vm1, %v2178_v54   ;;  %v4232_v10 = vpop.permute.xlu0 %4231 }
  0xba   :  { %v2111_v56 = vld [vmem:[#allocation1 + $0x1c0] ss:$8 sm:$0xf]   ;;  %v2079_v59 = vsel %vm2052_vm0, %v2077_v55, %v2075_v52  ;;  %2321 = vst.msk [vmem:[#allocation0 + $0x70] sm:$0xff] %vm2199_vm2, %v4229_v8   ;;  %v4234_v11 = vunpack.i.h.bf16 %v4232_v10  ;;  %v4233_v12 = vunpack.i.l.bf16 %v4232_v10 }
  0xbb   :  { %v2113_v60 = vld [vmem:[#allocation1 + $0x1c0] ss:$8 sm:$0xf0]   ;;  %2082 = vst.msk [vmem:[#allocation0 + $0x18] sm:$0xff] %vm2054_vm1, %v2079_v59  }
  0xbc   :  { %v2147_v61 = vld [vmem:[#allocation1 + $0x2c0] ss:$8 sm:$0xf]   ;;  %v2115_v62 = vsel %vm2052_vm0, %v2113_v60, %v2111_v56  ;;  %2332 = vst.msk [vmem:[#allocation0 + $0x18] sm:$0xff] %vm2199_vm2, %v4233_v12  }
  0xbd   :  { %v2149_v63 = vld [vmem:[#allocation1 + $0x2c0] ss:$8 sm:$0xf0]   ;;  %2118 = vst.msk [vmem:[#allocation0 + $0x38] sm:$0xff] %vm2054_vm1, %v2115_v62   ;;  %v4242_v14 = vpop.permute.xlu0 %4241 }
  0xbe   :  { %v2183_v0 = vld [vmem:[#allocation1 + $0x3c0] ss:$8 sm:$0xf]   ;;  %v2151_v1 = vsel %vm2052_vm0, %v2149_v63, %v2147_v61  ;;  %2343 = vst.msk [vmem:[#allocation0 + $0x38] sm:$0xff] %vm2199_vm2, %v4234_v11   ;;  %v4244_v17 = vunpack.i.h.bf16 %v4242_v14  ;;  %v4243_v18 = vunpack.i.l.bf16 %v4242_v14 }
  0xbf   :  { %v2185_v2 = vld [vmem:[#allocation1 + $0x3c0] ss:$8 sm:$0xf0]   ;;  %2154 = vst.msk [vmem:[#allocation0 + $0x58] sm:$0xff] %vm2054_vm1, %v2151_v1  }
  0xc0   :  { %v2187_v3 = vsel %vm2052_vm0, %v2185_v2, %v2183_v0  ;;  %v4237_v13 = vpop.permute.xlu1 %4236  ;;  %2386 = vst.msk [vmem:[#allocation0 + $0x20] sm:$0xff] %vm2374_vm3, %v4244_v17   ;;  %2375 = vst.msk [vmem:[#allocation0] sm:$0xff] %vm2374_vm3, %v4243_v18  }
  0xc1   :  { %2190 = vst.msk [vmem:[#allocation0 + $0x78] sm:$0xff] %vm2054_vm1, %v2187_v3   ;;  %v4239_v15 = vunpack.i.h.bf16 %v4237_v13  ;;  %v4238_v16 = vunpack.i.l.bf16 %v4237_v13  ;;  %v4252_v20 = vpop.permute.xlu0 %4251 }
  0xc2   :  { %v4254_v23 = vunpack.i.h.bf16 %v4252_v20  ;;  %v4253_v24 = vunpack.i.l.bf16 %v4252_v20 }
  0xc3   :  { %2354 = vst.msk [vmem:[#allocation0 + $0x58] sm:$0xff] %vm2199_vm2, %v4238_v16   ;;  %2365 = vst.msk [vmem:[#allocation0 + $0x78] sm:$0xff] %vm2199_vm2, %v4239_v15  }
  0xc4   :  { %v4247_v19 = vpop.permute.xlu1 %4246  ;;  %2430 = vst.msk [vmem:[#allocation0 + $0x28] sm:$0xff] %vm2374_vm3, %v4254_v23   ;;  %2419 = vst.msk [vmem:[#allocation0 + $0x8] sm:$0xff] %vm2374_vm3, %v4253_v24  }
  0xc5   :  { %v4249_v21 = vunpack.i.h.bf16 %v4247_v19  ;;  %v4248_v22 = vunpack.i.l.bf16 %v4247_v19  ;;  %v4262_v26 = vpop.permute.xlu0 %4261 }
  0xc6   :  { %v4264_v29 = vunpack.i.h.bf16 %v4262_v26  ;;  %v4263_v30 = vunpack.i.l.bf16 %v4262_v26 }
  0xc7   :  { %2408 = vst.msk [vmem:[#allocation0 + $0x60] sm:$0xff] %vm2374_vm3, %v4249_v21   ;;  %2397 = vst.msk [vmem:[#allocation0 + $0x40] sm:$0xff] %vm2374_vm3, %v4248_v22  }
  0xc8   :  { %v4257_v25 = vpop.permute.xlu1 %4256  ;;  %2463 = vst.msk [vmem:[#allocation0 + $0x10] sm:$0xff] %vm2374_vm3, %v4263_v30   ;;  %2474 = vst.msk [vmem:[#allocation0 + $0x30] sm:$0xff] %vm2374_vm3, %v4264_v29  }
  0xc9   :  { %v4259_v27 = vunpack.i.h.bf16 %v4257_v25  ;;  %v4258_v28 = vunpack.i.l.bf16 %v4257_v25 }
  0xcb   :  { %2452 = vst.msk [vmem:[#allocation0 + $0x68] sm:$0xff] %vm2374_vm3, %v4259_v27   ;;  %2441 = vst.msk [vmem:[#allocation0 + $0x48] sm:$0xff] %vm2374_vm3, %v4258_v28  }
  0xcc   :  { %v4267_v31 = vpop.permute.xlu1 %4266 }
  0xcd   :  { %v4272_v32 = vpop.permute.xlu0 %4271  ;;  %v4269_v33 = vunpack.i.h.bf16 %v4267_v31  ;;  %v4268_v34 = vunpack.i.l.bf16 %v4267_v31 }
  0xce   :  { %v4274_v35 = vunpack.i.h.bf16 %v4272_v32  ;;  %v4273_v36 = vunpack.i.l.bf16 %v4272_v32 }
  0xcf   :  { %2496 = vst.msk [vmem:[#allocation0 + $0x70] sm:$0xff] %vm2374_vm3, %v4269_v33   ;;  %2485 = vst.msk [vmem:[#allocation0 + $0x50] sm:$0xff] %vm2374_vm3, %v4268_v34  }
  0xd0   :  { %2507 = vst.msk [vmem:[#allocation0 + $0x18] sm:$0xff] %vm2374_vm3, %v4273_v36   ;;  %2518 = vst.msk [vmem:[#allocation0 + $0x38] sm:$0xff] %vm2374_vm3, %v4274_v35  }
  0xd1   :  { %v4277_v37 = vpop.permute.xlu1 %4276  ;;  %v4282_v38 = vpop.permute.xlu0 %4281 }
  0xd2   :  { %v4279_v39 = vunpack.i.h.bf16 %v4277_v37  ;;  %v4278_v40 = vunpack.i.l.bf16 %v4277_v37  ;;  %v4284_v41 = vunpack.i.h.bf16 %v4282_v38  ;;  %v4283_v42 = vunpack.i.l.bf16 %v4282_v38 }
  0xd4   :  { %2529 = vst.msk [vmem:[#allocation0 + $0x58] sm:$0xff] %vm2374_vm3, %v4278_v40   ;;  %2540 = vst.msk [vmem:[#allocation0 + $0x78] sm:$0xff] %vm2374_vm3, %v4279_v39  }
  0xd5   :  { %2550 = vst.msk [vmem:[#allocation0] sm:$0xff] %vm2549_vm4, %v4283_v42   ;;  %2561 = vst.msk [vmem:[#allocation0 + $0x20] sm:$0xff] %vm2549_vm4, %v4284_v41   ;;  %v4287_v43 = vpop.permute.xlu1 %4286  ;;  %v4292_v44 = vpop.permute.xlu0 %4291 }
  0xd6   :  { %v4289_v45 = vunpack.i.h.bf16 %v4287_v43  ;;  %v4288_v46 = vunpack.i.l.bf16 %v4287_v43  ;;  %v4294_v47 = vunpack.i.h.bf16 %v4292_v44  ;;  %v4293_v48 = vunpack.i.l.bf16 %v4292_v44 }
  0xd8   :  { %2572 = vst.msk [vmem:[#allocation0 + $0x40] sm:$0xff] %vm2549_vm4, %v4288_v46   ;;  %2583 = vst.msk [vmem:[#allocation0 + $0x60] sm:$0xff] %vm2549_vm4, %v4289_v45  }
  0xd9   :  { %2594 = vst.msk [vmem:[#allocation0 + $0x8] sm:$0xff] %vm2549_vm4, %v4293_v48   ;;  %2605 = vst.msk [vmem:[#allocation0 + $0x28] sm:$0xff] %vm2549_vm4, %v4294_v47   ;;  %v4297_v49 = vpop.permute.xlu1 %4296  ;;  %v4302_v50 = vpop.permute.xlu0 %4301 }
  0xda   :  { %v4299_v51 = vunpack.i.h.bf16 %v4297_v49  ;;  %v4298_v52 = vunpack.i.l.bf16 %v4297_v49  ;;  %v4304_v53 = vunpack.i.h.bf16 %v4302_v50  ;;  %v4303_v54 = vunpack.i.l.bf16 %v4302_v50 }
  0xdc   :  { %2616 = vst.msk [vmem:[#allocation0 + $0x48] sm:$0xff] %vm2549_vm4, %v4298_v52   ;;  %2627 = vst.msk [vmem:[#allocation0 + $0x68] sm:$0xff] %vm2549_vm4, %v4299_v51  }
  0xdd   :  { %2638 = vst.msk [vmem:[#allocation0 + $0x10] sm:$0xff] %vm2549_vm4, %v4303_v54   ;;  %2649 = vst.msk [vmem:[#allocation0 + $0x30] sm:$0xff] %vm2549_vm4, %v4304_v53   ;;  %v4307_v55 = vpop.permute.xlu1 %4306  ;;  %v4312_v56 = vpop.permute.xlu0 %4311 }
  0xde   :  { %v4309_v57 = vunpack.i.h.bf16 %v4307_v55  ;;  %v4308_v58 = vunpack.i.l.bf16 %v4307_v55  ;;  %v4314_v59 = vunpack.i.h.bf16 %v4312_v56  ;;  %v4313_v60 = vunpack.i.l.bf16 %v4312_v56 }
  0xe0   :  { %2660 = vst.msk [vmem:[#allocation0 + $0x50] sm:$0xff] %vm2549_vm4, %v4308_v58   ;;  %2671 = vst.msk [vmem:[#allocation0 + $0x70] sm:$0xff] %vm2549_vm4, %v4309_v57  }
  0xe1   :  { %2682 = vst.msk [vmem:[#allocation0 + $0x18] sm:$0xff] %vm2549_vm4, %v4313_v60   ;;  %2693 = vst.msk [vmem:[#allocation0 + $0x38] sm:$0xff] %vm2549_vm4, %v4314_v59   ;;  %v4317_v61 = vpop.permute.xlu1 %4316  ;;  %v4322_v62 = vpop.permute.xlu0 %4321 }
  0xe2   :  { %v4319_v63 = vunpack.i.h.bf16 %v4317_v61  ;;  %v4318_v0 = vunpack.i.l.bf16 %v4317_v61  ;;  %v4324_v1 = vunpack.i.h.bf16 %v4322_v62  ;;  %v4323_v2 = vunpack.i.l.bf16 %v4322_v62 }
  0xe4   :  { %2704 = vst.msk [vmem:[#allocation0 + $0x58] sm:$0xff] %vm2549_vm4, %v4318_v0   ;;  %2715 = vst.msk [vmem:[#allocation0 + $0x78] sm:$0xff] %vm2549_vm4, %v4319_v63  }
  0xe5   :  { %2725 = vst.msk [vmem:[#allocation0] sm:$0xff] %vm2724_vm5, %v4323_v2   ;;  %2736 = vst.msk [vmem:[#allocation0 + $0x20] sm:$0xff] %vm2724_vm5, %v4324_v1   ;;  %v4327_v3 = vpop.permute.xlu1 %4326  ;;  %v4332_v4 = vpop.permute.xlu0 %4331 }
  0xe6   :  { %v4329_v5 = vunpack.i.h.bf16 %v4327_v3  ;;  %v4328_v6 = vunpack.i.l.bf16 %v4327_v3  ;;  %v4334_v7 = vunpack.i.h.bf16 %v4332_v4  ;;  %v4333_v8 = vunpack.i.l.bf16 %v4332_v4 }
  0xe8   :  { %2747 = vst.msk [vmem:[#allocation0 + $0x40] sm:$0xff] %vm2724_vm5, %v4328_v6   ;;  %2758 = vst.msk [vmem:[#allocation0 + $0x60] sm:$0xff] %vm2724_vm5, %v4329_v5  }
  0xe9   :  { %2769 = vst.msk [vmem:[#allocation0 + $0x8] sm:$0xff] %vm2724_vm5, %v4333_v8   ;;  %2780 = vst.msk [vmem:[#allocation0 + $0x28] sm:$0xff] %vm2724_vm5, %v4334_v7   ;;  %v4337_v9 = vpop.permute.xlu1 %4336  ;;  %v4342_v10 = vpop.permute.xlu0 %4341 }
  0xea   :  { %v4339_v11 = vunpack.i.h.bf16 %v4337_v9  ;;  %v4338_v12 = vunpack.i.l.bf16 %v4337_v9  ;;  %v4344_v13 = vunpack.i.h.bf16 %v4342_v10  ;;  %v4343_v14 = vunpack.i.l.bf16 %v4342_v10 }
  0xec   :  { %2791 = vst.msk [vmem:[#allocation0 + $0x48] sm:$0xff] %vm2724_vm5, %v4338_v12   ;;  %2802 = vst.msk [vmem:[#allocation0 + $0x68] sm:$0xff] %vm2724_vm5, %v4339_v11  }
  0xed   :  { %2813 = vst.msk [vmem:[#allocation0 + $0x10] sm:$0xff] %vm2724_vm5, %v4343_v14   ;;  %2824 = vst.msk [vmem:[#allocation0 + $0x30] sm:$0xff] %vm2724_vm5, %v4344_v13   ;;  %v4347_v15 = vpop.permute.xlu1 %4346 }
  0xee   :  { %v4352_v16 = vpop.permute.xlu0 %4351  ;;  %v4349_v17 = vunpack.i.h.bf16 %v4347_v15  ;;  %v4348_v18 = vunpack.i.l.bf16 %v4347_v15 }
  0xef   :  { %v4354_v19 = vunpack.i.h.bf16 %v4352_v16  ;;  %v4353_v20 = vunpack.i.l.bf16 %v4352_v16 }
  0xf0   :  { %2835 = vst.msk [vmem:[#allocation0 + $0x50] sm:$0xff] %vm2724_vm5, %v4348_v18   ;;  %2846 = vst.msk [vmem:[#allocation0 + $0x70] sm:$0xff] %vm2724_vm5, %v4349_v17  }
  0xf1   :  { %2857 = vst.msk [vmem:[#allocation0 + $0x18] sm:$0xff] %vm2724_vm5, %v4353_v20   ;;  %2868 = vst.msk [vmem:[#allocation0 + $0x38] sm:$0xff] %vm2724_vm5, %v4354_v19  }
  0xf2   :  { %v4357_v21 = vpop.permute.xlu1 %4356  ;;  %v4362_v22 = vpop.permute.xlu0 %4361 }
  0xf3   :  { %v4359_v23 = vunpack.i.h.bf16 %v4357_v21  ;;  %v4358_v24 = vunpack.i.l.bf16 %v4357_v21  ;;  %v4364_v25 = vunpack.i.h.bf16 %v4362_v22  ;;  %v4363_v26 = vunpack.i.l.bf16 %v4362_v22 }
  0xf5   :  { %2879 = vst.msk [vmem:[#allocation0 + $0x58] sm:$0xff] %vm2724_vm5, %v4358_v24   ;;  %2890 = vst.msk [vmem:[#allocation0 + $0x78] sm:$0xff] %vm2724_vm5, %v4359_v23  }
  0xf6   :  { %2900 = vst.msk [vmem:[#allocation0] sm:$0xff] %vm2899_vm6, %v4363_v26   ;;  %2911 = vst.msk [vmem:[#allocation0 + $0x20] sm:$0xff] %vm2899_vm6, %v4364_v25   ;;  %v4367_v27 = vpop.permute.xlu1 %4366  ;;  %v4372_v28 = vpop.permute.xlu0 %4371 }
  0xf7   :  { %v4369_v29 = vunpack.i.h.bf16 %v4367_v27  ;;  %v4368_v30 = vunpack.i.l.bf16 %v4367_v27  ;;  %v4374_v31 = vunpack.i.h.bf16 %v4372_v28  ;;  %v4373_v32 = vunpack.i.l.bf16 %v4372_v28 }
  0xf9   :  { %2922 = vst.msk [vmem:[#allocation0 + $0x40] sm:$0xff] %vm2899_vm6, %v4368_v30   ;;  %2933 = vst.msk [vmem:[#allocation0 + $0x60] sm:$0xff] %vm2899_vm6, %v4369_v29  }
  0xfa   :  { %2944 = vst.msk [vmem:[#allocation0 + $0x8] sm:$0xff] %vm2899_vm6, %v4373_v32   ;;  %2955 = vst.msk [vmem:[#allocation0 + $0x28] sm:$0xff] %vm2899_vm6, %v4374_v31   ;;  %v4377_v33 = vpop.permute.xlu1 %4376  ;;  %v4382_v34 = vpop.permute.xlu0 %4381 }
  0xfb   :  { %v4379_v35 = vunpack.i.h.bf16 %v4377_v33  ;;  %v4378_v36 = vunpack.i.l.bf16 %v4377_v33  ;;  %v4384_v37 = vunpack.i.h.bf16 %v4382_v34  ;;  %v4383_v38 = vunpack.i.l.bf16 %v4382_v34 }
  0xfd   :  { %2966 = vst.msk [vmem:[#allocation0 + $0x48] sm:$0xff] %vm2899_vm6, %v4378_v36   ;;  %2977 = vst.msk [vmem:[#allocation0 + $0x68] sm:$0xff] %vm2899_vm6, %v4379_v35  }
  0xfe   :  { %2988 = vst.msk [vmem:[#allocation0 + $0x10] sm:$0xff] %vm2899_vm6, %v4383_v38   ;;  %2999 = vst.msk [vmem:[#allocation0 + $0x30] sm:$0xff] %vm2899_vm6, %v4384_v37   ;;  %v4387_v39 = vpop.permute.xlu1 %4386  ;;  %v4392_v40 = vpop.permute.xlu0 %4391 }
  0xff   :  { %v4389_v41 = vunpack.i.h.bf16 %v4387_v39  ;;  %v4388_v42 = vunpack.i.l.bf16 %v4387_v39  ;;  %v4394_v43 = vunpack.i.h.bf16 %v4392_v40  ;;  %v4393_v44 = vunpack.i.l.bf16 %v4392_v40 }
 0x101   :  { %3010 = vst.msk [vmem:[#allocation0 + $0x50] sm:$0xff] %vm2899_vm6, %v4388_v42   ;;  %3021 = vst.msk [vmem:[#allocation0 + $0x70] sm:$0xff] %vm2899_vm6, %v4389_v41  }
 0x102   :  { %3032 = vst.msk [vmem:[#allocation0 + $0x18] sm:$0xff] %vm2899_vm6, %v4393_v44   ;;  %3043 = vst.msk [vmem:[#allocation0 + $0x38] sm:$0xff] %vm2899_vm6, %v4394_v43   ;;  %v4397_v45 = vpop.permute.xlu1 %4396  ;;  %v4402_v46 = vpop.permute.xlu0 %4401 }
 0x103   :  { %v4399_v47 = vunpack.i.h.bf16 %v4397_v45  ;;  %v4398_v48 = vunpack.i.l.bf16 %v4397_v45  ;;  %v4404_v49 = vunpack.i.h.bf16 %v4402_v46  ;;  %v4403_v50 = vunpack.i.l.bf16 %v4402_v46 }
 0x105   :  { %3054 = vst.msk [vmem:[#allocation0 + $0x58] sm:$0xff] %vm2899_vm6, %v4398_v48   ;;  %3065 = vst.msk [vmem:[#allocation0 + $0x78] sm:$0xff] %vm2899_vm6, %v4399_v47  }
 0x106   :  { %3075 = vst.msk [vmem:[#allocation0] sm:$0xff] %vm3074_vm7, %v4403_v50   ;;  %3086 = vst.msk [vmem:[#allocation0 + $0x20] sm:$0xff] %vm3074_vm7, %v4404_v49   ;;  %v4407_v51 = vpop.permute.xlu1 %4406  ;;  %v4412_v52 = vpop.permute.xlu0 %4411 }
 0x107   :  { %v4409_v53 = vunpack.i.h.bf16 %v4407_v51  ;;  %v4408_v54 = vunpack.i.l.bf16 %v4407_v51  ;;  %v4414_v55 = vunpack.i.h.bf16 %v4412_v52  ;;  %v4413_v56 = vunpack.i.l.bf16 %v4412_v52 }
 0x109   :  { %3097 = vst.msk [vmem:[#allocation0 + $0x40] sm:$0xff] %vm3074_vm7, %v4408_v54   ;;  %3108 = vst.msk [vmem:[#allocation0 + $0x60] sm:$0xff] %vm3074_vm7, %v4409_v53  }
 0x10a   :  { %3119 = vst.msk [vmem:[#allocation0 + $0x8] sm:$0xff] %vm3074_vm7, %v4413_v56   ;;  %3130 = vst.msk [vmem:[#allocation0 + $0x28] sm:$0xff] %vm3074_vm7, %v4414_v55   ;;  %v4417_v57 = vpop.permute.xlu1 %4416  ;;  %v4422_v58 = vpop.permute.xlu0 %4421 }
 0x10b   :  { %v4419_v59 = vunpack.i.h.bf16 %v4417_v57  ;;  %v4418_v60 = vunpack.i.l.bf16 %v4417_v57  ;;  %v4424_v61 = vunpack.i.h.bf16 %v4422_v58  ;;  %v4423_v62 = vunpack.i.l.bf16 %v4422_v58 }
 0x10d   :  { %3141 = vst.msk [vmem:[#allocation0 + $0x48] sm:$0xff] %vm3074_vm7, %v4418_v60   ;;  %3152 = vst.msk [vmem:[#allocation0 + $0x68] sm:$0xff] %vm3074_vm7, %v4419_v59  }
 0x10e   :  { %3163 = vst.msk [vmem:[#allocation0 + $0x10] sm:$0xff] %vm3074_vm7, %v4423_v62   ;;  %3174 = vst.msk [vmem:[#allocation0 + $0x30] sm:$0xff] %vm3074_vm7, %v4424_v61   ;;  %v4427_v63 = vpop.permute.xlu1 %4426  ;;  %v4432_v0 = vpop.permute.xlu0 %4431 }
 0x10f   :  { %v4429_v1 = vunpack.i.h.bf16 %v4427_v63  ;;  %v4428_v2 = vunpack.i.l.bf16 %v4427_v63  ;;  %v4434_v3 = vunpack.i.h.bf16 %v4432_v0  ;;  %v4433_v4 = vunpack.i.l.bf16 %v4432_v0 }
 0x111   :  { %3185 = vst.msk [vmem:[#allocation0 + $0x50] sm:$0xff] %vm3074_vm7, %v4428_v2   ;;  %3196 = vst.msk [vmem:[#allocation0 + $0x70] sm:$0xff] %vm3074_vm7, %v4429_v1  }
 0x112   :  { %3207 = vst.msk [vmem:[#allocation0 + $0x18] sm:$0xff] %vm3074_vm7, %v4433_v4   ;;  %3218 = vst.msk [vmem:[#allocation0 + $0x38] sm:$0xff] %vm3074_vm7, %v4434_v3   ;;  %v4437_v5 = vpop.permute.xlu1 %4436  ;;  %v4442_v6 = vpop.permute.xlu0 %4441 }
 0x113   :  { %v4439_v7 = vunpack.i.h.bf16 %v4437_v5  ;;  %v4438_v8 = vunpack.i.l.bf16 %v4437_v5  ;;  %v4444_v9 = vunpack.i.h.bf16 %v4442_v6  ;;  %v4443_v10 = vunpack.i.l.bf16 %v4442_v6 }
 0x115   :  { %3229 = vst.msk [vmem:[#allocation0 + $0x58] sm:$0xff] %vm3074_vm7, %v4438_v8   ;;  %3240 = vst.msk [vmem:[#allocation0 + $0x78] sm:$0xff] %vm3074_vm7, %v4439_v7  }
 0x116   :  { %3250 = vst.msk [vmem:[#allocation0] sm:$0xff] %vm3249_vm8, %v4443_v10   ;;  %3261 = vst.msk [vmem:[#allocation0 + $0x20] sm:$0xff] %vm3249_vm8, %v4444_v9   ;;  %v4447_v11 = vpop.permute.xlu1 %4446  ;;  %v4452_v12 = vpop.permute.xlu0 %4451 }
 0x117   :  { %v4449_v13 = vunpack.i.h.bf16 %v4447_v11  ;;  %v4448_v14 = vunpack.i.l.bf16 %v4447_v11  ;;  %v4454_v15 = vunpack.i.h.bf16 %v4452_v12  ;;  %v4453_v16 = vunpack.i.l.bf16 %v4452_v12 }
 0x119   :  { %3272 = vst.msk [vmem:[#allocation0 + $0x40] sm:$0xff] %vm3249_vm8, %v4448_v14   ;;  %3283 = vst.msk [vmem:[#allocation0 + $0x60] sm:$0xff] %vm3249_vm8, %v4449_v13  }
 0x11a   :  { %3294 = vst.msk [vmem:[#allocation0 + $0x8] sm:$0xff] %vm3249_vm8, %v4453_v16   ;;  %3305 = vst.msk [vmem:[#allocation0 + $0x28] sm:$0xff] %vm3249_vm8, %v4454_v15   ;;  %v4457_v17 = vpop.permute.xlu1 %4456  ;;  %v4462_v18 = vpop.permute.xlu0 %4461 }
 0x11b   :  { %v4459_v19 = vunpack.i.h.bf16 %v4457_v17  ;;  %v4458_v20 = vunpack.i.l.bf16 %v4457_v17  ;;  %v4464_v21 = vunpack.i.h.bf16 %v4462_v18  ;;  %v4463_v22 = vunpack.i.l.bf16 %v4462_v18 }
 0x11d   :  { %3316 = vst.msk [vmem:[#allocation0 + $0x48] sm:$0xff] %vm3249_vm8, %v4458_v20   ;;  %3327 = vst.msk [vmem:[#allocation0 + $0x68] sm:$0xff] %vm3249_vm8, %v4459_v19   ;;  %v3421_v29 = vld [vmem:[#allocation0] sm:$0xff] }
 0x11e   :  { %3338 = vst.msk [vmem:[#allocation0 + $0x10] sm:$0xff] %vm3249_vm8, %v4463_v22   ;;  %3349 = vst.msk [vmem:[#allocation0 + $0x30] sm:$0xff] %vm3249_vm8, %v4464_v21   ;;  %v4467_v23 = vpop.permute.xlu1 %4466  ;;  %v4472_v24 = vpop.permute.xlu0 %4471  ;;  %v3450_v31 = vld [vmem:[#allocation0 + $0x20] sm:$0xff] }
 0x11f   :  { %v4469_v25 = vunpack.i.h.bf16 %v4467_v23  ;;  %v4468_v26 = vunpack.i.l.bf16 %v4467_v23  ;;  %v4474_v27 = vunpack.i.h.bf16 %v4472_v24  ;;  %v4473_v28 = vunpack.i.l.bf16 %v4472_v24 }
 0x120   :  { %v3482_v36 = vld [vmem:[#allocation0 + $0x40] sm:$0xff] }
 0x121   :  { %v3427_v30 = vld [vmem:[#allocation0 + $0x8] sm:$0xff]  ;;  %3360 = vst.msk [vmem:[#allocation0 + $0x50] sm:$0xff] %vm3249_vm8, %v4468_v26   ;;  %3371 = vst.msk [vmem:[#allocation0 + $0x70] sm:$0xff] %vm3249_vm8, %v4469_v25   ;;  %v3514_v39 = vld [vmem:[#allocation0 + $0x60] sm:$0xff] }
 0x122   :  { %v3458_v32 = vld [vmem:[#allocation0 + $0x28] sm:$0xff]  ;;  %v4086_v33 = vpack.c.bf16 %v3427_v30, %v3421_v29  ;;  %3382 = vst.msk [vmem:[#allocation0 + $0x18] sm:$0xff] %vm3249_vm8, %v4473_v28   ;;  %3393 = vst.msk [vmem:[#allocation0 + $0x38] sm:$0xff] %vm3249_vm8, %v4474_v27   ;;  %v4477_v35 = vpop.permute.xlu1 %4476 }
 0x123   :  { %v4096_v34 = vpack.c.bf16 %v3458_v32, %v3450_v31  ;;  %v4479_v37 = vunpack.i.h.bf16 %v4477_v35  ;;  %v4478_v38 = vunpack.i.l.bf16 %v4477_v35 }
 0x124   :  { %4087 = vst [vmem:[%s5026_s1] sm:$0xff] %v4086_v33   ;;  %v3490_v40 = vld [vmem:[#allocation0 + $0x48] sm:$0xff] }
 0x125   :  { %v3522_v41 = vld [vmem:[#allocation0 + $0x68] sm:$0xff]  ;;  %4187 = vst [vmem:[%s5026_s1 + $0x10] sm:$0xff] %v4096_v34   ;;  %v4106_v42 = vpack.c.bf16 %v3490_v40, %v3482_v36  ;;  %3404 = vst.msk [vmem:[#allocation0 + $0x58] sm:$0xff] %vm3249_vm8, %v4478_v38   ;;  %v3434_v44 = vld [vmem:[#allocation0 + $0x10] sm:$0xff] }
 0x126   :  { %v4116_v43 = vpack.c.bf16 %v3522_v41, %v3514_v39  ;;  %3415 = vst.msk [vmem:[#allocation0 + $0x78] sm:$0xff] %vm3249_vm8, %v4479_v37   ;;  %v3466_v46 = vld [vmem:[#allocation0 + $0x30] sm:$0xff] }
 0x127   :  { %4189 = vst [vmem:[%s5026_s1 + $0x20] sm:$0xff] %v4106_v42  }
 0x128   :  { %4191 = vst [vmem:[%s5026_s1 + $0x30] sm:$0xff] %v4116_v43   ;;  %v3498_v50 = vld [vmem:[#allocation0 + $0x50] sm:$0xff] }
 0x129   :  { %v3442_v45 = vld [vmem:[#allocation0 + $0x18] sm:$0xff]  ;;  %v3530_v51 = vld [vmem:[#allocation0 + $0x70] sm:$0xff] }
 0x12a   :  { %v4091_v47 = vpack.c.bf16 %v3442_v45, %v3434_v44  ;;  %v3474_v48 = vld [vmem:[#allocation0 + $0x38] sm:$0xff] }
 0x12b   :  { %v4101_v49 = vpack.c.bf16 %v3474_v48, %v3466_v46 }
 0x12c   :  { %4186 = vst [vmem:[%s5026_s1 + $0x8] sm:$0xff] %v4091_v47   ;;  %v3506_v52 = vld [vmem:[#allocation0 + $0x58] sm:$0xff] }
 0x12d   :  { %4188 = vst [vmem:[%s5026_s1 + $0x18] sm:$0xff] %v4101_v49   ;;  %v3538_v53 = vld [vmem:[#allocation0 + $0x78] sm:$0xff]  ;;  %v4111_v54 = vpack.c.bf16 %v3506_v52, %v3498_v50 }
 0x12e   :  { %v4121_v55 = vpack.c.bf16 %v3538_v53, %v3530_v51 }
 0x12f   :  { %4190 = vst [vmem:[%s5026_s1 + $0x28] sm:$0xff] %v4111_v54  }
 0x130   :  { %4192 = vst [vmem:[%s5026_s1 + $0x38] sm:$0xff] %v4121_v55  }

// kernel: squeeze.10
= control target key start
LH: loop header
LB: loop body
LE: loop exit
PB: predicated region body
PF: predicated region fallthrough
CT: control target
= control target key end

     0   :  { %s131_s8 = smov 104   ;;  %s132_s9 = smov 112   ;;  %vm8_vm0 = vcmask 64512   ;;  %s222_s0 = inlined_call_operand.vmem [shape: f32[128], index: 0, kind: input, shape index: {}]   ;;  %s223_s1 = inlined_call_operand.vmem [shape: f32[16,8], index: 1, kind: output, shape index: {}]  }
   0x1   :  { %v5_v0 = vld [vmem:[%s222_s0] sm:$0x1]  ;;  %s130_s0 = smov 120   ;;  %s133_s10 = smov 96  }
   0x2   :  { %6 = vst [vmem:[#allocation0] sm:$0x1] %v5_v0  ;;  %s134_s11 = smov 88   ;;  %s135_s12 = smov 80  }
   0x3   :  { %s136_s13 = smov 72   ;;  %s137_s14 = smov 64  }
   0x4   :  { %s138_s17 = smov 56   ;;  %s139_s18 = smov 48  }
   0x5   :  { %s140_s19 = smov 40   ;;  %s141_s20 = smov 32  }
   0x6   :  { %s142_s21 = smov 24   ;;  %s143_s22 = smov 16  }
   0x7   :  { %s144_s23 = smov 8  }
   0x9   :  { %v10_v1 = vld [vmem:[#allocation0] sm:$0x1]  }
   0xa   :  { %v22_v2 = vld [vmem:[#allocation0] sm:$0x1]   ;;  %11 = vrot.lane.b32.xlu0 %v10_v1, %s130_s0 }
   0xb   :  { %23 = vrot.lane.b32.xlu1 %v22_v2, %s131_s8  ;;  %v16_v3 = vld [vmem:[#allocation0] sm:$0x1]  }
   0xc   :  { %v28_v4 = vld [vmem:[#allocation0] sm:$0x1]  }
   0xd   :  { %v34_v5 = vld [vmem:[#allocation0] sm:$0x1]  }
   0xe   :  { %17 = vrot.lane.b32.xlu0 %v16_v3, %s132_s9  ;;  %v40_v6 = vld [vmem:[#allocation0] sm:$0x1]  }
   0xf   :  { %29 = vrot.lane.b32.xlu1 %v28_v4, %s133_s10  ;;  %v46_v7 = vld [vmem:[#allocation0] sm:$0x1]  }
  0x10   :  { %v52_v8 = vld [vmem:[#allocation0] sm:$0x1]  }
  0x11   :  { %v58_v9 = vld [vmem:[#allocation0] sm:$0x1]  }
  0x12   :  { %35 = vrot.lane.b32.xlu0 %v34_v5, %s134_s11  ;;  %v64_v10 = vld [vmem:[#allocation0] sm:$0x1]  }
  0x13   :  { %41 = vrot.lane.b32.xlu1 %v40_v6, %s135_s12  ;;  %v7_v11 = vld [vmem:[#allocation0] sm:$0x1]  }
  0x14   :  { %9 = vst.msk [vmem:[%s223_s1] sm:$0x1] %vm8_vm0, %v7_v11   ;;  %v70_v12 = vld [vmem:[#allocation0] sm:$0x1]  }
  0x15   :  { %v76_v13 = vld [vmem:[#allocation0] sm:$0x1]  }
  0x16   :  { %47 = vrot.lane.b32.xlu0 %v46_v7, %s136_s13  ;;  %v82_v14 = vld [vmem:[#allocation0] sm:$0x1]  }
  0x17   :  { %53 = vrot.lane.b32.xlu1 %v52_v8, %s137_s14  ;;  %v88_v15 = vld [vmem:[#allocation0] sm:$0x1]  }
  0x18   :  { %v94_v16 = vld [vmem:[#allocation0] sm:$0x1]  }
  0x1a   :  { %59 = vrot.lane.b32.xlu0 %v58_v9, %s138_s17 }
  0x1b   :  { %65 = vrot.lane.b32.xlu1 %v64_v10, %s139_s18 }
  0x1e   :  { %71 = vrot.lane.b32.xlu0 %v70_v12, %s140_s19 }
  0x1f   :  { %77 = vrot.lane.b32.xlu1 %v76_v13, %s141_s20 }
  0x22   :  { %83 = vrot.lane.b32.xlu0 %v82_v14, %s142_s21 }
  0x23   :  { %89 = vrot.lane.b32.xlu1 %v88_v15, %s143_s22 }
  0x26   :  { %95 = vrot.lane.b32.xlu0 %v94_v16, %s144_s23 }
  0x7c   :  { %v12_v17 = vpop.permute.xlu0 %11  }
  0x7d   :  { %v24_v18 = vpop.permute.xlu1 %23   ;;  %100 = vst.msk [vmem:[%s223_s1 + $0x1] sm:$0x1] %vm8_vm0, %v12_v17  }
  0x7e   :  { %102 = vst.msk [vmem:[%s223_s1 + $0x3] sm:$0x1] %vm8_vm0, %v24_v18  }
  0x80   :  { %v18_v19 = vpop.permute.xlu0 %17  }
  0x81   :  { %v30_v20 = vpop.permute.xlu1 %29   ;;  %101 = vst.msk [vmem:[%s223_s1 + $0x2] sm:$0x1] %vm8_vm0, %v18_v19  }
  0x82   :  { %103 = vst.msk [vmem:[%s223_s1 + $0x4] sm:$0x1] %vm8_vm0, %v30_v20  }
  0x84   :  { %v36_v21 = vpop.permute.xlu0 %35  }
  0x85   :  { %v42_v22 = vpop.permute.xlu1 %41   ;;  %104 = vst.msk [vmem:[%s223_s1 + $0x5] sm:$0x1] %vm8_vm0, %v36_v21  }
  0x86   :  { %105 = vst.msk [vmem:[%s223_s1 + $0x6] sm:$0x1] %vm8_vm0, %v42_v22  }
  0x88   :  { %v48_v23 = vpop.permute.xlu0 %47  }
  0x89   :  { %v54_v24 = vpop.permute.xlu1 %53   ;;  %106 = vst.msk [vmem:[%s223_s1 + $0x7] sm:$0x1] %vm8_vm0, %v48_v23  }
  0x8a   :  { %107 = vst.msk [vmem:[%s223_s1 + $0x8] sm:$0x1] %vm8_vm0, %v54_v24  }
  0x8c   :  { %v60_v25 = vpop.permute.xlu0 %59  }
  0x8d   :  { %v66_v26 = vpop.permute.xlu1 %65   ;;  %108 = vst.msk [vmem:[%s223_s1 + $0x9] sm:$0x1] %vm8_vm0, %v60_v25  }
  0x8e   :  { %109 = vst.msk [vmem:[%s223_s1 + $0xa] sm:$0x1] %vm8_vm0, %v66_v26  }
  0x90   :  { %v72_v27 = vpop.permute.xlu0 %71  }
  0x91   :  { %v78_v28 = vpop.permute.xlu1 %77   ;;  %110 = vst.msk [vmem:[%s223_s1 + $0xb] sm:$0x1] %vm8_vm0, %v72_v27  }
  0x92   :  { %111 = vst.msk [vmem:[%s223_s1 + $0xc] sm:$0x1] %vm8_vm0, %v78_v28  }
  0x94   :  { %v84_v29 = vpop.permute.xlu0 %83  }
  0x95   :  { %v90_v30 = vpop.permute.xlu1 %89   ;;  %112 = vst.msk [vmem:[%s223_s1 + $0xd] sm:$0x1] %vm8_vm0, %v84_v29  }
  0x96   :  { %113 = vst.msk [vmem:[%s223_s1 + $0xe] sm:$0x1] %vm8_vm0, %v90_v30  }
  0x98   :  { %v96_v31 = vpop.permute.xlu0 %95  }
  0x99   :  { %114 = vst.msk [vmem:[%s223_s1 + $0xf] sm:$0x1] %vm8_vm0, %v96_v31  }

// kernel: tile.13
= control target key start
LH: loop header
LB: loop body
LE: loop exit
PB: predicated region body
PF: predicated region fallthrough
CT: control target
= control target key end

     0   :  { %s40_s0 = inlined_call_operand.vmem [shape: f32[8], index: 0, kind: input, shape index: {}]   ;;  %s41_s1 = inlined_call_operand.vmem [shape: f32[32,8], index: 1, kind: output, shape index: {}]  }
   0x1   :  { %v4_v0 = vld [vmem:[%s40_s0] ss:$0 sm:$0xff] }
   0x2   :  { %5 = vst [vmem:[%s41_s1] sm:$0xff] %v4_v0  ;;  %12 = vst [vmem:[%s41_s1 + $0x8] sm:$0xff] %v4_v0 }
   0x3   :  { %13 = vst [vmem:[%s41_s1 + $0x10] sm:$0xff] %v4_v0  ;;  %14 = vst [vmem:[%s41_s1 + $0x18] sm:$0xff] %v4_v0 }

// kernel: tile.14
= control target key start
LH: loop header
LB: loop body
LE: loop exit
PB: predicated region body
PF: predicated region fallthrough
CT: control target
= control target key end

     0   :  { %s7_s6 = smov 3  ;;  %s21_s9 = smov 3  ;;  %vm4_vm0 = vcmask 64512   ;;  %vm11_vm1 = vcmask 1048512   ;;  %vm18_vm2 = vcmask 982912   ;;  %vm25_vm3 = vcmask 917312   ;;  %s235_s0 = inlined_call_operand.vmem [shape: f32[32,8], index: 0, kind: input, shape index: {}]   ;;  %s236_s1 = inlined_call_operand.vmem [shape: f32[1,256], index: 1, kind: output, shape index: {}]  }
   0x1   :  { %v125_v0 = vld [vmem:[%s235_s0 + $0xf] ss:$16 sm:%s7_s6]   ;;  %s156_s10 = smov 120   ;;  %v127_v1 = vld [vmem:[%s235_s0 + $0xd] ss:$16 sm:%s21_s9]   ;;  %s14_s13 = smov 3 }
   0x2   :  { %9 = vrot.lane.b32.xlu0 %v125_v0, %s156_s10  ;;  %s157_s14 = smov 104   ;;  %v126_v2 = vld [vmem:[%s235_s0 + $0xe] ss:$16 sm:%s14_s13]   ;;  %s28_s17 = smov 3  ;;  %vm32_vm4 = vcmask 851712   ;;  %vm39_vm5 = vcmask 786112  }
   0x3   :  { %23 = vrot.lane.b32.xlu1 %v127_v1, %s157_s14  ;;  %v128_v3 = vld [vmem:[%s235_s0 + $0xc] ss:$16 sm:%s28_s17]   ;;  %s35_s20 = smov 3  ;;  %s42_s21 = smov 3  ;;  %vm46_vm6 = vcmask 720512   ;;  %vm53_vm7 = vcmask 654912  }
   0x4   :  { %s158_s22 = smov 112   ;;  %s159_s23 = smov 96   ;;  %v129_v4 = vld [vmem:[%s235_s0 + $0xb] ss:$16 sm:%s35_s20]   ;;  %v130_v5 = vld [vmem:[%s235_s0 + $0xa] ss:$16 sm:%s42_s21]  }
   0x5   :  { %s49_s28 = smov 3  ;;  %s56_s29 = smov 3  ;;  %vm60_vm8 = vcmask 589312   ;;  %vm67_vm9 = vcmask 523712   ;;  %vm74_vm10 = vcmask 458112   ;;  %vm81_vm11 = vcmask 392512  }
   0x6   :  { %16 = vrot.lane.b32.xlu0 %v126_v2, %s158_s22  ;;  %s160_s30 = smov 88   ;;  %s161_s2 = smov 80   ;;  %v131_v6 = vld [vmem:[%s235_s0 + $0x9] ss:$16 sm:%s49_s28]   ;;  %vm88_vm12 = vcmask 326912   ;;  %vm95_vm13 = vcmask 261312  }
   0x7   :  { %30 = vrot.lane.b32.xlu1 %v128_v3, %s159_s23  ;;  %v132_v7 = vld [vmem:[%s235_s0 + $0x8] ss:$16 sm:%s56_s29]   ;;  %s63_s7 = smov 3  ;;  %s70_s8 = smov 3  ;;  %vm102_vm14 = vcmask 195712   ;;  %vm109_vm15 = vcmask 130112  }
   0x8   :  { %s162_s9 = smov 72   ;;  %s163_s10 = smov 64   ;;  %v133_v8 = vld [vmem:[%s235_s0 + $0x7] ss:$16 sm:%s63_s7]   ;;  %v134_v9 = vld [vmem:[%s235_s0 + $0x6] ss:$16 sm:%s70_s8]  }
   0x9   :  { %s2_s13 = smov 3  ;;  %s77_s16 = smov 3 }
   0xa   :  { %37 = vrot.lane.b32.xlu0 %v129_v4, %s160_s30  ;;  %v3_v10 = vld [vmem:[%s235_s0] ss:$16 sm:%s2_s13]   ;;  %s84_s19 = smov 3  ;;  %s164_s20 = smov 56  }
   0xb   :  { %44 = vrot.lane.b32.xlu1 %v130_v5, %s161_s2  ;;  %5 = vst.msk [vmem:[#allocation0] ss:$8 sm:$0x3] %vm4_vm0, %v3_v10   ;;  %s165_s21 = smov 48   ;;  %v135_v11 = vld [vmem:[%s235_s0 + $0x5] ss:$16 sm:%s77_s16]  }
   0xc   :  { %v136_v12 = vld [vmem:[%s235_s0 + $0x4] ss:$16 sm:%s84_s19]   ;;  %s91_s26 = smov 3  ;;  %s98_s27 = smov 3 }
   0xd   :  { %s166_s28 = smov 40   ;;  %s167_s29 = smov 32   ;;  %v137_v13 = vld [vmem:[%s235_s0 + $0x3] ss:$16 sm:%s91_s26]   ;;  %v138_v14 = vld [vmem:[%s235_s0 + $0x2] ss:$16 sm:%s98_s27]  }
   0xe   :  { %51 = vrot.lane.b32.xlu0 %v131_v6, %s162_s9  ;;  %s105_s5 = smov 3  ;;  %s168_s6 = smov 24  }
   0xf   :  { %58 = vrot.lane.b32.xlu1 %v132_v7, %s163_s10  ;;  %s169_s7 = smov 16   ;;  %v139_v15 = vld [vmem:[%s235_s0 + $0x1] ss:$16 sm:%s105_s5]   ;;  %s170_s0 = smov 8  }
  0x12   :  { %65 = vrot.lane.b32.xlu0 %v133_v8, %s164_s20 }
  0x13   :  { %72 = vrot.lane.b32.xlu1 %v134_v9, %s165_s21 }
  0x16   :  { %79 = vrot.lane.b32.xlu0 %v135_v11, %s166_s28 }
  0x17   :  { %86 = vrot.lane.b32.xlu1 %v136_v12, %s167_s29 }
  0x1a   :  { %93 = vrot.lane.b32.xlu0 %v137_v13, %s168_s6 }
  0x1b   :  { %100 = vrot.lane.b32.xlu1 %v138_v14, %s169_s7 }
  0x1e   :  { %107 = vrot.lane.b32.xlu0 %v139_v15, %s170_s0 }
  0x74   :  { %v10_v16 = vpop.permute.xlu0 %9  }
  0x75   :  { %12 = vst.msk [vmem:[#allocation0] ss:$8 sm:$0x3] %vm11_vm1, %v10_v16   ;;  %v24_v17 = vpop.permute.xlu1 %23  }
  0x78   :  { %v17_v18 = vpop.permute.xlu0 %16  }
  0x79   :  { %19 = vst.msk [vmem:[#allocation0] ss:$8 sm:$0x3] %vm18_vm2, %v17_v18   ;;  %v31_v19 = vpop.permute.xlu1 %30  }
  0x7a   :  { %26 = vst.msk [vmem:[#allocation0] ss:$8 sm:$0x3] %vm25_vm3, %v24_v17  }
  0x7b   :  { %33 = vst.msk [vmem:[#allocation0] ss:$8 sm:$0x3] %vm32_vm4, %v31_v19  }
  0x7c   :  { %v38_v20 = vpop.permute.xlu0 %37  }
  0x7d   :  { %40 = vst.msk [vmem:[#allocation0] ss:$8 sm:$0x3] %vm39_vm5, %v38_v20   ;;  %v45_v21 = vpop.permute.xlu1 %44  }
  0x7e   :  { %47 = vst.msk [vmem:[#allocation0] ss:$8 sm:$0x3] %vm46_vm6, %v45_v21  }
  0x80   :  { %v52_v22 = vpop.permute.xlu0 %51  }
  0x81   :  { %54 = vst.msk [vmem:[#allocation0] ss:$8 sm:$0x3] %vm53_vm7, %v52_v22   ;;  %v59_v23 = vpop.permute.xlu1 %58  }
  0x82   :  { %61 = vst.msk [vmem:[#allocation0] ss:$8 sm:$0x3] %vm60_vm8, %v59_v23  }
  0x84   :  { %v66_v24 = vpop.permute.xlu0 %65  }
  0x85   :  { %68 = vst.msk [vmem:[#allocation0] ss:$8 sm:$0x3] %vm67_vm9, %v66_v24   ;;  %v73_v25 = vpop.permute.xlu1 %72  }
  0x86   :  { %75 = vst.msk [vmem:[#allocation0] ss:$8 sm:$0x3] %vm74_vm10, %v73_v25  }
  0x88   :  { %v80_v26 = vpop.permute.xlu0 %79  }
  0x89   :  { %82 = vst.msk [vmem:[#allocation0] ss:$8 sm:$0x3] %vm81_vm11, %v80_v26   ;;  %v87_v27 = vpop.permute.xlu1 %86  }
  0x8a   :  { %89 = vst.msk [vmem:[#allocation0] ss:$8 sm:$0x3] %vm88_vm12, %v87_v27  }
  0x8c   :  { %v94_v28 = vpop.permute.xlu0 %93  }
  0x8d   :  { %96 = vst.msk [vmem:[#allocation0] ss:$8 sm:$0x3] %vm95_vm13, %v94_v28   ;;  %v101_v29 = vpop.permute.xlu1 %100  }
  0x8e   :  { %103 = vst.msk [vmem:[#allocation0] ss:$8 sm:$0x3] %vm102_vm14, %v101_v29  }
  0x90   :  { %v108_v30 = vpop.permute.xlu0 %107  }
  0x91   :  { %110 = vst.msk [vmem:[#allocation0] ss:$8 sm:$0x3] %vm109_vm15, %v108_v30  }
  0x98   :  { %v115_v31 = vld [vmem:[#allocation0] sm:$0x1]  ;;  %v120_v32 = vld [vmem:[#allocation0 + $0x8] sm:$0x1] }
  0x99   :  { %118 = vst [vmem:[%s236_s1] sm:$0x1] %v115_v31  ;;  %140 = vst [vmem:[%s236_s1 + $0x1] sm:$0x1] %v120_v32 }

// kernel: unet_skip_block_innermost.2
= control target key start
LH: loop header
LB: loop body
LE: loop exit
PB: predicated region body
PF: predicated region fallthrough
CT: control target
= control target key end

     0   :  { %s1359_s18 = smov 0   ;;  %s1607_s0 = inlined_call_operand.vmem [shape: f32[2,2,8,128], index: 0, kind: input, shape index: {}]   ;;  %s1608_s1 = inlined_call_operand.vmem [shape: bf16[512,128], index: 1, kind: input, shape index: {}]   ;;  %s1609_s2 = inlined_call_operand.vmem [shape: bf16[256,128], index: 2, kind: input, shape index: {}]   ;;  %s1610_s3 = inlined_call_operand.vmem [shape: bf16[256,128], index: 3, kind: input, shape index: {}]   ;;  %s1611_s4 = inlined_call_operand.vmem [shape: bf16[2,8,256], index: 4, kind: output, shape index: {0}]   ;;  %s1612_s5 = inlined_call_operand.vmem [shape: f32[2,2,128], index: 5, kind: output, shape index: {1}]  }
   0x1 LB: > { %s1065_s19 = sadd.s32 4294967295, %s1327_s18   ;;  %p1069_p0 = scmp.ge.s32.totalorder %s1327_s18, 1  ;;  %s1327_s18 = sphi %s1359_s18, %s16_s18  }
   0x2   : > { %p190_p1 = scmp.lt.s32.totalorder %s1327_s18, 3 }
   0x4   : > { %p191_p2 = pnand %p1069_p0, %p190_p1 }
   0x5   : > { %p222_p3 = scmp.lt.s32.totalorder (!%p191_p2), %s1065_s19, 1 }
   0x6   : > { %194 = sbr.rel (%p191_p2) target bundleno = 467 (0x1d3), region = 36 }
   0xb   : > { %v1257_v0 = vld [vmem:[%s1608_s1 + $0x78] sm:$0xff]   ;;  %v1261_v4 = vld [vmem:[%s1608_s1 + $0x70] sm:$0xff]   ;;  %v1265_v8 = vld [vmem:[%s1608_s1 + $0x68] sm:$0xff]   ;;  %s1618_s19 = smov (!%p222_p3, %s1065_s19), 1  ;;  %vm251_vm0 = vcmask 1046528   ;;  %vm246_vm1 = vcmask 1040384  }
   0xc   : > { %v1258_v1 = vld [vmem:[%s1608_s1 + $0xf8] sm:$0xff]   ;;  %1161 = vmatprep.subr.bf16.mxu0 %v1257_v0  ;;  %v1262_v5 = vld [vmem:[%s1608_s1 + $0xf0] sm:$0xff]   ;;  %v1266_v9 = vld [vmem:[%s1608_s1 + $0xe8] sm:$0xff]   ;;  %s1158_s28 = sshll.u32 %s1618_s19, 4  ;;  %s1074_s16 = sshll.u32 %s1618_s19, 1 }
   0xd   : > { %v1259_v2 = vld [vmem:[%s1608_s1 + $0x38] sm:$0xff]   ;;  %1183 = vmatprep.subr.bf16.mxu1 %v1258_v1  ;;  %v1263_v6 = vld [vmem:[%s1608_s1 + $0x30] sm:$0xff]   ;;  %v1267_v10 = vld [vmem:[%s1608_s1 + $0x28] sm:$0xff]   ;;  %s226_s12 = scalar_lea.vmem %s1607_s0, %s1158_s28  ;;  %s235_s21 = scalar_lea.vmem %s1612_s5, %s1074_s16 }
   0xe   : > { %v1260_v3 = vld [vmem:[%s1608_s1 + $0xb8] sm:$0xff]   ;;  %1162 = vmatpush3.bf16.msra.mxu0 %v1259_v2  ;;  %v1264_v7 = vld [vmem:[%s1608_s1 + $0xb0] sm:$0xff]   ;;  %v1268_v11 = vld [vmem:[%s1608_s1 + $0xa8] sm:$0xff]  }
   0xf   : > { %1184 = vmatpush3.bf16.msra.mxu1 %v1260_v3  ;;  %1163 = vmatprep.subr.bf16.mxu0 %v1261_v4  ;;  %v1269_v12 = vld [vmem:[%s1608_s1 + $0x60] sm:$0xff]   ;;  %v1273_v16 = vld [vmem:[%s1608_s1 + $0x58] sm:$0xff]   ;;  %v1277_v20 = vld [vmem:[%s1608_s1 + $0x50] sm:$0xff]  }
  0x10   : > { %1185 = vmatprep.subr.bf16.mxu1 %v1262_v5  ;;  %v1270_v13 = vld [vmem:[%s1608_s1 + $0xe0] sm:$0xff]   ;;  %v1274_v17 = vld [vmem:[%s1608_s1 + $0xd8] sm:$0xff]   ;;  %v1278_v21 = vld [vmem:[%s1608_s1 + $0xd0] sm:$0xff]  }
  0x11   : > { %v1271_v14 = vld [vmem:[%s1608_s1 + $0x20] sm:$0xff]   ;;  %v1275_v18 = vld [vmem:[%s1608_s1 + $0x18] sm:$0xff]   ;;  %v1279_v22 = vld [vmem:[%s1608_s1 + $0x10] sm:$0xff]  }
  0x12   : > { %1164 = vmatpush3.bf16.msra.mxu0 %v1263_v6  ;;  %v1272_v15 = vld [vmem:[%s1608_s1 + $0xa0] sm:$0xff]   ;;  %v1276_v19 = vld [vmem:[%s1608_s1 + $0x98] sm:$0xff]   ;;  %v1280_v23 = vld [vmem:[%s1608_s1 + $0x90] sm:$0xff]  }
  0x13   : > { %1186 = vmatpush3.bf16.msra.mxu1 %v1264_v7  ;;  %1165 = vmatprep.subr.bf16.mxu0 %v1265_v8  ;;  %v1281_v24 = vld [vmem:[%s1608_s1 + $0x48] sm:$0xff]   ;;  %v1285_v28 = vld [vmem:[%s1608_s1 + $0x40] sm:$0xff]   ;;  %vm1473_vm2 = vmpackc.low %vm251_vm0, %vm251_vm0 }
  0x14   : > { %1187 = vmatprep.subr.bf16.mxu1 %v1266_v9  ;;  %v1282_v25 = vld [vmem:[%s1608_s1 + $0xc8] sm:$0xff]   ;;  %v1286_v29 = vld [vmem:[%s1608_s1 + $0xc0] sm:$0xff]   ;;  %vm1478_vm3 = vmneg %vm246_vm1 }
  0x15   : > { %v1283_v26 = vld [vmem:[%s1608_s1 + $0x8] sm:$0xff]   ;;  %v1287_v30 = vld [vmem:[%s1608_s1] sm:$0xff]   ;;  %v1289_v38 = vld [vmem:[%s1609_s2 + $0x78] sm:$0xff]  }
  0x16   : > { %1166 = vmatpush3.bf16.msra.mxu0 %v1267_v10  ;;  %v1284_v27 = vld [vmem:[%s1608_s1 + $0x88] sm:$0xff]   ;;  %v1288_v31 = vld [vmem:[%s1608_s1 + $0x80] sm:$0xff]   ;;  %v1290_v41 = vld [vmem:[%s1610_s3 + $0x78] sm:$0xff]  }
  0x17   : > { %1188 = vmatpush3.bf16.msra.mxu1 %v1268_v11  ;;  %1167 = vmatprep.subr.bf16.mxu0 %v1269_v12  ;;  %v237_v32 = vld [vmem:[%s226_s12] sm:$0xff]  ;;  %v238_v33 = vld [vmem:[%s226_s12 + $0x8] sm:$0xff]  ;;  %v1291_v42 = vld [vmem:[%s1609_s2 + $0x38] sm:$0xff]   ;;  %s1159_s12 = sshll.u32 %s1618_s19, 3 }
  0x18   : > { %1189 = vmatprep.subr.bf16.mxu1 %v1270_v13  ;;  %v239_v34 = vmul.f32 0.2, %v237_v32  ;;  %v240_v35 = vmul.f32 0.2, %v238_v33  ;;  %vm1109_vm4 = vmpackc.low %vm1478_vm3, %vm1478_vm3  ;;  %v1292_v47 = vld [vmem:[%s1610_s3 + $0x38] sm:$0xff]   ;;  %v1293_v50 = vld [vmem:[%s1609_s2 + $0x70] sm:$0xff]   ;;  %s231_s15 = scalar_lea.vmem %s1611_s4, %s1159_s12 }
  0x19   : > { %v1294_v51 = vld [vmem:[%s1610_s3 + $0x70] sm:$0xff]   ;;  %v1297_v54 = vld [vmem:[%s1609_s2 + $0x68] sm:$0xff]   ;;  %v1301_v58 = vld [vmem:[%s1609_s2 + $0x60] sm:$0xff]  }
  0x1a   : > { %1168 = vmatpush3.bf16.msra.mxu0 %v1271_v14  ;;  %v241_v39 = vmax.f32 %v237_v32, %v239_v34  ;;  %v242_v40 = vmax.f32 %v238_v33, %v240_v35  ;;  %v1295_v52 = vld [vmem:[%s1609_s2 + $0x30] sm:$0xff]   ;;  %v1298_v55 = vld [vmem:[%s1610_s3 + $0x68] sm:$0xff]   ;;  %v1302_v59 = vld [vmem:[%s1610_s3 + $0x60] sm:$0xff]  }
  0x1b   : > { %1190 = vmatpush3.bf16.msra.mxu1 %v1272_v15  ;;  %1169 = vmatprep.subr.bf16.mxu0 %v1273_v16  ;;  %v1296_v53 = vld [vmem:[%s1610_s3 + $0x30] sm:$0xff]   ;;  %v1299_v56 = vld [vmem:[%s1609_s2 + $0x28] sm:$0xff]   ;;  %v1303_v60 = vld [vmem:[%s1609_s2 + $0x20] sm:$0xff]  }
  0x1c   : > { %1191 = vmatprep.subr.bf16.mxu1 %v1274_v17  ;;  %v254_v43 = vpack.c.bf16 %v241_v39, %v241_v39  ;;  %v249_v44 = vrot.slane %v241_v39, 1  ;;  %v244_v45 = vrot.slane %v242_v40, 7  ;;  %v255_v46 = vpack.c.bf16 %v242_v40, %v242_v40  ;;  %v1300_v57 = vld [vmem:[%s1610_s3 + $0x28] sm:$0xff]   ;;  %v1304_v61 = vld [vmem:[%s1610_s3 + $0x20] sm:$0xff]   ;;  %v1305_v62 = vld [vmem:[%s1609_s2 + $0x58] sm:$0xff]  }
  0x1d   : > { %v1306_v63 = vld [vmem:[%s1610_s3 + $0x58] sm:$0xff]   ;;  %v1309_v2 = vld [vmem:[%s1609_s2 + $0x50] sm:$0xff]   ;;  %v1313_v6 = vld [vmem:[%s1609_s2 + $0x48] sm:$0xff]  }
  0x1e   : > { %1170 = vmatpush3.bf16.msra.mxu0 %v1275_v18  ;;  %545 = vmatprep.mubr.bf16.mxu0 %v254_v43  ;;  %v1113_v48 = vpack.c.bf16 %v249_v44, %v249_v44  ;;  %v1110_v49 = vpack.c.bf16 %v244_v45, %v244_v45  ;;  %v1307_v0 = vld [vmem:[%s1609_s2 + $0x18] sm:$0xff]   ;;  %v1310_v3 = vld [vmem:[%s1610_s3 + $0x50] sm:$0xff]   ;;  %v1314_v7 = vld [vmem:[%s1610_s3 + $0x48] sm:$0xff]  }
  0x1f   : > { %1192 = vmatpush3.bf16.msra.mxu1 %v1276_v19  ;;  %1171 = vmatprep.subr.bf16.mxu0 %v1277_v20  ;;  %v1308_v1 = vld [vmem:[%s1610_s3 + $0x18] sm:$0xff]   ;;  %v1311_v4 = vld [vmem:[%s1609_s2 + $0x10] sm:$0xff]   ;;  %v1315_v8 = vld [vmem:[%s1609_s2 + $0x8] sm:$0xff]  }
  0x20   : > { %1193 = vmatprep.subr.bf16.mxu1 %v1278_v21  ;;  %1114 = vmatprep.mubr.msk.bf16.mxu1 %vm1473_vm2, %v1113_v48  ;;  %v1312_v5 = vld [vmem:[%s1610_s3 + $0x10] sm:$0xff]   ;;  %v1316_v9 = vld [vmem:[%s1610_s3 + $0x8] sm:$0xff]   ;;  %v1317_v10 = vld [vmem:[%s1609_s2 + $0x40] sm:$0xff]  }
  0x21   : > { %v1318_v11 = vld [vmem:[%s1610_s3 + $0x40] sm:$0xff]  }
  0x22   : > { %1172 = vmatpush3.bf16.msra.mxu0 %v1279_v22  ;;  %v1319_v12 = vld [vmem:[%s1609_s2] sm:$0xff]  }
  0x23   : > { %1194 = vmatpush3.bf16.msra.mxu1 %v1280_v23  ;;  %1173 = vmatprep.subr.bf16.mxu0 %v1281_v24  ;;  %v1320_v13 = vld [vmem:[%s1610_s3] sm:$0xff]  }
  0x24   : > { %1195 = vmatprep.subr.bf16.mxu1 %v1282_v25 }
  0x26   : > { %1174 = vmatpush3.bf16.msra.mxu0 %v1283_v26 }
  0x27   : > { %1196 = vmatpush3.bf16.msra.mxu1 %v1284_v27  ;;  %1175 = vmatprep.subr.bf16.mxu0 %v1285_v28 }
  0x28   : > { %1197 = vmatprep.subr.bf16.mxu1 %v1286_v29 }
  0x2a   : > { %1176 = vmatpush3.bf16.msra.mxu0 %v1287_v30 }
  0x2b   : > { %1198 = vmatpush3.bf16.msra.mxu1 %v1288_v31  ;;  %1205 = vmatprep.subr.bf16.mxu0 %v1289_v38 }
  0x2c   : > { %1227 = vmatprep.subr.bf16.mxu1 %v1290_v41 }
  0x2d   : > { %1111 = vmatmul.mubr.msk.bf16.vlgmr.msra.gmra.mxu0 %vm1109_vm4, %v1110_v49 }
  0x2e   : > { %586 = vmatmul.mubr.bf16.vlgmr.msra.gmra.mxu1 %v255_v46  ;;  %1206 = vmatpush3.bf16.msra.mxu0 %v1291_v42 }
  0x2f   : > { %1228 = vmatpush3.bf16.msra.mxu1 %v1292_v47  ;;  %1207 = vmatprep.subr.bf16.mxu0 %v1293_v50 }
  0x30   : > { %1229 = vmatprep.subr.bf16.mxu1 %v1294_v51 }
  0x32   : > { %1208 = vmatpush3.bf16.msra.mxu0 %v1295_v52 }
  0x33   : > { %1230 = vmatpush3.bf16.msra.mxu1 %v1296_v53  ;;  %1209 = vmatprep.subr.bf16.mxu0 %v1297_v54 }
  0x34   : > { %1231 = vmatprep.subr.bf16.mxu1 %v1298_v55 }
  0x36   : > { %1210 = vmatpush3.bf16.msra.mxu0 %v1299_v56 }
  0x37   : > { %1232 = vmatpush3.bf16.msra.mxu1 %v1300_v57  ;;  %1211 = vmatprep.subr.bf16.mxu0 %v1301_v58 }
  0x38   : > { %1233 = vmatprep.subr.bf16.mxu1 %v1302_v59 }
  0x3a   : > { %1212 = vmatpush3.bf16.msra.mxu0 %v1303_v60 }
  0x3b   : > { %1234 = vmatpush3.bf16.msra.mxu1 %v1304_v61  ;;  %1213 = vmatprep.subr.bf16.mxu0 %v1305_v62 }
  0x3c   : > { %1235 = vmatprep.subr.bf16.mxu1 %v1306_v63 }
  0x3e   : > { %1214 = vmatpush3.bf16.msra.mxu0 %v1307_v0 }
  0x3f   : > { %1236 = vmatpush3.bf16.msra.mxu1 %v1308_v1  ;;  %1215 = vmatprep.subr.bf16.mxu0 %v1309_v2 }
  0x40   : > { %1237 = vmatprep.subr.bf16.mxu1 %v1310_v3 }
  0x42   : > { %1216 = vmatpush3.bf16.msra.mxu0 %v1311_v4 }
  0x43   : > { %1238 = vmatpush3.bf16.msra.mxu1 %v1312_v5  ;;  %1217 = vmatprep.subr.bf16.mxu0 %v1313_v6 }
  0x44   : > { %1239 = vmatprep.subr.bf16.mxu1 %v1314_v7 }
  0x46   : > { %1218 = vmatpush3.bf16.msra.mxu0 %v1315_v8 }
  0x47   : > { %1240 = vmatpush3.bf16.msra.mxu1 %v1316_v9  ;;  %1219 = vmatprep.subr.bf16.mxu0 %v1317_v10 }
  0x48   : > { %1241 = vmatprep.subr.bf16.mxu1 %v1318_v11 }
  0x4a   : > { %1220 = vmatpush3.bf16.msra.mxu0 %v1319_v12 }
  0x4b   : > { %1242 = vmatpush3.bf16.msra.mxu1 %v1320_v13 }
  0xed   : > { %v1177_v14 = vpop.f32.mrf.mxu0 }
  0xee   : > { %v1199_v15 = vpop.f32.mrf.mxu1 }
  0xef   : > { %v1178_v16 = vpop.f32.mrf.mxu0 }
  0xf0   : > { %v1179_v17 = vadd.f32 %v1178_v16, %v1177_v14  ;;  %v1200_v18 = vpop.f32.mrf.mxu1 }
  0xf1   : > { %v1201_v19 = vadd.f32 %v1200_v18, %v1199_v15  ;;  %v1180_v20 = vpop.f32.mrf.mxu0 }
  0xf2   : > { %v1202_v21 = vpop.f32.mrf.mxu1 }
  0xf3   : > { %v588_v22 = vadd.f32 %v1201_v19, %v1179_v17  ;;  %v1181_v23 = vpop.f32.mrf.mxu0 }
  0xf4   : > { %v1203_v24 = vpop.f32.mrf.mxu1 }
  0xf5   : > { %v593_v25 = vmax.f32 %v588_v22, 0.0 }
  0xf7   : > { %v595_v26 = vrot.slane %v593_v25, 7  ;;  %v598_v27 = vrot.slane %v593_v25, 1  ;;  %v601_v30 = vpack.c.bf16 %v593_v25, %v593_v25 }
  0xf9   : > { %v1134_v28 = vpack.c.bf16 %v595_v26, %v595_v26  ;;  %v1153_v29 = vpack.c.bf16 %v598_v27, %v598_v27 }
  0xfb   : > { %1135 = vmatprep.mubr.msk.bf16.mxu0 %vm1109_vm4, %v1134_v28  ;;  %1154 = vmatprep.mubr.msk.bf16.mxu1 %vm1473_vm2, %v1153_v29 }
  0xfc   : > { %765 = vmatmul.mubr.bf16.vlgmr.msra.gmra.mxu0 %v601_v30  ;;  %933 = vmatmul.mubr.bf16.vlgmr.msra.gmra.mxu1 %v601_v30 }
 0x1bc   : > { %v1221_v31 = vpop.f32.mrf.mxu0  ;;  %v1243_v32 = vpop.f32.mrf.mxu1 }
 0x1be   : > { %v1222_v33 = vpop.f32.mrf.mxu0  ;;  %v1244_v34 = vpop.f32.mrf.mxu1 }
 0x1bf   : > { %v1223_v35 = vadd.f32 %v1222_v33, %v1221_v31  ;;  %v1245_v38 = vadd.f32 %v1244_v34, %v1243_v32 }
 0x1c0   : > { %v1224_v39 = vpop.f32.mrf.mxu0  ;;  %v1246_v40 = vpop.f32.mrf.mxu1 }
 0x1c1   : > { %v940_v41 = vrot.slane %v1223_v35, 4  ;;  %v953_v42 = vmul.f32 %v1223_v35, %v1223_v35  ;;  %v946_v37 = vrot.slane %v1245_v38, 4  ;;  %v960_v36 = vmul.f32 %v1245_v38, %v1245_v38 }
 0x1c2   : > { %v1160_v43 = vpack.c.bf16 %v1245_v38, %v1223_v35  ;;  %v1225_v44 = vpop.f32.mrf.mxu0  ;;  %v1247_v45 = vpop.f32.mrf.mxu1 }
 0x1c3   : > { %v941_v46 = vadd.f32 %v1223_v35, %v940_v41  ;;  %v954_v47 = vrot.slane %v953_v42, 4  ;;  %v947_v48 = vadd.f32 %v1245_v38, %v946_v37  ;;  %v961_v49 = vrot.slane %v960_v36, 4 }
 0x1c4   : > { %978 = vst [vmem:[%s231_s15] sm:$0xff] %v1160_v43 }
 0x1c5   : > { %v942_v50 = vrot.slane %v941_v46, 2  ;;  %v955_v51 = vadd.f32 %v954_v47, %v953_v42  ;;  %v948_v52 = vrot.slane %v947_v48, 2  ;;  %v962_v53 = vadd.f32 %v961_v49, %v960_v36 }
 0x1c7   : > { %v943_v54 = vadd.f32 %v942_v50, %v941_v46  ;;  %v956_v55 = vrot.slane %v955_v51, 2  ;;  %v949_v56 = vadd.f32 %v948_v52, %v947_v48  ;;  %v963_v57 = vrot.slane %v962_v53, 2 }
 0x1c9   : > { %v944_v58 = vrot.slane %v943_v54, 1  ;;  %v957_v59 = vadd.f32 %v956_v55, %v955_v51  ;;  %v950_v60 = vrot.slane %v949_v56, 1  ;;  %v964_v61 = vadd.f32 %v963_v57, %v962_v53 }
 0x1cb   : > { %v945_v62 = vadd.f32 %v944_v58, %v943_v54  ;;  %v958_v63 = vrot.slane %v957_v59, 1  ;;  %v951_v0 = vadd.f32 %v950_v60, %v949_v56  ;;  %v965_v1 = vrot.slane %v964_v61, 1 }
 0x1cd   : > { %v959_v2 = vadd.f32 %v958_v63, %v957_v59  ;;  %v966_v3 = vadd.f32 %v965_v1, %v964_v61  ;;  %v952_v4 = vadd.f32 %v951_v0, %v945_v62 }
 0x1cf   : > { %v967_v5 = vadd.f32 %v966_v3, %v959_v2 }
 0x1d1   : > { %v968_v6 = vsel %vm246_vm1, %v952_v4, %v967_v5 }
 0x1d2   : > { %969 = vst [vmem:[%s235_s21] sm:$0x3] %v968_v6 }
 0x1d3 PF: > { %s16_s18 = sadd.s32 1, %s1327_s18  }
 0x1d4   : > { %p13_p4 = scmp.ge.s32.totalorder %s16_s18, 4  }
 0x1d6   :  { %15 = sbr.rel (!%p13_p4) target bundleno = 1 (0x1), region = 78 }

// kernel: unet_skip_block_innermost.3
= control target key start
LH: loop header
LB: loop body
LE: loop exit
PB: predicated region body
PF: predicated region fallthrough
CT: control target
= control target key end

     0   :  { %v22_v0 = vlaneseq  ;;  %s104_s0 = inlined_call_operand.vmem [shape: bf16[16,256], index: 0, kind: input, shape index: {}]   ;;  %s105_s1 = inlined_call_operand.vmem [shape: f32[1,256], index: 1, kind: input, shape index: {}]   ;;  %s106_s2 = inlined_call_operand.vmem [shape: f32[1,256], index: 2, kind: input, shape index: {}]   ;;  %s107_s3 = inlined_call_operand.vmem [shape: f32[16,256], index: 3, kind: output, shape index: {}]  }
   0x1   :  { %v14_v1 = vld [vmem:[%s104_s0] sm:$0xff]  ;;  %v15_v3 = vld [vmem:[%s104_s0 + $0x8] sm:$0xff] }
   0x2   :  { %v23_v2 = vshrl.u32 %v22_v0, 7  ;;  %v16_v4 = vunpack.c.l.bf16 %v14_v1  ;;  %v20_v5 = vld [vmem:[%s105_s1] sm:$0x3]  ;;  %v17_v7 = vunpack.c.h.bf16 %v14_v1  ;;  %v18_v10 = vunpack.c.l.bf16 %v15_v3 }
   0x3   :  { %v36_v6 = vld [vmem:[%s106_s2] sm:$0x3]  ;;  %v19_v11 = vunpack.c.h.bf16 %v15_v3 }
   0x4   :  { %v24_v8 = vsub.s32 0, %v23_v2  ;;  %v28_v9 = vsub.s32 1, %v23_v2 }
   0x6   :  { %v25_v12 = vrot.slane %v20_v5, %v24_v8  ;;  %v41_v13 = vrot.slane %v36_v6, %v24_v8  ;;  %v29_v14 = vrot.slane %v20_v5, %v28_v9  ;;  %v45_v15 = vrot.slane %v36_v6, %v28_v9 }
   0x8   :  { %v32_v16 = vmul.f32 %v25_v12, %v16_v4  ;;  %v33_v17 = vmul.f32 %v29_v14, %v17_v7  ;;  %v34_v18 = vmul.f32 %v25_v12, %v18_v10  ;;  %v35_v19 = vmul.f32 %v29_v14, %v19_v11 }
   0xa   :  { %v48_v20 = vadd.f32 %v41_v13, %v32_v16  ;;  %v49_v21 = vadd.f32 %v45_v15, %v33_v17  ;;  %v50_v22 = vadd.f32 %v41_v13, %v34_v18  ;;  %v51_v23 = vadd.f32 %v45_v15, %v35_v19 }
   0xc   :  { %52 = vst [vmem:[%s107_s3] sm:$0xff] %v48_v20  ;;  %53 = vst [vmem:[%s107_s3 + $0x8] sm:$0xff] %v49_v21 }
   0xd   :  { %54 = vst [vmem:[%s107_s3 + $0x10] sm:$0xff] %v50_v22  ;;  %55 = vst [vmem:[%s107_s3 + $0x18] sm:$0xff] %v51_v23 }

</bundles_post_ra>
